<compile_context>
chip_gen: v7x
topology: tpu7x:2x2x1
jax: 0.10.0
libtpu: 0.0.40
codegen_flags: <defaults>
</compile_context>

<pallas_src>
import functools

import jax
import jax.numpy as jnp
from jax.experimental import pallas as pl
from jax.experimental.pallas import tpu as pltpu

MXU_DTYPE = jnp.bfloat16     # matmul operand dtype (f32 accumulation on MXU)
ACT_DTYPE = jnp.bfloat16     # activation storage dtype between kernels


# --------------------- generation-aware budgets & tiles ----------------------

def _device_kind():
    try:
        return jax.devices()[0].device_kind.lower()
    except Exception:
        return ""


_KIND = _device_kind()
_IS_V7 = ("v7" in _KIND) or ("7x" in _KIND)
_HAS_BF16_EUP = ("v6" in _KIND) or _IS_V7     # bf16 exp only on v6e / v7x


def _vmem_capacity_bytes():
    try:
        return int(pltpu.get_tpu_info().vmem_capacity_bytes)
    except Exception:
        # v7x has 64 MiB / TensorCore; v4/v5e/v5p/v6e have 128 MiB.
        return (64 << 20) if _IS_V7 else (128 << 20)


_VMEM_CAP = _vmem_capacity_bytes()
# Leave headroom for Mosaic internal scratch / double buffers:
#   128 MiB parts -> 96 MiB limit, 64 MiB parts (v7x) -> 48 MiB limit.
_VMEM_LIMIT = min(int(_VMEM_CAP * 3 // 4), 100 << 20)

_DESIRED_TM = 1024 if _VMEM_CAP >= (96 << 20) else 512   # rows per block
_DESIRED_TN = 1024                                        # out cols per block
_DESIRED_TK = 1024                                        # reduction tile

_SOFTMAX_EXP_DTYPE = jnp.bfloat16 if _HAS_BF16_EUP else jnp.float32


def _row_tile(m, desired=None):
    desired = desired or _DESIRED_TM        # multiple of 8; full dim is legal
    return m if m <= desired else desired


def _col_tile(n, desired=None):
    desired = desired or _DESIRED_TN        # multiple of 128; full dim is legal
    return n if n <= desired else desired


def _k_tile(k):
    # K tiles must divide K exactly (reduction correctness) and obey lane rule.
    for cand in (_DESIRED_TK, 512, 256):
        if cand <= k and k % cand == 0:
            return cand
    return k


def _mosaic_params(semantics):
    return pltpu.CompilerParams(dimension_semantics=semantics,
                                vmem_limit_bytes=_VMEM_LIMIT)


# ------------------------------ Pallas kernels -------------------------------

def _matmul_kernel(x_ref, w_ref, o_ref, acc_ref):
    """Tiled matmul with K-reduction grid axis and f32 accumulator."""
    @pl.when(pl.program_id(2) == 0)
    def _():
        acc_ref[...] = jnp.zeros_like(acc_ref)

    acc_ref[...] += jnp.dot(
        x_ref[...].astype(MXU_DTYPE), w_ref[...].astype(MXU_DTYPE),
        preferred_element_type=jnp.float32)

    @pl.when(pl.program_id(2) == pl.num_programs(2) - 1)
    def _():
        o_ref[...] = acc_ref[...].astype(o_ref.dtype)


def _embed_ln_kernel(x_ref, pos_ref, g_ref, b_ref, o_ref, *, eps):
    """Fused position-embedding add + pre-LayerNorm (one batch per block)."""
    x = x_ref[0].astype(jnp.float32) + pos_ref[...].astype(jnp.float32)
    mean = jnp.mean(x, axis=-1, keepdims=True)
    var = jnp.mean(jnp.square(x - mean), axis=-1, keepdims=True)
    y = (x - mean) * jax.lax.rsqrt(var + eps)
    o_ref[0] = (y * g_ref[...] + b_ref[...]).astype(o_ref.dtype)


def _ln_matmul_kernel(x_ref, g_ref, b_ref, w_ref, bias_ref, o_ref, y_ref,
                      *, eps, gelu):
    """Fused LayerNorm -> linear (+bias) -> optional quick_gelu.

    LN of the (tm, D) row block is computed once per row tile (j == 0) into a
    VMEM scratch and reused for every N column tile.
    """
    @pl.when(pl.program_id(1) == 0)
    def _():
        x = x_ref[...].astype(jnp.float32)
        mean = jnp.mean(x, axis=-1, keepdims=True)
        var = jnp.mean(jnp.square(x - mean), axis=-1, keepdims=True)
        y = (x - mean) * jax.lax.rsqrt(var + eps)
        y_ref[...] = (y * g_ref[...] + b_ref[...]).astype(y_ref.dtype)

    acc = jnp.dot(y_ref[...], w_ref[...].astype(MXU_DTYPE),
                  preferred_element_type=jnp.float32)
    acc = acc + bias_ref[...]
    if gelu:
        acc = acc * jax.nn.sigmoid(1.702 * acc)   # quick_gelu
    o_ref[...] = acc.astype(o_ref.dtype)


def _matmul_bias_residual_kernel(r_ref, x_ref, w_ref, b_ref, o_ref, acc_ref):
    """K-tiled linear + bias + residual add (output aliased onto residual)."""
    @pl.when(pl.program_id(2) == 0)
    def _():
        acc_ref[...] = jnp.zeros_like(acc_ref)

    acc_ref[...] += jnp.dot(
        x_ref[...].astype(MXU_DTYPE), w_ref[...].astype(MXU_DTYPE),
        preferred_element_type=jnp.float32)

    @pl.when(pl.program_id(2) == pl.num_programs(2) - 1)
    def _():
        out = acc_ref[...] + b_ref[...] + r_ref[...].astype(jnp.float32)
        o_ref[...] = out.astype(o_ref.dtype)


def _attention_kernel(q_ref, k_ref, v_ref, o_ref, *, scale):
    """One (batch, head) per block: blocks are (1, 1, S, dh)."""
    # Fold the softmax scale into q (S*dh mults instead of S^2).
    q = (q_ref[0, 0].astype(jnp.float32) * scale).astype(MXU_DTYPE)   # (S, dh)
    k = k_ref[0, 0]
    v = v_ref[0, 0]
    # s = q @ k^T without materializing a transpose.
    s = jax.lax.dot_general(q, k, (((1,), (1,)), ((), ())),
                            preferred_element_type=jnp.float32)       # (S, S)
    m = jnp.max(s, axis=-1, keepdims=True)
    p = jnp.exp((s - m).astype(_SOFTMAX_EXP_DTYPE))     # unnormalized probs
    denom = jnp.sum(p, axis=-1, keepdims=True, dtype=jnp.float32)
    o = jax.lax.dot_general(p.astype(MXU_DTYPE), v, (((1,), (0,)), ((), ())),
                            preferred_element_type=jnp.float32)       # (S, dh)
    # Normalize the (S, dh) output instead of the (S, S) probabilities.
    o = o * pl.reciprocal(denom, approx=True)           # EUP, frees VALU
    o_ref[0, 0] = o.astype(o_ref.dtype)


# ----------------------------- Pallas wrappers -------------------------------

def pallas_matmul(x, w, out_dtype=None):
    M, K = x.shape
    _, N = w.shape
    out_dtype = out_dtype or x.dtype
    tm, tn, tk = _row_tile(M), _col_tile(N), _k_tile(K)
    grid = (pl.cdiv(M, tm), pl.cdiv(N, tn), K // tk)
    return pl.pallas_call(
        _matmul_kernel,
        grid=grid,
        in_specs=[pl.BlockSpec((tm, tk), lambda i, j, kk: (i, kk)),
                  pl.BlockSpec((tk, tn), lambda i, j, kk: (kk, j))],
        out_specs=pl.BlockSpec((tm, tn), lambda i, j, kk: (i, j)),
        out_shape=jax.ShapeDtypeStruct((M, N), out_dtype),
        scratch_shapes=[pltpu.VMEM((tm, tn), jnp.float32)],
        compiler_params=_mosaic_params(("parallel", "parallel", "arbitrary")),
    )(x, w)


def pallas_embed_ln(h_raw, pos_emb, gamma, beta, eps=1e-5):
    B, S, D = h_raw.shape
    return pl.pallas_call(
        functools.partial(_embed_ln_kernel, eps=eps),
        grid=(B,),
        in_specs=[pl.BlockSpec((1, S, D), lambda b: (b, 0, 0)),
                  pl.BlockSpec((S, D), lambda b: (0, 0)),
                  pl.BlockSpec((1, D), lambda b: (0, 0)),
                  pl.BlockSpec((1, D), lambda b: (0, 0))],
        out_specs=pl.BlockSpec((1, S, D), lambda b: (b, 0, 0)),
        out_shape=jax.ShapeDtypeStruct((B, S, D), ACT_DTYPE),
        compiler_params=_mosaic_params(("parallel",)),
    )(h_raw,
      pos_emb.astype(ACT_DTYPE),
      gamma.reshape(1, D).astype(jnp.float32),
      beta.reshape(1, D).astype(jnp.float32))


def pallas_ln_matmul(x, gamma, beta, w, bias, *, gelu=False, eps=1e-5,
                     out_dtype=None):
    M, D = x.shape
    N = w.shape[1]
    out_dtype = out_dtype or x.dtype
    tm, tn = _row_tile(M), _col_tile(N)
    grid = (pl.cdiv(M, tm), pl.cdiv(N, tn))
    kernel = functools.partial(_ln_matmul_kernel, eps=eps, gelu=gelu)
    return pl.pallas_call(
        kernel,
        grid=grid,
        in_specs=[pl.BlockSpec((tm, D), lambda i, j: (i, 0)),
                  pl.BlockSpec((1, D), lambda i, j: (0, 0)),
                  pl.BlockSpec((1, D), lambda i, j: (0, 0)),
                  pl.BlockSpec((D, tn), lambda i, j: (0, j)),
                  pl.BlockSpec((1, tn), lambda i, j: (0, j))],
        out_specs=pl.BlockSpec((tm, tn), lambda i, j: (i, j)),
        out_shape=jax.ShapeDtypeStruct((M, N), out_dtype),
        scratch_shapes=[pltpu.VMEM((tm, D), MXU_DTYPE)],   # cached LN(x) block
        compiler_params=_mosaic_params(("parallel", "arbitrary")),
    )(x,
      gamma.reshape(1, D).astype(jnp.float32),
      beta.reshape(1, D).astype(jnp.float32),
      w,
      bias.reshape(1, N).astype(jnp.float32))


def pallas_matmul_bias_residual(resid, x, w, bias):
    M, K = x.shape
    N = w.shape[1]
    tm, tn, tk = _row_tile(M), _col_tile(N), _k_tile(K)
    grid = (pl.cdiv(M, tm), pl.cdiv(N, tn), K // tk)
    return pl.pallas_call(
        _matmul_bias_residual_kernel,
        grid=grid,
        in_specs=[pl.BlockSpec((tm, tn), lambda i, j, kk: (i, j)),
                  pl.BlockSpec((tm, tk), lambda i, j, kk: (i, kk)),
                  pl.BlockSpec((tk, tn), lambda i, j, kk: (kk, j)),
                  pl.BlockSpec((1, tn), lambda i, j, kk: (0, j))],
        out_specs=pl.BlockSpec((tm, tn), lambda i, j, kk: (i, j)),
        out_shape=jax.ShapeDtypeStruct((M, N), resid.dtype),
        scratch_shapes=[pltpu.VMEM((tm, tn), jnp.float32)],
        input_output_aliases={0: 0},   # write result in place of the residual
        compiler_params=_mosaic_params(("parallel", "parallel", "arbitrary")),
    )(resid, x, w, bias.reshape(1, N).astype(jnp.float32))


def pallas_attention(q, k, v, scale):
    B, nH, S, dh = q.shape
    spec = pl.BlockSpec((1, 1, S, dh), lambda b, h: (b, h, 0, 0))
    return pl.pallas_call(
        functools.partial(_attention_kernel, scale=scale),
        grid=(B, nH),
        in_specs=[spec, spec, spec],
        out_specs=pl.BlockSpec((1, 1, S, dh), lambda b, h: (b, h, 0, 0)),
        out_shape=jax.ShapeDtypeStruct((B, nH, S, dh), q.dtype),
        compiler_params=_mosaic_params(("parallel", "parallel")),
    )(q, k, v)


# --------------------------- parameter construction --------------------------

def init_params(key, cfg):
    D = cfg["hidden_size"]
    I = cfg["intermediate_size"]
    C = cfg["num_channels"]
    p = cfg["patch_size"]
    S = (cfg["image_size"] // p) ** 2 + 1
    P = cfg["projection_dim"]

    def nrm(k, shape, scale=0.02, dtype=MXU_DTYPE):
        return (scale * jax.random.normal(k, shape, dtype=jnp.float32)).astype(dtype)

    keys = iter(jax.random.split(key, 8 + 8 * cfg["num_layers"]))
    params = {
        # conv weight flattened in (C, p, p) order -> D; HF conv has no bias
        "patch_w": nrm(next(keys), (C * p * p, D)),
        "class_emb": nrm(next(keys), (D,), dtype=ACT_DTYPE),
        "pos_emb": nrm(next(keys), (S, D), dtype=ACT_DTYPE),
        "pre_ln_g": jnp.ones((D,), jnp.float32),
        "pre_ln_b": jnp.zeros((D,), jnp.float32),
        "post_ln_g": jnp.ones((D,), jnp.float32),
        "post_ln_b": jnp.zeros((D,), jnp.float32),
        "proj_w": nrm(next(keys), (D, P)),           # visual_projection, no bias
        "layers": [],
    }
    for _ in range(cfg["num_layers"]):
        layer = {
            "ln1_g": jnp.ones((D,), jnp.float32), "ln1_b": jnp.zeros((D,), jnp.float32),
            "ln2_g": jnp.ones((D,), jnp.float32), "ln2_b": jnp.zeros((D,), jnp.float32),
            # q/k/v projections fused into a single (D, 3D) weight: [q | k | v]
            "qkv_w": nrm(next(keys), (D, 3 * D)),
            "qkv_b": nrm(next(keys), (3 * D,), dtype=jnp.float32),
            "o_w": nrm(next(keys), (D, D)),
            "o_b": nrm(next(keys), (D,), dtype=jnp.float32),
            "fc1_w": nrm(next(keys), (D, I)),
            "fc1_b": nrm(next(keys), (I,), dtype=jnp.float32),
            "fc2_w": nrm(next(keys), (I, D)),
            "fc2_b": nrm(next(keys), (D,), dtype=jnp.float32),
        }
        params["layers"].append(layer)
    return params


# -------------------------------- forward pass --------------------------------

def clip_vision_proj_forward(pixel_values, params, cfg):
    """Equivalent of CLIPVisionProjVisionTower.forward: returns (B, 1, proj_dim)."""
    B, C, H, W = pixel_values.shape
    p = cfg["patch_size"]
    D = cfg["hidden_size"]
    nH = cfg["num_heads"]
    dh = D // nH
    gp = H // p
    n_patches = gp * gp
    S = n_patches + 1
    M = B * S
    scale = dh ** -0.5

    # --- embeddings: stride=patch conv rewritten as patchify + tiled matmul ---
    x = pixel_values.reshape(B, C, gp, p, gp, p)
    x = x.transpose(0, 2, 4, 1, 3, 5).reshape(B * n_patches, C * p * p)
    x = x.astype(ACT_DTYPE)
    patch_emb = pallas_matmul(x, params["patch_w"], out_dtype=ACT_DTYPE)
    patch_emb = patch_emb.reshape(B, n_patches, D)
    cls = jnp.broadcast_to(params["class_emb"][None, None, :], (B, 1, D))
    h_raw = jnp.concatenate([cls, patch_emb], axis=1)                 # (B, S, D)

    # --- fused position-embedding add + pre-LayerNorm ---
    h = pallas_embed_ln(h_raw, params["pos_emb"],
                        params["pre_ln_g"], params["pre_ln_b"]).reshape(M, D)

    # --- encoder layers (5 fused pallas_calls per layer) ---
    for layer in params["layers"]:
        # LN1 + fused QKV projection (one MXU pass over the activations)
        qkv = pallas_ln_matmul(h, layer["ln1_g"], layer["ln1_b"],
                               layer["qkv_w"], layer["qkv_b"])         # (M, 3D)
        # TODO(synk): fold these head split/merge relayouts into the attention
        # BlockSpecs (requires packing heads to >=128-lane blocks).
        qkv = qkv.reshape(B, S, 3, nH, dh).transpose(2, 0, 3, 1, 4)    # (3,B,nH,S,dh)
        attn = pallas_attention(qkv[0], qkv[1], qkv[2], scale)         # (B,nH,S,dh)
        attn = attn.transpose(0, 2, 1, 3).reshape(M, D)
        # o-projection + bias + residual (in place on h)
        h = pallas_matmul_bias_residual(h, attn, layer["o_w"], layer["o_b"])
        # LN2 + fc1 + quick_gelu
        g = pallas_ln_matmul(h, layer["ln2_g"], layer["ln2_b"],
                             layer["fc1_w"], layer["fc1_b"], gelu=True)  # (M, I)
        # fc2 + bias + residual, K-tiled over the intermediate dim (in place)
        h = pallas_matmul_bias_residual(h, g, layer["fc2_w"], layer["fc2_b"])

    # --- pooled CLS -> fused post-LN + visual projection (no bias) ---
    pooled = h.reshape(B, S, D)[:, 0, :]                               # (B, D)
    zero_proj_bias = jnp.zeros((cfg["projection_dim"],), jnp.float32)
    image_embeds = pallas_ln_matmul(pooled, params["post_ln_g"], params["post_ln_b"],
                                    params["proj_w"], zero_proj_bias,
                                    out_dtype=jnp.float32)             # (B, P)

    # .unsqueeze(1) in the PyTorch module
    return image_embeds[:, None, :]                                    # (B, 1, P)


# ------------------------------------ main ------------------------------------

if __name__ == "__main__":
    cfg = dict(
        image_size=16,
        patch_size=8,
        num_channels=3,
        hidden_size=32,
        num_heads=2,
        num_layers=2,
        intermediate_size=64,
        projection_dim=24,
    )
    key = jax.random.PRNGKey(0)
    k_params, k_px = jax.random.split(key)
    params = init_params(k_params, cfg)

    # pixel_values in NCHW, like the PyTorch module's input
    pixel_values = jax.random.normal(
        k_px, (2, cfg["num_channels"], cfg["image_size"], cfg["image_size"]),
        dtype=jnp.float32)

    fwd = jax.jit(functools.partial(clip_vision_proj_forward, cfg=cfg))
    out = fwd(pixel_values, params)
    out = jax.block_until_ready(out)
    assert out.shape == (2, 1, cfg["projection_dim"]), out.shape
    assert bool(jnp.all(jnp.isfinite(out)))
    print("KERNEL_OK")
</pallas_src>

<mosaic_0001>
module attributes {stable_mosaic.version = 11 : i64} {
  func.func @_embed_ln_kernel(%arg0: i32, %arg1: memref<1x5x32xbf16, #tpu.memory_space<vmem>>, %arg2: memref<5x32xbf16, #tpu.memory_space<vmem>>, %arg3: memref<1x32xf32, #tpu.memory_space<vmem>>, %arg4: memref<1x32xf32, #tpu.memory_space<vmem>>, %arg5: memref<1x5x32xbf16, #tpu.memory_space<vmem>>) attributes {dimension_semantics = [#tpu.dimension_semantics<parallel>], iteration_bounds = array<i64: 2>, scalar_prefetch = 0 : i64, scratch_operands = 0 : i64, tpu.core_type = #tpu.core_type<tc>, window_params = [{transform_indices = @transform_0, window_bounds = array<i64: 1, 5, 32>}, {pipeline_mode = #tpu.pipeline_mode<synchronous>, transform_indices = @transform_1, window_bounds = array<i64: 5, 32>}, {pipeline_mode = #tpu.pipeline_mode<synchronous>, transform_indices = @transform_2, window_bounds = array<i64: 1, 32>}, {pipeline_mode = #tpu.pipeline_mode<synchronous>, transform_indices = @transform_3, window_bounds = array<i64: 1, 32>}, {transform_indices = @transform_4, window_bounds = array<i64: 1, 5, 32>}]} {
    %c0 = arith.constant 0 : index
    %c0_0 = arith.constant 0 : index
    %c0_1 = arith.constant 0 : index
    %0 = vector.load %arg1[%c0, %c0_0, %c0_1] : memref<1x5x32xbf16, #tpu.memory_space<vmem>>, vector<1x5x32xbf16>
    %1 = vector.shape_cast %0 : vector<1x5x32xbf16> to vector<5x32xbf16>
    %2 = arith.extf %1 : vector<5x32xbf16> to vector<5x32xf32>
    %c0_2 = arith.constant 0 : index
    %c0_3 = arith.constant 0 : index
    %3 = vector.load %arg2[%c0_2, %c0_3] : memref<5x32xbf16, #tpu.memory_space<vmem>>, vector<5x32xbf16>
    %4 = arith.extf %3 : vector<5x32xbf16> to vector<5x32xf32>
    %5 = arith.addf %2, %4 : vector<5x32xf32>
    %cst = arith.constant dense<0.000000e+00> : vector<5xf32>
    %6 = vector.multi_reduction <add>, %5, %cst [1] : vector<5x32xf32> to vector<5xf32>
    %7 = vector.shape_cast %6 : vector<5xf32> to vector<5x1xf32>
    %cst_4 = arith.constant 3.200000e+01 : f32
    %8 = vector.broadcast %cst_4 : f32 to vector<5x1xf32>
    %9 = arith.divf %7, %8 : vector<5x1xf32>
    %10 = vector.broadcast %9 : vector<5x1xf32> to vector<5x32xf32>
    %11 = arith.subf %5, %10 : vector<5x32xf32>
    %12 = arith.mulf %11, %11 : vector<5x32xf32>
    %cst_5 = arith.constant dense<0.000000e+00> : vector<5xf32>
    %13 = vector.multi_reduction <add>, %12, %cst_5 [1] : vector<5x32xf32> to vector<5xf32>
    %14 = vector.shape_cast %13 : vector<5xf32> to vector<5x1xf32>
    %cst_6 = arith.constant 3.200000e+01 : f32
    %15 = vector.broadcast %cst_6 : f32 to vector<5x1xf32>
    %16 = arith.divf %14, %15 : vector<5x1xf32>
    %17 = vector.broadcast %9 : vector<5x1xf32> to vector<5x32xf32>
    %18 = arith.subf %5, %17 : vector<5x32xf32>
    %cst_7 = arith.constant 9.99999974E-6 : f32
    %19 = vector.broadcast %cst_7 : f32 to vector<5x1xf32>
    %20 = arith.addf %16, %19 : vector<5x1xf32>
    %21 = math.rsqrt %20 : vector<5x1xf32>
    %22 = vector.broadcast %21 : vector<5x1xf32> to vector<5x32xf32>
    %23 = arith.mulf %18, %22 : vector<5x32xf32>
    %c0_8 = arith.constant 0 : index
    %c0_9 = arith.constant 0 : index
    %24 = vector.load %arg3[%c0_8, %c0_9] : memref<1x32xf32, #tpu.memory_space<vmem>>, vector<1x32xf32>
    %25 = vector.broadcast %24 : vector<1x32xf32> to vector<5x32xf32>
    %26 = arith.mulf %23, %25 : vector<5x32xf32>
    %c0_10 = arith.constant 0 : index
    %c0_11 = arith.constant 0 : index
    %27 = vector.load %arg4[%c0_10, %c0_11] : memref<1x32xf32, #tpu.memory_space<vmem>>, vector<1x32xf32>
    %28 = vector.broadcast %27 : vector<1x32xf32> to vector<5x32xf32>
    %29 = arith.addf %26, %28 : vector<5x32xf32>
    %30 = arith.truncf %29 : vector<5x32xf32> to vector<5x32xbf16>
    %c0_12 = arith.constant 0 : index
    %c0_13 = arith.constant 0 : index
    %c0_14 = arith.constant 0 : index
    %31 = vector.load %arg5[%c0_12, %c0_13, %c0_14] : memref<1x5x32xbf16, #tpu.memory_space<vmem>>, vector<1x5x32xbf16>
    %32 = vector.shape_cast %31 : vector<1x5x32xbf16> to vector<5x32xbf16>
    %33 = vector.shape_cast %30 : vector<5x32xbf16> to vector<1x5x32xbf16>
    tpu.vector_store %arg5[%c0_12, %c0_13, %c0_14], %33 {strides = array<i32>} : memref<1x5x32xbf16, #tpu.memory_space<vmem>>, vector<1x5x32xbf16>,
    return
  }
  func.func @transform_0(%arg0: i32) -> (i32, i32, i32) {
    %c0_i32 = arith.constant 0 : i32
    %c0_i32_0 = arith.constant 0 : i32
    %c0_i32_1 = arith.constant 0 : i32
    return %arg0, %c0_i32, %c0_i32_0 : i32, i32, i32
  }
  func.func @transform_1(%arg0: i32) -> (i32, i32) {
    %c0_i32 = arith.constant 0 : i32
    %c0_i32_0 = arith.constant 0 : i32
    %c0_i32_1 = arith.constant 0 : i32
    return %c0_i32, %c0_i32_0 : i32, i32
  }
  func.func @transform_2(%arg0: i32) -> (i32, i32) {
    %c0_i32 = arith.constant 0 : i32
    %c0_i32_0 = arith.constant 0 : i32
    %c0_i32_1 = arith.constant 0 : i32
    return %c0_i32, %c0_i32_0 : i32, i32
  }
  func.func @transform_3(%arg0: i32) -> (i32, i32) {
    %c0_i32 = arith.constant 0 : i32
    %c0_i32_0 = arith.constant 0 : i32
    %c0_i32_1 = arith.constant 0 : i32
    return %c0_i32, %c0_i32_0 : i32, i32
  }
  func.func @transform_4(%arg0: i32) -> (i32, i32, i32) {
    %c0_i32 = arith.constant 0 : i32
    %c0_i32_0 = arith.constant 0 : i32
    %c0_i32_1 = arith.constant 0 : i32
    return %arg0, %c0_i32, %c0_i32_0 : i32, i32, i32
  }
}

module attributes {stable_mosaic.version = 11 : i64} {
  func.func @_matmul_kernel(%arg0: i32, %arg1: i32, %arg2: i32, %arg3: memref<8x192xbf16, #tpu.memory_space<vmem>>, %arg4: memref<192x32xbf16, #tpu.memory_space<vmem>>, %arg5: memref<8x32xbf16, #tpu.memory_space<vmem>>, %arg6: memref<8x32xf32, #tpu.memory_space<vmem>>) attributes {dimension_semantics = [#tpu.dimension_semantics<parallel>, #tpu.dimension_semantics<parallel>, #tpu.dimension_semantics<arbitrary>], iteration_bounds = array<i64: 1, 1, 1>, scalar_prefetch = 0 : i64, scratch_operands = 1 : i64, tpu.core_type = #tpu.core_type<tc>, window_params = [{transform_indices = @transform_0, window_bounds = array<i64: 8, 192>}, {transform_indices = @transform_1, window_bounds = array<i64: 192, 32>}, {transform_indices = @transform_2, window_bounds = array<i64: 8, 32>}]} {
    %c0_i32 = arith.constant 0 : i32
    %0 = arith.cmpi eq, %arg2, %c0_i32 : i32
    %1 = arith.extui %0 : i1 to i32
    %c0_i32_0 = arith.constant 0 : i32
    %2 = arith.cmpi ne, %1, %c0_i32_0 : i32
    scf.if %2 {
      %cst_10 = arith.constant 0.000000e+00 : f32
      %12 = vector.broadcast %cst_10 : f32 to vector<8x32xf32>
      %c0_11 = arith.constant 0 : index
      %c0_12 = arith.constant 0 : index
      %13 = vector.load %arg6[%c0_11, %c0_12] : memref<8x32xf32, #tpu.memory_space<vmem>>, vector<8x32xf32>
      tpu.vector_store %arg6[%c0_11, %c0_12], %12 {strides = array<i32>} : memref<8x32xf32, #tpu.memory_space<vmem>>, vector<8x32xf32>,
    } else {
    }
    %c0 = arith.constant 0 : index
    %c0_1 = arith.constant 0 : index
    %3 = vector.load %arg6[%c0, %c0_1] : memref<8x32xf32, #tpu.memory_space<vmem>>, vector<8x32xf32>
    %c0_2 = arith.constant 0 : index
    %c0_3 = arith.constant 0 : index
    %4 = vector.load %arg3[%c0_2, %c0_3] : memref<8x192xbf16, #tpu.memory_space<vmem>>, vector<8x192xbf16>
    %c0_4 = arith.constant 0 : index
    %c0_5 = arith.constant 0 : index
    %5 = vector.load %arg4[%c0_4, %c0_5] : memref<192x32xbf16, #tpu.memory_space<vmem>>, vector<192x32xbf16>
    %cst = arith.constant dense<0.000000e+00> : vector<8x32xf32>
    %6 = tpu.matmul %4, %5, %cst {dimension_numbers = #tpu.dot_dimension_numbers<[1], [0], [0], [1], [0, 0, 1, 1], [], []>} : vector<8x192xbf16>, vector<192x32xbf16>, vector<8x32xf32> -> vector<8x32xf32>
    %7 = arith.addf %3, %6 : vector<8x32xf32>
    %c0_6 = arith.constant 0 : index
    %c0_7 = arith.constant 0 : index
    %8 = vector.load %arg6[%c0_6, %c0_7] : memref<8x32xf32, #tpu.memory_space<vmem>>, vector<8x32xf32>
    tpu.vector_store %arg6[%c0_6, %c0_7], %7 {strides = array<i32>} : memref<8x32xf32, #tpu.memory_space<vmem>>, vector<8x32xf32>,
    %c0_i32_8 = arith.constant 0 : i32
    %9 = arith.cmpi eq, %arg2, %c0_i32_8 : i32
    %10 = arith.extui %9 : i1 to i32
    %c0_i32_9 = arith.constant 0 : i32
    %11 = arith.cmpi ne, %10, %c0_i32_9 : i32
    scf.if %11 {
      %c0_10 = arith.constant 0 : index
      %c0_11 = arith.constant 0 : index
      %12 = vector.load %arg6[%c0_10, %c0_11] : memref<8x32xf32, #tpu.memory_space<vmem>>, vector<8x32xf32>
      %13 = arith.truncf %12 : vector<8x32xf32> to vector<8x32xbf16>
      %c0_12 = arith.constant 0 : index
      %c0_13 = arith.constant 0 : index
      %14 = vector.load %arg5[%c0_12, %c0_13] : memref<8x32xbf16, #tpu.memory_space<vmem>>, vector<8x32xbf16>
      tpu.vector_store %arg5[%c0_12, %c0_13], %13 {strides = array<i32>} : memref<8x32xbf16, #tpu.memory_space<vmem>>, vector<8x32xbf16>,
    } else {
    }
    return
  }
  func.func @transform_0(%arg0: i32, %arg1: i32, %arg2: i32) -> (i32, i32) {
    %c0_i32 = arith.constant 0 : i32
    return %arg0, %arg2 : i32, i32
  }
  func.func @transform_1(%arg0: i32, %arg1: i32, %arg2: i32) -> (i32, i32) {
    %c0_i32 = arith.constant 0 : i32
    return %arg2, %arg1 : i32, i32
  }
  func.func @transform_2(%arg0: i32, %arg1: i32, %arg2: i32) -> (i32, i32) {
    %c0_i32 = arith.constant 0 : i32
    return %arg0, %arg1 : i32, i32
  }
}

module attributes {stable_mosaic.version = 11 : i64} {
  func.func @_ln_matmul_kernel(%arg0: i32, %arg1: i32, %arg2: memref<10x32xbf16, #tpu.memory_space<vmem>>, %arg3: memref<1x32xf32, #tpu.memory_space<vmem>>, %arg4: memref<1x32xf32, #tpu.memory_space<vmem>>, %arg5: memref<32x96xbf16, #tpu.memory_space<vmem>>, %arg6: memref<1x96xf32, #tpu.memory_space<vmem>>, %arg7: memref<10x96xbf16, #tpu.memory_space<vmem>>, %arg8: memref<10x32xbf16, #tpu.memory_space<vmem>>) attributes {dimension_semantics = [#tpu.dimension_semantics<parallel>, #tpu.dimension_semantics<arbitrary>], iteration_bounds = array<i64: 1, 1>, scalar_prefetch = 0 : i64, scratch_operands = 1 : i64, tpu.core_type = #tpu.core_type<tc>, window_params = [{transform_indices = @transform_0, window_bounds = array<i64: 10, 32>}, {pipeline_mode = #tpu.pipeline_mode<synchronous>, transform_indices = @transform_1, window_bounds = array<i64: 1, 32>}, {pipeline_mode = #tpu.pipeline_mode<synchronous>, transform_indices = @transform_2, window_bounds = array<i64: 1, 32>}, {transform_indices = @transform_3, window_bounds = array<i64: 32, 96>}, {transform_indices = @transform_4, window_bounds = array<i64: 1, 96>}, {transform_indices = @transform_5, window_bounds = array<i64: 10, 96>}]} {
    %c0_i32 = arith.constant 0 : i32
    %0 = arith.cmpi eq, %arg1, %c0_i32 : i32
    %1 = arith.extui %0 : i1 to i32
    %c0_i32_0 = arith.constant 0 : i32
    %2 = arith.cmpi ne, %1, %c0_i32_0 : i32
    scf.if %2 {
      %c0_8 = arith.constant 0 : index
      %c0_9 = arith.constant 0 : index
      %11 = vector.load %arg2[%c0_8, %c0_9] : memref<10x32xbf16, #tpu.memory_space<vmem>>, vector<10x32xbf16>
      %12 = arith.extf %11 : vector<10x32xbf16> to vector<10x32xf32>
      %cst_10 = arith.constant dense<0.000000e+00> : vector<10xf32>
      %13 = vector.multi_reduction <add>, %12, %cst_10 [1] : vector<10x32xf32> to vector<10xf32>
      %14 = vector.shape_cast %13 : vector<10xf32> to vector<10x1xf32>
      %cst_11 = arith.constant 3.200000e+01 : f32
      %15 = vector.broadcast %cst_11 : f32 to vector<10x1xf32>
      %16 = arith.divf %14, %15 : vector<10x1xf32>
      %17 = vector.broadcast %16 : vector<10x1xf32> to vector<10x32xf32>
      %18 = arith.subf %12, %17 : vector<10x32xf32>
      %19 = arith.mulf %18, %18 : vector<10x32xf32>
      %cst_12 = arith.constant dense<0.000000e+00> : vector<10xf32>
      %20 = vector.multi_reduction <add>, %19, %cst_12 [1] : vector<10x32xf32> to vector<10xf32>
      %21 = vector.shape_cast %20 : vector<10xf32> to vector<10x1xf32>
      %cst_13 = arith.constant 3.200000e+01 : f32
      %22 = vector.broadcast %cst_13 : f32 to vector<10x1xf32>
      %23 = arith.divf %21, %22 : vector<10x1xf32>
      %24 = vector.broadcast %16 : vector<10x1xf32> to vector<10x32xf32>
      %25 = arith.subf %12, %24 : vector<10x32xf32>
      %cst_14 = arith.constant 9.99999974E-6 : f32
      %26 = vector.broadcast %cst_14 : f32 to vector<10x1xf32>
      %27 = arith.addf %23, %26 : vector<10x1xf32>
      %28 = math.rsqrt %27 : vector<10x1xf32>
      %29 = vector.broadcast %28 : vector<10x1xf32> to vector<10x32xf32>
      %30 = arith.mulf %25, %29 : vector<10x32xf32>
      %c0_15 = arith.constant 0 : index
      %c0_16 = arith.constant 0 : index
      %31 = vector.load %arg3[%c0_15, %c0_16] : memref<1x32xf32, #tpu.memory_space<vmem>>, vector<1x32xf32>
      %32 = vector.broadcast %31 : vector<1x32xf32> to vector<10x32xf32>
      %33 = arith.mulf %30, %32 : vector<10x32xf32>
      %c0_17 = arith.constant 0 : index
      %c0_18 = arith.constant 0 : index
      %34 = vector.load %arg4[%c0_17, %c0_18] : memref<1x32xf32, #tpu.memory_space<vmem>>, vector<1x32xf32>
      %35 = vector.broadcast %34 : vector<1x32xf32> to vector<10x32xf32>
      %36 = arith.addf %33, %35 : vector<10x32xf32>
      %37 = arith.truncf %36 : vector<10x32xf32> to vector<10x32xbf16>
      %c0_19 = arith.constant 0 : index
      %c0_20 = arith.constant 0 : index
      %38 = vector.load %arg8[%c0_19, %c0_20] : memref<10x32xbf16, #tpu.memory_space<vmem>>, vector<10x32xbf16>
      tpu.vector_store %arg8[%c0_19, %c0_20], %37 {strides = array<i32>} : memref<10x32xbf16, #tpu.memory_space<vmem>>, vector<10x32xbf16>,
    } else {
    }
    %c0 = arith.constant 0 : index
    %c0_1 = arith.constant 0 : index
    %3 = vector.load %arg8[%c0, %c0_1] : memref<10x32xbf16, #tpu.memory_space<vmem>>, vector<10x32xbf16>
    %c0_2 = arith.constant 0 : index
    %c0_3 = arith.constant 0 : index
    %4 = vector.load %arg5[%c0_2, %c0_3] : memref<32x96xbf16, #tpu.memory_space<vmem>>, vector<32x96xbf16>
    %cst = arith.constant dense<0.000000e+00> : vector<10x96xf32>
    %5 = tpu.matmul %3, %4, %cst {dimension_numbers = #tpu.dot_dimension_numbers<[1], [0], [0], [1], [0, 0, 1, 1], [], []>} : vector<10x32xbf16>, vector<32x96xbf16>, vector<10x96xf32> -> vector<10x96xf32>
    %c0_4 = arith.constant 0 : index
    %c0_5 = arith.constant 0 : index
    %6 = vector.load %arg6[%c0_4, %c0_5] : memref<1x96xf32, #tpu.memory_space<vmem>>, vector<1x96xf32>
    %7 = vector.broadcast %6 : vector<1x96xf32> to vector<10x96xf32>
    %8 = arith.addf %5, %7 : vector<10x96xf32>
    %9 = arith.truncf %8 : vector<10x96xf32> to vector<10x96xbf16>
    %c0_6 = arith.constant 0 : index
    %c0_7 = arith.constant 0 : index
    %10 = vector.load %arg7[%c0_6, %c0_7] : memref<10x96xbf16, #tpu.memory_space<vmem>>, vector<10x96xbf16>
    tpu.vector_store %arg7[%c0_6, %c0_7], %9 {strides = array<i32>} : memref<10x96xbf16, #tpu.memory_space<vmem>>, vector<10x96xbf16>,
    return
  }
  func.func @transform_0(%arg0: i32, %arg1: i32) -> (i32, i32) {
    %c0_i32 = arith.constant 0 : i32
    %c0_i32_0 = arith.constant 0 : i32
    return %arg0, %c0_i32 : i32, i32
  }
  func.func @transform_1(%arg0: i32, %arg1: i32) -> (i32, i32) {
    %c0_i32 = arith.constant 0 : i32
    %c0_i32_0 = arith.constant 0 : i32
    %c0_i32_1 = arith.constant 0 : i32
    return %c0_i32, %c0_i32_0 : i32, i32
  }
  func.func @transform_2(%arg0: i32, %arg1: i32) -> (i32, i32) {
    %c0_i32 = arith.constant 0 : i32
    %c0_i32_0 = arith.constant 0 : i32
    %c0_i32_1 = arith.constant 0 : i32
    return %c0_i32, %c0_i32_0 : i32, i32
  }
  func.func @transform_3(%arg0: i32, %arg1: i32) -> (i32, i32) {
    %c0_i32 = arith.constant 0 : i32
    %c0_i32_0 = arith.constant 0 : i32
    return %c0_i32, %arg1 : i32, i32
  }
  func.func @transform_4(%arg0: i32, %arg1: i32) -> (i32, i32) {
    %c0_i32 = arith.constant 0 : i32
    %c0_i32_0 = arith.constant 0 : i32
    return %c0_i32, %arg1 : i32, i32
  }
  func.func @transform_5(%arg0: i32, %arg1: i32) -> (i32, i32) {
    %c0_i32 = arith.constant 0 : i32
    return %arg0, %arg1 : i32, i32
  }
}

module attributes {stable_mosaic.version = 11 : i64} {
  func.func @_attention_kernel(%arg0: i32, %arg1: i32, %arg2: memref<1x1x5x16xbf16, #tpu.memory_space<vmem>>, %arg3: memref<1x1x5x16xbf16, #tpu.memory_space<vmem>>, %arg4: memref<1x1x5x16xbf16, #tpu.memory_space<vmem>>, %arg5: memref<1x1x5x16xbf16, #tpu.memory_space<vmem>>) attributes {dimension_semantics = [#tpu.dimension_semantics<parallel>, #tpu.dimension_semantics<parallel>], iteration_bounds = array<i64: 2, 2>, scalar_prefetch = 0 : i64, scratch_operands = 0 : i64, tpu.core_type = #tpu.core_type<tc>, window_params = [{transform_indices = @transform_0, window_bounds = array<i64: 1, 1, 5, 16>}, {transform_indices = @transform_1, window_bounds = array<i64: 1, 1, 5, 16>}, {transform_indices = @transform_2, window_bounds = array<i64: 1, 1, 5, 16>}, {transform_indices = @transform_3, window_bounds = array<i64: 1, 1, 5, 16>}]} {
    %c0 = arith.constant 0 : index
    %c0_0 = arith.constant 0 : index
    %c0_1 = arith.constant 0 : index
    %c0_2 = arith.constant 0 : index
    %0 = vector.load %arg2[%c0, %c0_0, %c0_1, %c0_2] : memref<1x1x5x16xbf16, #tpu.memory_space<vmem>>, vector<1x1x5x16xbf16>
    %1 = vector.shape_cast %0 : vector<1x1x5x16xbf16> to vector<5x16xbf16>
    %2 = arith.extf %1 : vector<5x16xbf16> to vector<5x16xf32>
    %cst = arith.constant 2.500000e-01 : f32
    %3 = vector.broadcast %cst : f32 to vector<5x16xf32>
    %4 = arith.mulf %2, %3 : vector<5x16xf32>
    %5 = arith.truncf %4 : vector<5x16xf32> to vector<5x16xbf16>
    %c0_3 = arith.constant 0 : index
    %c0_4 = arith.constant 0 : index
    %c0_5 = arith.constant 0 : index
    %c0_6 = arith.constant 0 : index
    %6 = vector.load %arg3[%c0_3, %c0_4, %c0_5, %c0_6] : memref<1x1x5x16xbf16, #tpu.memory_space<vmem>>, vector<1x1x5x16xbf16>
    %7 = vector.shape_cast %6 : vector<1x1x5x16xbf16> to vector<5x16xbf16>
    %c0_7 = arith.constant 0 : index
    %c0_8 = arith.constant 0 : index
    %c0_9 = arith.constant 0 : index
    %c0_10 = arith.constant 0 : index
    %8 = vector.load %arg4[%c0_7, %c0_8, %c0_9, %c0_10] : memref<1x1x5x16xbf16, #tpu.memory_space<vmem>>, vector<1x1x5x16xbf16>
    %9 = vector.shape_cast %8 : vector<1x1x5x16xbf16> to vector<5x16xbf16>
    %cst_11 = arith.constant dense<0.000000e+00> : vector<5x5xf32>
    %10 = tpu.matmul %5, %7, %cst_11 {dimension_numbers = #tpu.dot_dimension_numbers<[1], [1], [0], [0], [0, 0, 1, 0], [], []>} : vector<5x16xbf16>, vector<5x16xbf16>, vector<5x5xf32> -> vector<5x5xf32>
    %cst_12 = arith.constant dense<0xFF800000> : vector<5xf32>
    %11 = vector.multi_reduction <maximumf>, %10, %cst_12 [1] : vector<5x5xf32> to vector<5xf32>
    %12 = vector.shape_cast %11 : vector<5xf32> to vector<5x1xf32>
    %13 = vector.broadcast %12 : vector<5x1xf32> to vector<5x5xf32>
    %14 = arith.subf %10, %13 : vector<5x5xf32>
    %15 = math.exp %14 : vector<5x5xf32>
    %cst_13 = arith.constant dense<0.000000e+00> : vector<5xf32>
    %16 = vector.multi_reduction <add>, %15, %cst_13 [1] : vector<5x5xf32> to vector<5xf32>
    %17 = vector.shape_cast %16 : vector<5xf32> to vector<5x1xf32>
    %18 = arith.truncf %15 : vector<5x5xf32> to vector<5x5xbf16>
    %cst_14 = arith.constant dense<0.000000e+00> : vector<5x16xf32>
    %19 = tpu.matmul %18, %9, %cst_14 {dimension_numbers = #tpu.dot_dimension_numbers<[1], [0], [0], [1], [0, 0, 1, 1], [], []>} : vector<5x5xbf16>, vector<5x16xbf16>, vector<5x16xf32> -> vector<5x16xf32>
    %20 = tpu.reciprocal %17 {approx = true} : vector<5x1xf32> -> vector<5x1xf32>
    %21 = vector.broadcast %20 : vector<5x1xf32> to vector<5x16xf32>
    %22 = arith.mulf %19, %21 : vector<5x16xf32>
    %23 = arith.truncf %22 : vector<5x16xf32> to vector<5x16xbf16>
    %c0_15 = arith.constant 0 : index
    %c0_16 = arith.constant 0 : index
    %c0_17 = arith.constant 0 : index
    %c0_18 = arith.constant 0 : index
    %24 = vector.load %arg5[%c0_15, %c0_16, %c0_17, %c0_18] : memref<1x1x5x16xbf16, #tpu.memory_space<vmem>>, vector<1x1x5x16xbf16>
    %25 = vector.shape_cast %24 : vector<1x1x5x16xbf16> to vector<5x16xbf16>
    %26 = vector.shape_cast %23 : vector<5x16xbf16> to vector<1x1x5x16xbf16>
    tpu.vector_store %arg5[%c0_15, %c0_16, %c0_17, %c0_18], %26 {strides = array<i32>} : memref<1x1x5x16xbf16, #tpu.memory_space<vmem>>, vector<1x1x5x16xbf16>,
    return
  }
  func.func @transform_0(%arg0: i32, %arg1: i32) -> (i32, i32, i32, i32) {
    %c0_i32 = arith.constant 0 : i32
    %c0_i32_0 = arith.constant 0 : i32
    %c0_i32_1 = arith.constant 0 : i32
    return %arg0, %arg1, %c0_i32, %c0_i32_0 : i32, i32, i32, i32
  }
  func.func @transform_1(%arg0: i32, %arg1: i32) -> (i32, i32, i32, i32) {
    %c0_i32 = arith.constant 0 : i32
    %c0_i32_0 = arith.constant 0 : i32
    %c0_i32_1 = arith.constant 0 : i32
    return %arg0, %arg1, %c0_i32, %c0_i32_0 : i32, i32, i32, i32
  }
  func.func @transform_2(%arg0: i32, %arg1: i32) -> (i32, i32, i32, i32) {
    %c0_i32 = arith.constant 0 : i32
    %c0_i32_0 = arith.constant 0 : i32
    %c0_i32_1 = arith.constant 0 : i32
    return %arg0, %arg1, %c0_i32, %c0_i32_0 : i32, i32, i32, i32
  }
  func.func @transform_3(%arg0: i32, %arg1: i32) -> (i32, i32, i32, i32) {
    %c0_i32 = arith.constant 0 : i32
    %c0_i32_0 = arith.constant 0 : i32
    %c0_i32_1 = arith.constant 0 : i32
    return %arg0, %arg1, %c0_i32, %c0_i32_0 : i32, i32, i32, i32
  }
}

module attributes {stable_mosaic.version = 11 : i64} {
  func.func @_matmul_bias_residual_kernel(%arg0: i32, %arg1: i32, %arg2: i32, %arg3: memref<10x32xbf16, #tpu.memory_space<vmem>>, %arg4: memref<10x32xbf16, #tpu.memory_space<vmem>>, %arg5: memref<32x32xbf16, #tpu.memory_space<vmem>>, %arg6: memref<1x32xf32, #tpu.memory_space<vmem>>, %arg7: memref<10x32xbf16, #tpu.memory_space<vmem>>, %arg8: memref<10x32xf32, #tpu.memory_space<vmem>>) attributes {dimension_semantics = [#tpu.dimension_semantics<parallel>, #tpu.dimension_semantics<parallel>, #tpu.dimension_semantics<arbitrary>], iteration_bounds = array<i64: 1, 1, 1>, scalar_prefetch = 0 : i64, scratch_operands = 1 : i64, tpu.core_type = #tpu.core_type<tc>, window_params = [{transform_indices = @transform_0, window_bounds = array<i64: 10, 32>}, {transform_indices = @transform_1, window_bounds = array<i64: 10, 32>}, {transform_indices = @transform_2, window_bounds = array<i64: 32, 32>}, {transform_indices = @transform_3, window_bounds = array<i64: 1, 32>}, {transform_indices = @transform_4, window_bounds = array<i64: 10, 32>}]} {
    %c0_i32 = arith.constant 0 : i32
    %0 = arith.cmpi eq, %arg2, %c0_i32 : i32
    %1 = arith.extui %0 : i1 to i32
    %c0_i32_0 = arith.constant 0 : i32
    %2 = arith.cmpi ne, %1, %c0_i32_0 : i32
    scf.if %2 {
      %cst_10 = arith.constant 0.000000e+00 : f32
      %12 = vector.broadcast %cst_10 : f32 to vector<10x32xf32>
      %c0_11 = arith.constant 0 : index
      %c0_12 = arith.constant 0 : index
      %13 = vector.load %arg8[%c0_11, %c0_12] : memref<10x32xf32, #tpu.memory_space<vmem>>, vector<10x32xf32>
      tpu.vector_store %arg8[%c0_11, %c0_12], %12 {strides = array<i32>} : memref<10x32xf32, #tpu.memory_space<vmem>>, vector<10x32xf32>,
    } else {
    }
    %c0 = arith.constant 0 : index
    %c0_1 = arith.constant 0 : index
    %3 = vector.load %arg8[%c0, %c0_1] : memref<10x32xf32, #tpu.memory_space<vmem>>, vector<10x32xf32>
    %c0_2 = arith.constant 0 : index
    %c0_3 = arith.constant 0 : index
    %4 = vector.load %arg4[%c0_2, %c0_3] : memref<10x32xbf16, #tpu.memory_space<vmem>>, vector<10x32xbf16>
    %c0_4 = arith.constant 0 : index
    %c0_5 = arith.constant 0 : index
    %5 = vector.load %arg5[%c0_4, %c0_5] : memref<32x32xbf16, #tpu.memory_space<vmem>>, vector<32x32xbf16>
    %cst = arith.constant dense<0.000000e+00> : vector<10x32xf32>
    %6 = tpu.matmul %4, %5, %cst {dimension_numbers = #tpu.dot_dimension_numbers<[1], [0], [0], [1], [0, 0, 1, 1], [], []>} : vector<10x32xbf16>, vector<32x32xbf16>, vector<10x32xf32> -> vector<10x32xf32>
    %7 = arith.addf %3, %6 : vector<10x32xf32>
    %c0_6 = arith.constant 0 : index
    %c0_7 = arith.constant 0 : index
    %8 = vector.load %arg8[%c0_6, %c0_7] : memref<10x32xf32, #tpu.memory_space<vmem>>, vector<10x32xf32>
    tpu.vector_store %arg8[%c0_6, %c0_7], %7 {strides = array<i32>} : memref<10x32xf32, #tpu.memory_space<vmem>>, vector<10x32xf32>,
    %c0_i32_8 = arith.constant 0 : i32
    %9 = arith.cmpi eq, %arg2, %c0_i32_8 : i32
    %10 = arith.extui %9 : i1 to i32
    %c0_i32_9 = arith.constant 0 : i32
    %11 = arith.cmpi ne, %10, %c0_i32_9 : i32
    scf.if %11 {
      %c0_10 = arith.constant 0 : index
      %c0_11 = arith.constant 0 : index
      %12 = vector.load %arg8[%c0_10, %c0_11] : memref<10x32xf32, #tpu.memory_space<vmem>>, vector<10x32xf32>
      %c0_12 = arith.constant 0 : index
      %c0_13 = arith.constant 0 : index
      %13 = vector.load %arg6[%c0_12, %c0_13] : memref<1x32xf32, #tpu.memory_space<vmem>>, vector<1x32xf32>
      %14 = vector.broadcast %13 : vector<1x32xf32> to vector<10x32xf32>
      %15 = arith.addf %12, %14 : vector<10x32xf32>
      %c0_14 = arith.constant 0 : index
      %c0_15 = arith.constant 0 : index
      %16 = vector.load %arg3[%c0_14, %c0_15] : memref<10x32xbf16, #tpu.memory_space<vmem>>, vector<10x32xbf16>
      %17 = arith.extf %16 : vector<10x32xbf16> to vector<10x32xf32>
      %18 = arith.addf %15, %17 : vector<10x32xf32>
      %19 = arith.truncf %18 : vector<10x32xf32> to vector<10x32xbf16>
      %c0_16 = arith.constant 0 : index
      %c0_17 = arith.constant 0 : index
      %20 = vector.load %arg7[%c0_16, %c0_17] : memref<10x32xbf16, #tpu.memory_space<vmem>>, vector<10x32xbf16>
      tpu.vector_store %arg7[%c0_16, %c0_17], %19 {strides = array<i32>} : memref<10x32xbf16, #tpu.memory_space<vmem>>, vector<10x32xbf16>,
    } else {
    }
    return
  }
  func.func @transform_0(%arg0: i32, %arg1: i32, %arg2: i32) -> (i32, i32) {
    %c0_i32 = arith.constant 0 : i32
    return %arg0, %arg1 : i32, i32
  }
  func.func @transform_1(%arg0: i32, %arg1: i32, %arg2: i32) -> (i32, i32) {
    %c0_i32 = arith.constant 0 : i32
    return %arg0, %arg2 : i32, i32
  }
  func.func @transform_2(%arg0: i32, %arg1: i32, %arg2: i32) -> (i32, i32) {
    %c0_i32 = arith.constant 0 : i32
    return %arg2, %arg1 : i32, i32
  }
  func.func @transform_3(%arg0: i32, %arg1: i32, %arg2: i32) -> (i32, i32) {
    %c0_i32 = arith.constant 0 : i32
    %c0_i32_0 = arith.constant 0 : i32
    return %c0_i32, %arg1 : i32, i32
  }
  func.func @transform_4(%arg0: i32, %arg1: i32, %arg2: i32) -> (i32, i32) {
    %c0_i32 = arith.constant 0 : i32
    return %arg0, %arg1 : i32, i32
  }
}

module attributes {stable_mosaic.version = 11 : i64} {
  func.func @_ln_matmul_kernel(%arg0: i32, %arg1: i32, %arg2: memref<10x32xbf16, #tpu.memory_space<vmem>>, %arg3: memref<1x32xf32, #tpu.memory_space<vmem>>, %arg4: memref<1x32xf32, #tpu.memory_space<vmem>>, %arg5: memref<32x64xbf16, #tpu.memory_space<vmem>>, %arg6: memref<1x64xf32, #tpu.memory_space<vmem>>, %arg7: memref<10x64xbf16, #tpu.memory_space<vmem>>, %arg8: memref<10x32xbf16, #tpu.memory_space<vmem>>) attributes {dimension_semantics = [#tpu.dimension_semantics<parallel>, #tpu.dimension_semantics<arbitrary>], iteration_bounds = array<i64: 1, 1>, scalar_prefetch = 0 : i64, scratch_operands = 1 : i64, tpu.core_type = #tpu.core_type<tc>, window_params = [{transform_indices = @transform_0, window_bounds = array<i64: 10, 32>}, {pipeline_mode = #tpu.pipeline_mode<synchronous>, transform_indices = @transform_1, window_bounds = array<i64: 1, 32>}, {pipeline_mode = #tpu.pipeline_mode<synchronous>, transform_indices = @transform_2, window_bounds = array<i64: 1, 32>}, {transform_indices = @transform_3, window_bounds = array<i64: 32, 64>}, {transform_indices = @transform_4, window_bounds = array<i64: 1, 64>}, {transform_indices = @transform_5, window_bounds = array<i64: 10, 64>}]} {
    %c0_i32 = arith.constant 0 : i32
    %0 = arith.cmpi eq, %arg1, %c0_i32 : i32
    %1 = arith.extui %0 : i1 to i32
    %c0_i32_0 = arith.constant 0 : i32
    %2 = arith.cmpi ne, %1, %c0_i32_0 : i32
    scf.if %2 {
      %c0_10 = arith.constant 0 : index
      %c0_11 = arith.constant 0 : index
      %19 = vector.load %arg2[%c0_10, %c0_11] : memref<10x32xbf16, #tpu.memory_space<vmem>>, vector<10x32xbf16>
      %20 = arith.extf %19 : vector<10x32xbf16> to vector<10x32xf32>
      %cst_12 = arith.constant dense<0.000000e+00> : vector<10xf32>
      %21 = vector.multi_reduction <add>, %20, %cst_12 [1] : vector<10x32xf32> to vector<10xf32>
      %22 = vector.shape_cast %21 : vector<10xf32> to vector<10x1xf32>
      %cst_13 = arith.constant 3.200000e+01 : f32
      %23 = vector.broadcast %cst_13 : f32 to vector<10x1xf32>
      %24 = arith.divf %22, %23 : vector<10x1xf32>
      %25 = vector.broadcast %24 : vector<10x1xf32> to vector<10x32xf32>
      %26 = arith.subf %20, %25 : vector<10x32xf32>
      %27 = arith.mulf %26, %26 : vector<10x32xf32>
      %cst_14 = arith.constant dense<0.000000e+00> : vector<10xf32>
      %28 = vector.multi_reduction <add>, %27, %cst_14 [1] : vector<10x32xf32> to vector<10xf32>
      %29 = vector.shape_cast %28 : vector<10xf32> to vector<10x1xf32>
      %cst_15 = arith.constant 3.200000e+01 : f32
      %30 = vector.broadcast %cst_15 : f32 to vector<10x1xf32>
      %31 = arith.divf %29, %30 : vector<10x1xf32>
      %32 = vector.broadcast %24 : vector<10x1xf32> to vector<10x32xf32>
      %33 = arith.subf %20, %32 : vector<10x32xf32>
      %cst_16 = arith.constant 9.99999974E-6 : f32
      %34 = vector.broadcast %cst_16 : f32 to vector<10x1xf32>
      %35 = arith.addf %31, %34 : vector<10x1xf32>
      %36 = math.rsqrt %35 : vector<10x1xf32>
      %37 = vector.broadcast %36 : vector<10x1xf32> to vector<10x32xf32>
      %38 = arith.mulf %33, %37 : vector<10x32xf32>
      %c0_17 = arith.constant 0 : index
      %c0_18 = arith.constant 0 : index
      %39 = vector.load %arg3[%c0_17, %c0_18] : memref<1x32xf32, #tpu.memory_space<vmem>>, vector<1x32xf32>
      %40 = vector.broadcast %39 : vector<1x32xf32> to vector<10x32xf32>
      %41 = arith.mulf %38, %40 : vector<10x32xf32>
      %c0_19 = arith.constant 0 : index
      %c0_20 = arith.constant 0 : index
      %42 = vector.load %arg4[%c0_19, %c0_20] : memref<1x32xf32, #tpu.memory_space<vmem>>, vector<1x32xf32>
      %43 = vector.broadcast %42 : vector<1x32xf32> to vector<10x32xf32>
      %44 = arith.addf %41, %43 : vector<10x32xf32>
      %45 = arith.truncf %44 : vector<10x32xf32> to vector<10x32xbf16>
      %c0_21 = arith.constant 0 : index
      %c0_22 = arith.constant 0 : index
      %46 = vector.load %arg8[%c0_21, %c0_22] : memref<10x32xbf16, #tpu.memory_space<vmem>>, vector<10x32xbf16>
      tpu.vector_store %arg8[%c0_21, %c0_22], %45 {strides = array<i32>} : memref<10x32xbf16, #tpu.memory_space<vmem>>, vector<10x32xbf16>,
    } else {
    }
    %c0 = arith.constant 0 : index
    %c0_1 = arith.constant 0 : index
    %3 = vector.load %arg8[%c0, %c0_1] : memref<10x32xbf16, #tpu.memory_space<vmem>>, vector<10x32xbf16>
    %c0_2 = arith.constant 0 : index
    %c0_3 = arith.constant 0 : index
    %4 = vector.load %arg5[%c0_2, %c0_3] : memref<32x64xbf16, #tpu.memory_space<vmem>>, vector<32x64xbf16>
    %cst = arith.constant dense<0.000000e+00> : vector<10x64xf32>
    %5 = tpu.matmul %3, %4, %cst {dimension_numbers = #tpu.dot_dimension_numbers<[1], [0], [0], [1], [0, 0, 1, 1], [], []>} : vector<10x32xbf16>, vector<32x64xbf16>, vector<10x64xf32> -> vector<10x64xf32>
    %c0_4 = arith.constant 0 : index
    %c0_5 = arith.constant 0 : index
    %6 = vector.load %arg6[%c0_4, %c0_5] : memref<1x64xf32, #tpu.memory_space<vmem>>, vector<1x64xf32>
    %7 = vector.broadcast %6 : vector<1x64xf32> to vector<10x64xf32>
    %8 = arith.addf %5, %7 : vector<10x64xf32>
    %cst_6 = arith.constant 1.702000e+00 : f32
    %9 = vector.broadcast %cst_6 : f32 to vector<10x64xf32>
    %10 = arith.mulf %9, %8 : vector<10x64xf32>
    %11 = arith.negf %10 : vector<10x64xf32>
    %12 = math.exp %11 : vector<10x64xf32>
    %cst_7 = arith.constant 1.000000e+00 : f32
    %13 = vector.broadcast %cst_7 : f32 to vector<10x64xf32>
    %14 = arith.addf %13, %12 : vector<10x64xf32>
    %15 = arith.divf %13, %14 : vector<10x64xf32>
    %16 = arith.mulf %8, %15 : vector<10x64xf32>
    %17 = arith.truncf %16 : vector<10x64xf32> to vector<10x64xbf16>
    %c0_8 = arith.constant 0 : index
    %c0_9 = arith.constant 0 : index
    %18 = vector.load %arg7[%c0_8, %c0_9] : memref<10x64xbf16, #tpu.memory_space<vmem>>, vector<10x64xbf16>
    tpu.vector_store %arg7[%c0_8, %c0_9], %17 {strides = array<i32>} : memref<10x64xbf16, #tpu.memory_space<vmem>>, vector<10x64xbf16>,
    return
  }
  func.func @transform_0(%arg0: i32, %arg1: i32) -> (i32, i32) {
    %c0_i32 = arith.constant 0 : i32
    %c0_i32_0 = arith.constant 0 : i32
    return %arg0, %c0_i32 : i32, i32
  }
  func.func @transform_1(%arg0: i32, %arg1: i32) -> (i32, i32) {
    %c0_i32 = arith.constant 0 : i32
    %c0_i32_0 = arith.constant 0 : i32
    %c0_i32_1 = arith.constant 0 : i32
    return %c0_i32, %c0_i32_0 : i32, i32
  }
  func.func @transform_2(%arg0: i32, %arg1: i32) -> (i32, i32) {
    %c0_i32 = arith.constant 0 : i32
    %c0_i32_0 = arith.constant 0 : i32
    %c0_i32_1 = arith.constant 0 : i32
    return %c0_i32, %c0_i32_0 : i32, i32
  }
  func.func @transform_3(%arg0: i32, %arg1: i32) -> (i32, i32) {
    %c0_i32 = arith.constant 0 : i32
    %c0_i32_0 = arith.constant 0 : i32
    return %c0_i32, %arg1 : i32, i32
  }
  func.func @transform_4(%arg0: i32, %arg1: i32) -> (i32, i32) {
    %c0_i32 = arith.constant 0 : i32
    %c0_i32_0 = arith.constant 0 : i32
    return %c0_i32, %arg1 : i32, i32
  }
  func.func @transform_5(%arg0: i32, %arg1: i32) -> (i32, i32) {
    %c0_i32 = arith.constant 0 : i32
    return %arg0, %arg1 : i32, i32
  }
}

module attributes {stable_mosaic.version = 11 : i64} {
  func.func @_matmul_bias_residual_kernel(%arg0: i32, %arg1: i32, %arg2: i32, %arg3: memref<10x32xbf16, #tpu.memory_space<vmem>>, %arg4: memref<10x64xbf16, #tpu.memory_space<vmem>>, %arg5: memref<64x32xbf16, #tpu.memory_space<vmem>>, %arg6: memref<1x32xf32, #tpu.memory_space<vmem>>, %arg7: memref<10x32xbf16, #tpu.memory_space<vmem>>, %arg8: memref<10x32xf32, #tpu.memory_space<vmem>>) attributes {dimension_semantics = [#tpu.dimension_semantics<parallel>, #tpu.dimension_semantics<parallel>, #tpu.dimension_semantics<arbitrary>], iteration_bounds = array<i64: 1, 1, 1>, scalar_prefetch = 0 : i64, scratch_operands = 1 : i64, tpu.core_type = #tpu.core_type<tc>, window_params = [{transform_indices = @transform_0, window_bounds = array<i64: 10, 32>}, {transform_indices = @transform_1, window_bounds = array<i64: 10, 64>}, {transform_indices = @transform_2, window_bounds = array<i64: 64, 32>}, {transform_indices = @transform_3, window_bounds = array<i64: 1, 32>}, {transform_indices = @transform_4, window_bounds = array<i64: 10, 32>}]} {
    %c0_i32 = arith.constant 0 : i32
    %0 = arith.cmpi eq, %arg2, %c0_i32 : i32
    %1 = arith.extui %0 : i1 to i32
    %c0_i32_0 = arith.constant 0 : i32
    %2 = arith.cmpi ne, %1, %c0_i32_0 : i32
    scf.if %2 {
      %cst_10 = arith.constant 0.000000e+00 : f32
      %12 = vector.broadcast %cst_10 : f32 to vector<10x32xf32>
      %c0_11 = arith.constant 0 : index
      %c0_12 = arith.constant 0 : index
      %13 = vector.load %arg8[%c0_11, %c0_12] : memref<10x32xf32, #tpu.memory_space<vmem>>, vector<10x32xf32>
      tpu.vector_store %arg8[%c0_11, %c0_12], %12 {strides = array<i32>} : memref<10x32xf32, #tpu.memory_space<vmem>>, vector<10x32xf32>,
    } else {
    }
    %c0 = arith.constant 0 : index
    %c0_1 = arith.constant 0 : index
    %3 = vector.load %arg8[%c0, %c0_1] : memref<10x32xf32, #tpu.memory_space<vmem>>, vector<10x32xf32>
    %c0_2 = arith.constant 0 : index
    %c0_3 = arith.constant 0 : index
    %4 = vector.load %arg4[%c0_2, %c0_3] : memref<10x64xbf16, #tpu.memory_space<vmem>>, vector<10x64xbf16>
    %c0_4 = arith.constant 0 : index
    %c0_5 = arith.constant 0 : index
    %5 = vector.load %arg5[%c0_4, %c0_5] : memref<64x32xbf16, #tpu.memory_space<vmem>>, vector<64x32xbf16>
    %cst = arith.constant dense<0.000000e+00> : vector<10x32xf32>
    %6 = tpu.matmul %4, %5, %cst {dimension_numbers = #tpu.dot_dimension_numbers<[1], [0], [0], [1], [0, 0, 1, 1], [], []>} : vector<10x64xbf16>, vector<64x32xbf16>, vector<10x32xf32> -> vector<10x32xf32>
    %7 = arith.addf %3, %6 : vector<10x32xf32>
    %c0_6 = arith.constant 0 : index
    %c0_7 = arith.constant 0 : index
    %8 = vector.load %arg8[%c0_6, %c0_7] : memref<10x32xf32, #tpu.memory_space<vmem>>, vector<10x32xf32>
    tpu.vector_store %arg8[%c0_6, %c0_7], %7 {strides = array<i32>} : memref<10x32xf32, #tpu.memory_space<vmem>>, vector<10x32xf32>,
    %c0_i32_8 = arith.constant 0 : i32
    %9 = arith.cmpi eq, %arg2, %c0_i32_8 : i32
    %10 = arith.extui %9 : i1 to i32
    %c0_i32_9 = arith.constant 0 : i32
    %11 = arith.cmpi ne, %10, %c0_i32_9 : i32
    scf.if %11 {
      %c0_10 = arith.constant 0 : index
      %c0_11 = arith.constant 0 : index
      %12 = vector.load %arg8[%c0_10, %c0_11] : memref<10x32xf32, #tpu.memory_space<vmem>>, vector<10x32xf32>
      %c0_12 = arith.constant 0 : index
      %c0_13 = arith.constant 0 : index
      %13 = vector.load %arg6[%c0_12, %c0_13] : memref<1x32xf32, #tpu.memory_space<vmem>>, vector<1x32xf32>
      %14 = vector.broadcast %13 : vector<1x32xf32> to vector<10x32xf32>
      %15 = arith.addf %12, %14 : vector<10x32xf32>
      %c0_14 = arith.constant 0 : index
      %c0_15 = arith.constant 0 : index
      %16 = vector.load %arg3[%c0_14, %c0_15] : memref<10x32xbf16, #tpu.memory_space<vmem>>, vector<10x32xbf16>
      %17 = arith.extf %16 : vector<10x32xbf16> to vector<10x32xf32>
      %18 = arith.addf %15, %17 : vector<10x32xf32>
      %19 = arith.truncf %18 : vector<10x32xf32> to vector<10x32xbf16>
      %c0_16 = arith.constant 0 : index
      %c0_17 = arith.constant 0 : index
      %20 = vector.load %arg7[%c0_16, %c0_17] : memref<10x32xbf16, #tpu.memory_space<vmem>>, vector<10x32xbf16>
      tpu.vector_store %arg7[%c0_16, %c0_17], %19 {strides = array<i32>} : memref<10x32xbf16, #tpu.memory_space<vmem>>, vector<10x32xbf16>,
    } else {
    }
    return
  }
  func.func @transform_0(%arg0: i32, %arg1: i32, %arg2: i32) -> (i32, i32) {
    %c0_i32 = arith.constant 0 : i32
    return %arg0, %arg1 : i32, i32
  }
  func.func @transform_1(%arg0: i32, %arg1: i32, %arg2: i32) -> (i32, i32) {
    %c0_i32 = arith.constant 0 : i32
    return %arg0, %arg2 : i32, i32
  }
  func.func @transform_2(%arg0: i32, %arg1: i32, %arg2: i32) -> (i32, i32) {
    %c0_i32 = arith.constant 0 : i32
    return %arg2, %arg1 : i32, i32
  }
  func.func @transform_3(%arg0: i32, %arg1: i32, %arg2: i32) -> (i32, i32) {
    %c0_i32 = arith.constant 0 : i32
    %c0_i32_0 = arith.constant 0 : i32
    return %c0_i32, %arg1 : i32, i32
  }
  func.func @transform_4(%arg0: i32, %arg1: i32, %arg2: i32) -> (i32, i32) {
    %c0_i32 = arith.constant 0 : i32
    return %arg0, %arg1 : i32, i32
  }
}

module attributes {stable_mosaic.version = 11 : i64} {
  func.func @_ln_matmul_kernel(%arg0: i32, %arg1: i32, %arg2: memref<2x32xbf16, #tpu.memory_space<vmem>>, %arg3: memref<1x32xf32, #tpu.memory_space<vmem>>, %arg4: memref<1x32xf32, #tpu.memory_space<vmem>>, %arg5: memref<32x24xbf16, #tpu.memory_space<vmem>>, %arg6: memref<1x24xf32, #tpu.memory_space<vmem>>, %arg7: memref<2x24xf32, #tpu.memory_space<vmem>>, %arg8: memref<2x32xbf16, #tpu.memory_space<vmem>>) attributes {dimension_semantics = [#tpu.dimension_semantics<parallel>, #tpu.dimension_semantics<arbitrary>], iteration_bounds = array<i64: 1, 1>, scalar_prefetch = 0 : i64, scratch_operands = 1 : i64, tpu.core_type = #tpu.core_type<tc>, window_params = [{transform_indices = @transform_0, window_bounds = array<i64: 2, 32>}, {pipeline_mode = #tpu.pipeline_mode<synchronous>, transform_indices = @transform_1, window_bounds = array<i64: 1, 32>}, {pipeline_mode = #tpu.pipeline_mode<synchronous>, transform_indices = @transform_2, window_bounds = array<i64: 1, 32>}, {transform_indices = @transform_3, window_bounds = array<i64: 32, 24>}, {transform_indices = @transform_4, window_bounds = array<i64: 1, 24>}, {transform_indices = @transform_5, window_bounds = array<i64: 2, 24>}]} {
    %c0_i32 = arith.constant 0 : i32
    %0 = arith.cmpi eq, %arg1, %c0_i32 : i32
    %1 = arith.extui %0 : i1 to i32
    %c0_i32_0 = arith.constant 0 : i32
    %2 = arith.cmpi ne, %1, %c0_i32_0 : i32
    scf.if %2 {
      %c0_8 = arith.constant 0 : index
      %c0_9 = arith.constant 0 : index
      %10 = vector.load %arg2[%c0_8, %c0_9] : memref<2x32xbf16, #tpu.memory_space<vmem>>, vector<2x32xbf16>
      %11 = arith.extf %10 : vector<2x32xbf16> to vector<2x32xf32>
      %cst_10 = arith.constant dense<0.000000e+00> : vector<2xf32>
      %12 = vector.multi_reduction <add>, %11, %cst_10 [1] : vector<2x32xf32> to vector<2xf32>
      %13 = vector.shape_cast %12 : vector<2xf32> to vector<2x1xf32>
      %cst_11 = arith.constant 3.200000e+01 : f32
      %14 = vector.broadcast %cst_11 : f32 to vector<2x1xf32>
      %15 = arith.divf %13, %14 : vector<2x1xf32>
      %16 = vector.broadcast %15 : vector<2x1xf32> to vector<2x32xf32>
      %17 = arith.subf %11, %16 : vector<2x32xf32>
      %18 = arith.mulf %17, %17 : vector<2x32xf32>
      %cst_12 = arith.constant dense<0.000000e+00> : vector<2xf32>
      %19 = vector.multi_reduction <add>, %18, %cst_12 [1] : vector<2x32xf32> to vector<2xf32>
      %20 = vector.shape_cast %19 : vector<2xf32> to vector<2x1xf32>
      %cst_13 = arith.constant 3.200000e+01 : f32
      %21 = vector.broadcast %cst_13 : f32 to vector<2x1xf32>
      %22 = arith.divf %20, %21 : vector<2x1xf32>
      %23 = vector.broadcast %15 : vector<2x1xf32> to vector<2x32xf32>
      %24 = arith.subf %11, %23 : vector<2x32xf32>
      %cst_14 = arith.constant 9.99999974E-6 : f32
      %25 = vector.broadcast %cst_14 : f32 to vector<2x1xf32>
      %26 = arith.addf %22, %25 : vector<2x1xf32>
      %27 = math.rsqrt %26 : vector<2x1xf32>
      %28 = vector.broadcast %27 : vector<2x1xf32> to vector<2x32xf32>
      %29 = arith.mulf %24, %28 : vector<2x32xf32>
      %c0_15 = arith.constant 0 : index
      %c0_16 = arith.constant 0 : index
      %30 = vector.load %arg3[%c0_15, %c0_16] : memref<1x32xf32, #tpu.memory_space<vmem>>, vector<1x32xf32>
      %31 = vector.broadcast %30 : vector<1x32xf32> to vector<2x32xf32>
      %32 = arith.mulf %29, %31 : vector<2x32xf32>
      %c0_17 = arith.constant 0 : index
      %c0_18 = arith.constant 0 : index
      %33 = vector.load %arg4[%c0_17, %c0_18] : memref<1x32xf32, #tpu.memory_space<vmem>>, vector<1x32xf32>
      %34 = vector.broadcast %33 : vector<1x32xf32> to vector<2x32xf32>
      %35 = arith.addf %32, %34 : vector<2x32xf32>
      %36 = arith.truncf %35 : vector<2x32xf32> to vector<2x32xbf16>
      %c0_19 = arith.constant 0 : index
      %c0_20 = arith.constant 0 : index
      %37 = vector.load %arg8[%c0_19, %c0_20] : memref<2x32xbf16, #tpu.memory_space<vmem>>, vector<2x32xbf16>
      tpu.vector_store %arg8[%c0_19, %c0_20], %36 {strides = array<i32>} : memref<2x32xbf16, #tpu.memory_space<vmem>>, vector<2x32xbf16>,
    } else {
    }
    %c0 = arith.constant 0 : index
    %c0_1 = arith.constant 0 : index
    %3 = vector.load %arg8[%c0, %c0_1] : memref<2x32xbf16, #tpu.memory_space<vmem>>, vector<2x32xbf16>
    %c0_2 = arith.constant 0 : index
    %c0_3 = arith.constant 0 : index
    %4 = vector.load %arg5[%c0_2, %c0_3] : memref<32x24xbf16, #tpu.memory_space<vmem>>, vector<32x24xbf16>
    %cst = arith.constant dense<0.000000e+00> : vector<2x24xf32>
    %5 = tpu.matmul %3, %4, %cst {dimension_numbers = #tpu.dot_dimension_numbers<[1], [0], [0], [1], [0, 0, 1, 1], [], []>} : vector<2x32xbf16>, vector<32x24xbf16>, vector<2x24xf32> -> vector<2x24xf32>
    %c0_4 = arith.constant 0 : index
    %c0_5 = arith.constant 0 : index
    %6 = vector.load %arg6[%c0_4, %c0_5] : memref<1x24xf32, #tpu.memory_space<vmem>>, vector<1x24xf32>
    %7 = vector.broadcast %6 : vector<1x24xf32> to vector<2x24xf32>
    %8 = arith.addf %5, %7 : vector<2x24xf32>
    %c0_6 = arith.constant 0 : index
    %c0_7 = arith.constant 0 : index
    %9 = vector.load %arg7[%c0_6, %c0_7] : memref<2x24xf32, #tpu.memory_space<vmem>>, vector<2x24xf32>
    tpu.vector_store %arg7[%c0_6, %c0_7], %8 {strides = array<i32>} : memref<2x24xf32, #tpu.memory_space<vmem>>, vector<2x24xf32>,
    return
  }
  func.func @transform_0(%arg0: i32, %arg1: i32) -> (i32, i32) {
    %c0_i32 = arith.constant 0 : i32
    %c0_i32_0 = arith.constant 0 : i32
    return %arg0, %c0_i32 : i32, i32
  }
  func.func @transform_1(%arg0: i32, %arg1: i32) -> (i32, i32) {
    %c0_i32 = arith.constant 0 : i32
    %c0_i32_0 = arith.constant 0 : i32
    %c0_i32_1 = arith.constant 0 : i32
    return %c0_i32, %c0_i32_0 : i32, i32
  }
  func.func @transform_2(%arg0: i32, %arg1: i32) -> (i32, i32) {
    %c0_i32 = arith.constant 0 : i32
    %c0_i32_0 = arith.constant 0 : i32
    %c0_i32_1 = arith.constant 0 : i32
    return %c0_i32, %c0_i32_0 : i32, i32
  }
  func.func @transform_3(%arg0: i32, %arg1: i32) -> (i32, i32) {
    %c0_i32 = arith.constant 0 : i32
    %c0_i32_0 = arith.constant 0 : i32
    return %c0_i32, %arg1 : i32, i32
  }
  func.func @transform_4(%arg0: i32, %arg1: i32) -> (i32, i32) {
    %c0_i32 = arith.constant 0 : i32
    %c0_i32_0 = arith.constant 0 : i32
    return %c0_i32, %arg1 : i32, i32
  }
  func.func @transform_5(%arg0: i32, %arg1: i32) -> (i32, i32) {
    %c0_i32 = arith.constant 0 : i32
    return %arg0, %arg1 : i32, i32
  }
}

</mosaic_0001>

<bundles_post_ra>
// kernel: clip_vision_proj_forward.13
= control target key start
LH: loop header
LB: loop body
LE: loop exit
PB: predicated region body
PF: predicated region fallthrough
CT: control target
= control target key end

     0   :  { %7 = vsyncpa [#allocation4], 0  ;;  %s394_s0 = inlined_call_operand.hbm [shape: bf16[8,192], index: 0, kind: input, shape index: {}]   ;;  %s395_s1 = inlined_call_operand.hbm [shape: bf16[192,32], index: 1, kind: input, shape index: {}]   ;;  %s396_s2 = inlined_call_operand.hbm [shape: bf16[8,32], index: 2, kind: output, shape index: {}]  }
   0x1   :  { %8 = vsyncpa [#allocation7], 0 }
   0x2   :  { %9 = vsyncpa [#allocation5], 0  ;;  %s327_s9 = smov [#allocation3]   ;;  %s328_s11 = smov [#allocation6]  }
   0x3   :  { %s16_s10 = sshll.u32 %s327_s9, 4  ;;  %s25_s12 = sshll.u32 %s328_s11, 4  ;;  %s17_s10 = int_to_ptr.vmem [resolvable:$true] %s16_s10  ;;  %s349_s12 = int_to_ptr.vmem [resolvable:$true] %s25_s12 }
   0x4   :  { %s255_s15 = scalar_lea.hbm %s394_s0, 128 }
   0x5   :  { %p256_p0 = scmp.ne.s32.totalorder %s394_s0, %s255_s15  ;;  %p259_p1 = scmp.lt.u32.totalorder %s255_s15, %s394_s0 }
   0x7   :  { %p261_p2 = pnand %p259_p1, %p256_p0 }
   0x9   :  { %264 = shalt.err (!%p261_p2)
}
   0xa   :  { %s265_s20 = scalar_lea.vmem %s17_s10, 128  ;;  %p270_p4 = scmp.lt.s32.totalorder %s17_s10, %s17_s10 }
   0xb   :  { %p266_p3 = scmp.ne.s32.totalorder %s17_s10, %s265_s20  ;;  %p271_p5 = scmp.lt.s32.totalorder %s265_s20, %s265_s20 }
   0xd   :  { %p272_p6 = por %p271_p5, %p270_p4 }
   0xf   :  { %p273_p7 = pnand %p272_p6, %p266_p3 }
  0x11   :  { %276 = shalt.err (!%p273_p7)
}
  0x12   :  { %19 = dma.hbm_to_vmem [thread:$0]  %s394_s0, 128, %s17_s10, [#allocation4]  }
  0x13   :  { %s277_s25 = scalar_lea.hbm %s395_s1, 1536 }
  0x14   :  { %p278_p8 = scmp.ne.s32.totalorder %s395_s1, %s277_s25  ;;  %p281_p9 = scmp.lt.u32.totalorder %s277_s25, %s395_s1 }
  0x16   :  { %p283_p10 = pnand %p281_p9, %p278_p8 }
  0x18   :  { %286 = shalt.err (!%p283_p10)
}
  0x19   :  { %s287_s30 = scalar_lea.vmem %s349_s12, 1536  ;;  %p292_p12 = scmp.lt.s32.totalorder %s349_s12, %s349_s12 }
  0x1a   :  { %p288_p11 = scmp.ne.s32.totalorder %s349_s12, %s287_s30  ;;  %p293_p13 = scmp.lt.s32.totalorder %s287_s30, %s287_s30 }
  0x1c   :  { %p294_p0 = por %p293_p13, %p292_p12 }
  0x1e   :  { %p295_p1 = pnand %p294_p0, %p288_p11 }
  0x20   :  { %298 = shalt.err (!%p295_p1)
}
  0x21   :  { %s329_s0 = smov 64   ;;  %s330_s3 = smov 4  }
  0x22   :  { %31 = dma.hbm_to_vmem [thread:$0]  %s395_s1, 1536, %s349_s12, [#allocation7], %s329_s0, %s329_s0, %s330_s3  }
  0x23   :  { %321 = dma.done.wait [#allocation4], 128  }
  0x24   :  { %322 = vsyncadd [#allocation4], 4294967168 }
  0x25   :  { %323 = dma.done.wait [#allocation7], 1536  }
  0x26   :  { %324 = vsyncadd [#allocation7], 4294965760  ;;  %vm43_vm0 = vcmask 261120   ;;  %v331_v0 = vmov 0   ;;  %v332_v1 = vmov 0.0   ;;  %v241_v2 = vld [vmem:[#allocation6] sm:$0xff]  }
  0x27   :  { %153 = vmatprep.subr.bf16.mxu0 %v331_v0  ;;  %44 = vst.msk [vmem:[#allocation2] sm:$0xff] %vm43_vm0, %v332_v1  ;;  %v242_v3 = vld [vmem:[#allocation6 + $0x8] sm:$0xff]   ;;  %v243_v4 = vld [vmem:[#allocation6 + $0x10] sm:$0xff]   ;;  %v244_v5 = vld [vmem:[#allocation6 + $0x18] sm:$0xff]   ;;  %vm149_vm1 = vcmask 523264   ;;  %s333_s1 = smov [#allocation8]  }
  0x28   :  { %154 = vmatpush1.bf16.msra.mxu0 %v241_v2  ;;  %v46_v6 = vld [vmem:[#allocation3] sm:$0xff]  ;;  %v245_v8 = vld [vmem:[#allocation6 + $0x20] sm:$0xff]   ;;  %v246_v9 = vld [vmem:[#allocation6 + $0x28] sm:$0xff]   ;;  %s209_s6 = sshll.u32 %s333_s1, 4  ;;  %vm201_vm2 = vcmask 257024   ;;  %s210_s6 = int_to_ptr.vmem [resolvable:$true] %s209_s6 }
  0x29   :  { %155 = vmatprep.subr.bf16.mxu0 %v331_v0  ;;  %v220_v7 = vcombine.high %v46_v6, %v46_v6  ;;  %v247_v10 = vld [vmem:[#allocation6 + $0x30] sm:$0xff]   ;;  %v248_v11 = vld [vmem:[#allocation6 + $0x38] sm:$0xff]   ;;  %v249_v12 = vld [vmem:[#allocation6 + $0x40] sm:$0xff]   ;;  %v219_v16 = vcombine.low %v46_v6, %v46_v6  ;;  %s299_s7 = scalar_lea.vmem %s210_s6, 64  ;;  %p304_p3 = scmp.lt.s32.totalorder %s210_s6, %s210_s6 }
  0x2a   :  { %v250_v13 = vld [vmem:[#allocation6 + $0x48] sm:$0xff]   ;;  %v251_v14 = vld [vmem:[#allocation6 + $0x50] sm:$0xff]   ;;  %v252_v15 = vld [vmem:[#allocation6 + $0x58] sm:$0xff]   ;;  %p300_p2 = scmp.ne.s32.totalorder %s210_s6, %s299_s7  ;;  %p305_p4 = scmp.lt.s32.totalorder %s299_s7, %s299_s7 }
  0x2b   :  { %233 = vmatprep.mubr.msk.bf16.mxu0 %vm149_vm1, %v220_v7 }
  0x2c   :  { %156 = vmatpush1.bf16.msra.mxu0 %v242_v3  ;;  %p306_p5 = por %p305_p4, %p304_p3 }
  0x2d   :  { %157 = vmatprep.subr.bf16.mxu0 %v331_v0 }
  0x2e   :  { %v45_v17 = vld [vmem:[#allocation2] sm:$0xff]  ;;  %p307_p6 = pnand %p306_p5, %p300_p2 }
  0x30   :  { %158 = vmatpush1.bf16.msra.mxu0 %v243_v4 }
  0x31   :  { %159 = vmatprep.subr.bf16.mxu0 %v331_v0 }
  0x34   :  { %160 = vmatpush1.bf16.msra.mxu0 %v244_v5 }
  0x35   :  { %161 = vmatprep.subr.bf16.mxu0 %v331_v0 }
  0x38   :  { %162 = vmatpush1.bf16.msra.mxu0 %v245_v8 }
  0x39   :  { %163 = vmatprep.subr.bf16.mxu0 %v331_v0 }
  0x3c   :  { %164 = vmatpush1.bf16.msra.mxu0 %v246_v9 }
  0x3d   :  { %165 = vmatprep.subr.bf16.mxu0 %v331_v0 }
  0x40   :  { %166 = vmatpush1.bf16.msra.mxu0 %v247_v10 }
  0x41   :  { %167 = vmatprep.subr.bf16.mxu0 %v331_v0 }
  0x44   :  { %168 = vmatpush1.bf16.msra.mxu0 %v248_v11 }
  0x45   :  { %169 = vmatprep.subr.bf16.mxu0 %v331_v0 }
  0x48   :  { %170 = vmatpush1.bf16.msra.mxu0 %v249_v12 }
  0x49   :  { %171 = vmatprep.subr.bf16.mxu0 %v331_v0 }
  0x4c   :  { %172 = vmatpush1.bf16.msra.mxu0 %v250_v13 }
  0x4d   :  { %173 = vmatprep.subr.bf16.mxu0 %v331_v0 }
  0x50   :  { %174 = vmatpush1.bf16.msra.mxu0 %v251_v14 }
  0x51   :  { %175 = vmatprep.subr.bf16.mxu0 %v331_v0 }
  0x54   :  { %176 = vmatpush1.bf16.msra.mxu0 %v252_v15 }
  0x57   :  { %186 = vmatmul.mubr.bf16.vlgmr.msra.gmra.mrb[0].mxu0 %v219_v16 }
 0x12a   :  { %v187_v18 = vpop.f32.mrb[0].mxu0 }
 0x12b   :  { %v193_v19 = vadd.f32 %v187_v18, %v45_v17  ;;  %v189_v20 = vpop.f32.mrb[1].mxu0 }
 0x12c   :  { %v190_v21 = vpop.f32.mrb[2].mxu0 }
 0x12d   :  { %195 = vst.msk [vmem:[#allocation2] sm:$0xff] %vm43_vm0, %v193_v19  ;;  %v191_v22 = vpop.f32.mrb[3].mxu0 }
 0x134   :  { %v199_v23 = vld [vmem:[#allocation2] sm:$0xff] }
 0x135   :  { %v200_v24 = vpack.c.bf16 %v199_v23, %v199_v23 }
 0x137   :  { %202 = vst.msk [vmem:[#allocation8] sm:$0xf] %vm201_vm2, %v200_v24 }
 0x138   :  { %310 = shalt.err (!%p307_p6)
}
 0x139   :  { %s311_s10 = scalar_lea.hbm %s396_s2, 64 }
 0x13a   :  { %p312_p7 = scmp.ne.s32.totalorder %s396_s2, %s311_s10  ;;  %p315_p8 = scmp.lt.u32.totalorder %s311_s10, %s396_s2 }
 0x13c   :  { %p317_p9 = pnand %p315_p8, %p312_p7 }
 0x13e   :  { %320 = shalt.err (!%p317_p9)
}
 0x13f   :  { %212 = dma.vmem_to_hbm [thread:$0]  %s210_s6, 64, %s396_s2, [#allocation5]  }
 0x140   :  { %325 = dma.done.wait [#allocation5], 64  }
 0x141   :  { %326 = vsyncadd [#allocation5], 4294967232 }
 0x142   :  { %216 = vsyncpa [#allocation4], 1 }
 0x143   :  { %217 = vsyncpa [#allocation7], 1 }
 0x144   :  { %218 = vsyncpa [#allocation5], 1 }

// kernel: clip_vision_proj_forward.14
= control target key start
LH: loop header
LB: loop body
LE: loop exit
PB: predicated region body
PF: predicated region fallthrough
CT: control target
= control target key end

     0   :  { %9 = vsyncpa [#allocation3], 0  ;;  %s983_s0 = inlined_call_operand.hbm [shape: bf16[2,5,32], index: 0, kind: input, shape index: {}]   ;;  %s984_s1 = inlined_call_operand.hbm [shape: bf16[5,32], index: 1, kind: input, shape index: {}]   ;;  %s985_s2 = inlined_call_operand.hbm [shape: f32[1,32], index: 2, kind: input, shape index: {}]   ;;  %s986_s3 = inlined_call_operand.hbm [shape: f32[1,32], index: 3, kind: input, shape index: {}]   ;;  %s987_s4 = inlined_call_operand.hbm [shape: bf16[2,5,32], index: 4, kind: output, shape index: {}]  }
   0x1   :  { %11 = vsyncpa [#allocation3 + $0x1], 0 }
   0x2   :  { %12 = vsyncpa [#allocation6], 0 }
   0x3   :  { %13 = vsyncpa [#allocation9], 0 }
   0x4   :  { %14 = vsyncpa [#allocation4], 0 }
   0x5   :  { %16 = vsyncpa [#allocation4 + $0x1], 0  ;;  %s726_s15 = smov 0   ;;  %s728_s16 = smov 0  }
   0x6   :  { %s730_s17 = smov 0   ;;  %s732_s18 = smov 0  }
   0x7 LB: > { %s747_s19 = sadd.s32 4294967295, %s694_s18   ;;  %s407_s20 = sadd.s32 4294967294, %s694_s18   ;;  %s694_s18 = sphi %s732_s18, %s1010_s18   ;;  %s690_s17 = sphi %s730_s17, %s1009_s17   ;;  %s686_s16 = sphi %s728_s16, %s1008_s16   ;;  %s682_s15 = sphi %s726_s15, %s1007_s15  }
   0x8   : > { %p42_p0 = scmp.ne.s32.totalorder %s686_s16, %s682_s15  ;;  %p988_p1 = scmp.eq.s32.totalorder %s747_s19, 0 }
   0x9   : > { %p135_p3 = scmp.eq.s32.totalorder %s407_s20, 1  ;;  %p408_p5 = scmp.ge.s32.totalorder %s694_s18, 1 }
   0xa   : > { %p756_p4 = por %p988_p1, %p42_p0  ;;  %p142_p7 = scmp.lt.s32.totalorder %s694_s18, 3 }
   0xb   : > { %p761_p6 = por %p135_p3, %p42_p0  ;;  %s696_s24 = smov [#allocation5]  }
   0xc   : > { %s991_s21 = scalar_select %p756_p4, 1, 0 }
   0xd   : > { %s992_s22 = scalar_select %p761_p6, 1, 0 }
   0xe   : > { %p766_p8 = pnand %p408_p5, %p142_p7  ;;  %s155_s25 = sshll.u32 %s696_s24, 4  ;;  %s156_s25 = int_to_ptr.vmem [resolvable:$true] %s155_s25 }
   0xf   : > { %s697_s26 = smov [#allocation7]   ;;  %s698_s29 = smov [#allocation8]  }
  0x10   : > { %s993_s23 = scalar_select %p766_p8, 1, 0 }
  0x11   : > { %p443_p10 = pneg %p766_p8  ;;  %s166_s27 = sshll.u32 %s697_s26, 4  ;;  %s779_s27 = int_to_ptr.vmem [resolvable:$true] %s166_s27 }
  0x12   : > { %s177_s30 = sshll.u32 %s698_s29, 4  ;;  %s506_s7 = scalar_lea.hbm %s984_s1, 64  ;;  %s781_s30 = int_to_ptr.vmem [resolvable:$true] %s177_s30 }
  0x13   : > { %p775_p11 = pnand %p443_p10, %p988_p1  ;;  %p507_p12 = scmp.ne.s32.totalorder %s984_s1, %s506_s7 }
  0x14   : > { %p513_p5 = scmp.lt.u32.totalorder %s506_s7, %s984_s1 }
  0x15   : > { %p791_p13 = pneg %p775_p11 }
  0x17   : > { %p509_p0 = pnand %p791_p13, %p507_p12 }
  0x19   : > { %p510_p3 = pneg %p509_p0 }
  0x1b   : > { %p515_p7 = pnand %p513_p5, %p510_p3 }
  0x1d   : > { %518 = shalt.err (!%p515_p7)
}
  0x1e   : > { %s519_s13 = scalar_lea.vmem %s156_s25, 64  ;;  %p527_p2 = scmp.lt.s32.totalorder %s156_s25, %s156_s25 }
  0x1f   : > { %p520_p10 = scmp.ne.s32.totalorder %s156_s25, %s519_s13  ;;  %p528_p6 = scmp.lt.s32.totalorder %s519_s13, %s519_s13 }
  0x21   : > { %p522_p9 = pnand %p520_p10, %p791_p13  ;;  %p529_p4 = por %p528_p6, %p527_p2 }
  0x23   : > { %p523_p1 = pneg %p522_p9 }
  0x25   : > { %p530_p8 = pnand %p529_p4, %p523_p1 }
  0x27   : > { %533 = shalt.err (!%p530_p8)
}
  0x28   : > { %446 = dma.hbm_to_vmem [thread:$0]  (!%p775_p11), %s984_s1, 64, %s156_s25, [#allocation6]  }
  0x29   : > { %s534_s29 = scalar_lea.hbm %s985_s2, 16 }
  0x2a   : > { %p535_p9 = scmp.ne.s32.totalorder %s985_s2, %s534_s29  ;;  %p541_p1 = scmp.lt.u32.totalorder %s534_s29, %s985_s2 }
  0x2c   : > { %p537_p12 = pnand %p535_p9, %p791_p13 }
  0x2e   : > { %p538_p2 = pneg %p537_p12 }
  0x30   : > { %p543_p4 = pnand %p541_p1, %p538_p2 }
  0x32   : > { %546 = shalt.err (!%p543_p4)
}
  0x33   : > { %s547_s25 = scalar_lea.vmem %s779_s27, 16  ;;  %s554_s9 = scalar_lea.vmem %s779_s27, 32 }
  0x34   : > { %p548_p6 = scmp.ne.s32.totalorder %s779_s27, %s547_s25  ;;  %p555_p3 = scmp.lt.s32.totalorder %s779_s27, %s779_s27 }
  0x35   : > { %p556_p5 = scmp.lt.s32.totalorder %s554_s9, %s547_s25 }
  0x36   : > { %p550_p8 = pnand %p548_p6, %p791_p13 }
  0x37   : > { %p557_p7 = por %p556_p5, %p555_p3 }
  0x38   : > { %p551_p0 = pneg %p550_p8 }
  0x3a   : > { %p558_p10 = pnand %p557_p7, %p551_p0 }
  0x3c   : > { %561 = shalt.err (!%p558_p10)
}
  0x3d   : > { %449 = dma.hbm_to_vmem [thread:$0]  (!%p775_p11), %s985_s2, 16, %s779_s27, [#allocation6]  }
  0x3e   : > { %s562_s20 = scalar_lea.hbm %s986_s3, 16 }
  0x3f   : > { %p563_p9 = scmp.ne.s32.totalorder %s986_s3, %s562_s20  ;;  %p569_p1 = scmp.lt.u32.totalorder %s562_s20, %s986_s3 }
  0x41   : > { %p565_p12 = pnand %p563_p9, %p791_p13 }
  0x43   : > { %p566_p2 = pneg %p565_p12 }
  0x45   : > { %p571_p4 = pnand %p569_p1, %p566_p2 }
  0x47   : > { %574 = shalt.err (!%p571_p4)
}
  0x48   : > { %s575_s27 = scalar_lea.vmem %s781_s30, 16  ;;  %s582_s6 = scalar_lea.vmem %s781_s30, 32 }
  0x49   : > { %p576_p6 = scmp.ne.s32.totalorder %s781_s30, %s575_s27  ;;  %p583_p3 = scmp.lt.s32.totalorder %s781_s30, %s781_s30 }
  0x4a   : > { %p584_p5 = scmp.lt.s32.totalorder %s582_s6, %s575_s27 }
  0x4b   : > { %p578_p8 = pnand %p576_p6, %p791_p13 }
  0x4c   : > { %p585_p7 = por %p584_p5, %p583_p3 }
  0x4d   : > { %p579_p0 = pneg %p578_p8 }
  0x4f   : > { %p586_p10 = pnand %p585_p7, %p579_p0 }
  0x51   : > { %589 = shalt.err (!%p586_p10)
}
  0x52   : > { %452 = dma.hbm_to_vmem [thread:$0]  (!%p775_p11), %s986_s3, 16, %s781_s30, [#allocation9]  }
  0x53   : > { %s856_s10 = sadd.s32 1, %s694_s18   ;;  %s29_s25 = sadd.s32 1, %s690_s17 }
  0x54   : > { %s26_s28 = ssub.s32 %s694_s18, %s856_s10  ;;  %p36_p9 = scmp.ne.s32.totalorder %s690_s17, %s686_s16 }
  0x55   : > { %p27_p13 = scmp.eq.s32.totalorder %s26_s28, 0  ;;  %p37_p12 = scmp.eq.s32.totalorder %s694_s18, 0 }
  0x56   : > { %p464_p2 = scmp.lt.s32.totalorder %s694_s18, 2  ;;  %p996_p4 = scmp.eq.s32.totalorder %s747_s19, 1 }
  0x57   : > { %s866_s9 = scalar_select %p27_p13, %s690_s17, %s29_s25  }
  0x58   : > { %p38_p1 = por %p37_p12, %p36_p9  ;;  %p870_p6 = por %p996_p4, %p36_p9 }
  0x59   : > { %s188_s12 = sand.u32 1, %s690_s17   ;;  %s414_s13 = sshll.u32 %s694_s18, 6 }
  0x5a   : > { %s413_s30 = sshll.u32 %s188_s12, 2  ;;  %s879_s24 = scalar_lea.hbm %s983_s0, %s414_s13 }
  0x5b   : > { %s192_s26 = scalar_lea.vmem [#allocation2], %s413_s30  ;;  %p881_p11 = pnand %p464_p2, %p38_p1 }
  0x5c   : > { %s199_s29 = sshll.u32 %s192_s26, 4  ;;  %s189_s27 = scalar_lea.sflag [#allocation3], %s188_s12  ;;  %s885_s29 = int_to_ptr.vmem [resolvable:$true] %s199_s29 }
  0x5d   : > { %s590_s6 = scalar_lea.hbm %s879_s24, 64  ;;  %p592_p0 = pneg %p881_p11 }
  0x5e   : > { %p591_p8 = scmp.ne.s32.totalorder %s879_s24, %s590_s6  ;;  %s595_s28 = scalar_lea.hbm %s983_s0, 128 }
  0x5f   : > { %p596_p7 = scmp.lt.u32.totalorder %s879_s24, %s983_s0  ;;  %p597_p10 = scmp.lt.u32.totalorder %s595_s28, %s590_s6 }
  0x60   : > { %p593_p3 = pnand %p592_p0, %p591_p8  ;;  %p599_p9 = scmp.lt.u32.totalorder %s590_s6, %s879_s24 }
  0x61   : > { %p598_p13 = por %p597_p10, %p596_p7 }
  0x62   : > { %p594_p5 = pneg %p593_p3 }
  0x63   : > { %p600_p12 = por %p599_p9, %p598_p13 }
  0x65   : > { %p601_p2 = pnand %p600_p12, %p594_p5 }
  0x67   : > { %604 = shalt.err (!%p601_p2)
}
  0x68   : > { %s605_s12 = scalar_lea.vmem %s885_s29, 64  ;;  %s699_s30 = smov [#allocation2]  }
  0x69   : > { %p606_p1 = scmp.ne.s32.totalorder %s885_s29, %s605_s12  ;;  %s610_s14 = sshll.u32 %s699_s30, 4  ;;  %s611_s14 = int_to_ptr.vmem [resolvable:$false] %s610_s14 }
  0x6a   : > { %s612_s20 = scalar_lea.vmem %s611_s14, 128  ;;  %p613_p3 = scmp.lt.s32.totalorder %s885_s29, %s611_s14 }
  0x6b   : > { %p608_p4 = pnand %p606_p1, %p592_p0  ;;  %p614_p7 = scmp.lt.s32.totalorder %s612_s20, %s605_s12 }
  0x6d   : > { %p609_p8 = pneg %p608_p4  ;;  %p615_p10 = por %p614_p7, %p613_p3 }
  0x6f   : > { %p616_p13 = pnand %p615_p10, %p609_p8 }
  0x71   : > { %619 = shalt.err (!%p616_p13)
}
  0x72   : > { %456 = dma.hbm_to_vmem [thread:$0]  (!%p881_p11), %s879_s24, 64, %s885_s29, %s189_s27  }
  0x73   : > { %p999_p5 = scmp.ne.s32.totalorder %s993_s23, 0 }
  0x74   : > { %s915_s26 = sand.u32 (!%p999_p5), 1, %s686_s16   ;;  %p1000_p0 = scmp.ne.s32.totalorder (!%p999_p5), %s991_s21, 0 }
  0x75   : > { %208 = sbr.rel (%p999_p5) target bundleno = 467 (0x1d3), region = 36  ;;  %s416_s6 = sshll.u32 (!%p999_p5), %s915_s26, 2 }
  0x76   : > { %s211_s7 = scalar_lea.sflag (!%p999_p5), [#allocation3], %s915_s26  ;;  %s214_s8 = scalar_lea.vmem (!%p999_p5), [#allocation2], %s416_s6 }
  0x7c   : > { %665 = dma.done.wait (%p1000_p0), %s211_s7, 64  }
  0x7d   : > { %667 = vsyncadd (%p1000_p0), %s211_s7, 4294967232  ;;  %p1001_p11 = scmp.eq.s32.totalorder %s747_s19, 0 }
  0x7f   : > { %669 = dma.done.wait (%p1001_p11), [#allocation6], 80   ;;  %p1002_p9 = pmov %p1001_p11 }
  0x81   : > { %671 = vsyncadd (%p1002_p9), [#allocation6], 4294967216  ;;  %p1003_p12 = pmov %p1002_p9 }
  0x82   : > { %p1004_p2 = pmov %p1002_p9 }
  0x83   : > { %673 = dma.done.wait (%p1003_p12), [#allocation9], 16  }
  0x84   : > { %675 = vsyncadd (%p1004_p2), [#allocation9], 4294967280  ;;  %v251_v0 = vld [vmem:[%s214_s8] sm:$0x7]  ;;  %v253_v1 = vld [vmem:[#allocation5] sm:$0x7] }
  0x85   : > { %v252_v2 = vunpack.c.l.bf16 %v251_v0  ;;  %v254_v3 = vunpack.c.l.bf16 %v253_v1  ;;  %vm256_vm0 = vcmask 258048   ;;  %v421_v15 = vld [vmem:[#allocation7] ss:$0 sm:$0xff]  ;;  %v422_v17 = vld [vmem:[#allocation8] ss:$0 sm:$0xff]  ;;  %vm288_vm1 = vcmask 256000  }
  0x86   : > { %vm289_vm2 = vsmask.f32 2304  ;;  %s424_s21 = sshll.u32 %s747_s19, 6  ;;  %s250_s23 = scalar_lea.vmem [#allocation10], %s416_s6 }
  0x87   : > { %v255_v4 = vadd.f32 %v254_v3, %v252_v2  ;;  %s308_s24 = sshll.u32 %s250_s23, 4  ;;  %vm290_vm3 = vmand %vm288_vm1, %vm289_vm2  ;;  %v291_v20 = vld [vmem:[%s250_s23] sm:$0x7]  ;;  %s939_s27 = scalar_lea.hbm %s987_s4, %s424_s21  ;;  %s941_s24 = int_to_ptr.vmem [resolvable:$true] %s308_s24 }
  0x88   : > { %s295_s28 = scalar_lea.sflag [#allocation4], %s915_s26  ;;  %s620_s19 = scalar_lea.vmem %s941_s24, 64 }
  0x89   : > { %v257_v5 = vsel %vm256_vm0, %v255_v4, 0.0  ;;  %p621_p1 = scmp.ne.s32.totalorder %s941_s24, %s620_s19  ;;  %s700_s25 = smov [#allocation10]  }
  0x8a   : > { %258 = vadd.xlane.f32.xlu0 %v257_v5  ;;  %s624_s13 = sshll.u32 %s700_s25, 4  ;;  %s625_s13 = int_to_ptr.vmem [resolvable:$false] %s624_s13 }
  0x8b   : > { %p622_p4 = pnand %p621_p1, %p870_p6  ;;  %s626_s12 = scalar_lea.vmem %s625_s13, 128 }
  0x8c   : > { %p627_p3 = scmp.lt.s32.totalorder %s941_s24, %s625_s13  ;;  %p628_p7 = scmp.lt.s32.totalorder %s626_s12, %s620_s19 }
  0x8d   : > { %p623_p8 = pneg %p622_p4 }
  0x8e   : > { %p629_p10 = por %p628_p7, %p627_p3 }
  0x90   : > { %p630_p13 = pnand %p629_p10, %p623_p8 }
 0x117   : > { %v259_v6 = vpop.xlane.xlu0 %258 }
 0x118   : > { %v261_v7 = vmul.f32 0.03125, %v259_v6 }
 0x11a   : > { %v262_v8 = vsub.f32 %v255_v4, %v261_v7 }
 0x11c   : > { %v263_v9 = vmul.f32 %v262_v8, %v262_v8 }
 0x11e   : > { %v264_v10 = vsel %vm256_vm0, %v263_v9, 0.0 }
 0x11f   : > { %265 = vadd.xlane.f32.xlu0 %v264_v10 }
 0x1ac   : > { %v266_v11 = vpop.xlane.xlu0 %265 }
 0x1ad   : > { %v267_v12 = vmul.f32 0.03125, %v266_v11 }
 0x1af   : > { %v268_v13 = vadd.f32 1e-05, %v267_v12 }
 0x1b1   : > { %504 = vrsqrt.f32 %v268_v13 }
 0x1bb   : > { %v505_v14 = vpop.eup %504 }
 0x1bc   : > { %v270_v16 = vmul.f32 %v505_v14, %v262_v8 }
 0x1be   : > { %v278_v18 = vmul.f32 %v421_v15, %v270_v16 }
 0x1c0   : > { %v286_v19 = vadd.f32 %v422_v17, %v278_v18 }
 0x1c2   : > { %v287_v21 = vpack.c.bf16 %v286_v19, %v286_v19 }
 0x1c4   : > { %v292_v22 = vsel %vm290_vm3, %v287_v21, %v291_v20 }
 0x1c5   : > { %293 = vst [vmem:[%s250_s23] sm:$0x7] %v292_v22 }
 0x1c6   : > { %633 = shalt.err (!%p630_p13)
}
 0x1c7   : > { %s634_s30 = scalar_lea.hbm %s939_s27, 64  ;;  %s638_s26 = scalar_lea.hbm %s987_s4, 128 }
 0x1c8   : > { %p635_p5 = scmp.ne.s32.totalorder %s939_s27, %s634_s30  ;;  %p639_p9 = scmp.lt.u32.totalorder %s939_s27, %s987_s4 }
 0x1c9   : > { %p640_p12 = scmp.lt.u32.totalorder %s638_s26, %s634_s30  ;;  %p642_p1 = scmp.lt.u32.totalorder %s634_s30, %s939_s27 }
 0x1ca   : > { %p636_p0 = pnand %p635_p5, %p870_p6 }
 0x1cb   : > { %p641_p2 = por %p640_p12, %p639_p9 }
 0x1cc   : > { %p637_p11 = pneg %p636_p0 }
 0x1cd   : > { %p643_p4 = por %p642_p1, %p641_p2 }
 0x1cf   : > { %p644_p8 = pnand %p643_p4, %p637_p11 }
 0x1d1   : > { %647 = shalt.err (!%p644_p8)
}
 0x1d2   : > { %441 = dma.vmem_to_hbm [thread:$0]  (%p870_p6), %s941_s24, 64, %s939_s27, %s295_s28  }
 0x1d3 PF: > { %s320_s8 = sand.u32 1, %s682_s15   ;;  %p1005_p3 = scmp.ne.s32.totalorder %s992_s22, 0 }
 0x1d4   : > { %p1006_p7 = scmp.ge.s32.totalorder %s694_s18, 2  ;;  %s321_s21 = scalar_lea.sflag [#allocation4], %s320_s8 }
 0x1d6   : > { %p458_p10 = pnand %p1006_p7, %p1005_p3 }
 0x1d8   : > { %677 = dma.done.wait (!%p458_p10), %s321_s21, 64  }
 0x1d9   : > { %679 = vsyncadd (!%p458_p10), %s321_s21, 4294967232  ;;  %p19_p13 = scmp.ge.s32.totalorder %s856_s10, 4   ;;  %s1007_s15 = smov %s686_s16 }
 0x1da   : > { %s1008_s16 = smov %s690_s17  ;;  %s1009_s17 = smov %s866_s9 }
 0x1db   : > { %s1010_s18 = smov %s856_s10  ;;  %21 = sbr.rel (!%p19_p13) target bundleno = 7 (0x7), region = 93 }
 0x1e2   :  { %326 = vsyncpa [#allocation3], 1 }
 0x1e3   :  { %328 = vsyncpa [#allocation3 + $0x1], 1 }
 0x1e4   :  { %329 = vsyncpa [#allocation6], 1 }
 0x1e5   :  { %330 = vsyncpa [#allocation9], 1 }
 0x1e6   :  { %331 = vsyncpa [#allocation4], 1 }
 0x1e7   :  { %333 = vsyncpa [#allocation4 + $0x1], 1 }

// kernel: clip_vision_proj_forward.15
= control target key start
LH: loop header
LB: loop body
LE: loop exit
PB: predicated region body
PF: predicated region fallthrough
CT: control target
= control target key end

     0   :  { %10 = vsyncpa [#allocation4], 0  ;;  %s564_s0 = inlined_call_operand.hbm [shape: bf16[10,32], index: 0, kind: input, shape index: {}]   ;;  %s565_s1 = inlined_call_operand.hbm [shape: f32[1,32], index: 1, kind: input, shape index: {}]   ;;  %s566_s2 = inlined_call_operand.hbm [shape: f32[1,32], index: 2, kind: input, shape index: {}]   ;;  %s567_s3 = inlined_call_operand.hbm [shape: bf16[32,96], index: 3, kind: input, shape index: {}]   ;;  %s568_s4 = inlined_call_operand.hbm [shape: f32[1,96], index: 4, kind: input, shape index: {}]   ;;  %s569_s5 = inlined_call_operand.hbm [shape: bf16[10,96], index: 5, kind: output, shape index: {}]  }
   0x1   :  { %11 = vsyncpa [#allocation7], 0 }
   0x2   :  { %12 = vsyncpa [#allocation10], 0 }
   0x3   :  { %13 = vsyncpa [#allocation5], 0  ;;  %s440_s18 = smov [#allocation6]   ;;  %s300_s22 = scalar_lea.hbm %s565_s1, 16 }
   0x4   :  { %s32_s19 = sshll.u32 %s440_s18, 4  ;;  %p301_p0 = scmp.ne.s32.totalorder %s565_s1, %s300_s22  ;;  %s33_s19 = int_to_ptr.vmem [resolvable:$true] %s32_s19 }
   0x5   :  { %p304_p1 = scmp.lt.u32.totalorder %s300_s22, %s565_s1 }
   0x7   :  { %p306_p2 = pnand %p304_p1, %p301_p0 }
   0x9   :  { %309 = shalt.err (!%p306_p2)
}
   0xa   :  { %s310_s27 = scalar_lea.vmem %s33_s19, 16  ;;  %s314_s28 = scalar_lea.vmem %s33_s19, 32 }
   0xb   :  { %p311_p3 = scmp.ne.s32.totalorder %s33_s19, %s310_s27  ;;  %p315_p4 = scmp.lt.s32.totalorder %s33_s19, %s33_s19 }
   0xc   :  { %p316_p5 = scmp.lt.s32.totalorder %s314_s28, %s310_s27 }
   0xe   :  { %p317_p6 = por %p316_p5, %p315_p4 }
  0x10   :  { %p318_p7 = pnand %p317_p6, %p311_p3 }
  0x12   :  { %321 = shalt.err (!%p318_p7)
}
  0x13   :  { %35 = dma.hbm_to_vmem [thread:$0]  %s565_s1, 16, %s33_s19, [#allocation7]  }
  0x14   :  { %s441_s6 = smov [#allocation9]   ;;  %s442_s8 = smov [#allocation3]  }
  0x15   :  { %s51_s7 = sshll.u32 %s441_s6, 4  ;;  %s19_s9 = sshll.u32 %s442_s8, 4  ;;  %s52_s7 = int_to_ptr.vmem [resolvable:$true] %s51_s7  ;;  %s20_s9 = int_to_ptr.vmem [resolvable:$true] %s19_s9 }
  0x16   :  { %s322_s12 = scalar_lea.hbm %s567_s3, 256 }
  0x17   :  { %p323_p8 = scmp.ne.s32.totalorder %s567_s3, %s322_s12  ;;  %p326_p9 = scmp.lt.u32.totalorder %s322_s12, %s567_s3 }
  0x19   :  { %p328_p10 = pnand %p326_p9, %p323_p8 }
  0x1b   :  { %331 = shalt.err (!%p328_p10)
}
  0x1c   :  { %s332_s1 = scalar_lea.vmem %s52_s7, 256  ;;  %p337_p12 = scmp.lt.s32.totalorder %s52_s7, %s52_s7 }
  0x1d   :  { %p333_p11 = scmp.ne.s32.totalorder %s52_s7, %s332_s1  ;;  %p338_p13 = scmp.lt.s32.totalorder %s332_s1, %s332_s1 }
  0x1f   :  { %p339_p0 = por %p338_p13, %p337_p12 }
  0x21   :  { %p340_p1 = pnand %p339_p0, %p333_p11 }
  0x23   :  { %343 = shalt.err (!%p340_p1)
}
  0x24   :  { %s443_s17 = smov 64   ;;  %s444_s18 = smov 4  }
  0x25   :  { %57 = dma.hbm_to_vmem [thread:$0]  %s567_s3, 256, %s52_s7, [#allocation10], %s443_s17, %s443_s17, %s444_s18  }
  0x26   :  { %s344_s23 = scalar_lea.hbm %s564_s0, 128 }
  0x27   :  { %p345_p2 = scmp.ne.s32.totalorder %s564_s0, %s344_s23  ;;  %p348_p3 = scmp.lt.u32.totalorder %s344_s23, %s564_s0 }
  0x29   :  { %p350_p4 = pnand %p348_p3, %p345_p2 }
  0x2b   :  { %353 = shalt.err (!%p350_p4)
}
  0x2c   :  { %s354_s28 = scalar_lea.vmem %s20_s9, 128  ;;  %p359_p6 = scmp.lt.s32.totalorder %s20_s9, %s20_s9 }
  0x2d   :  { %p355_p5 = scmp.ne.s32.totalorder %s20_s9, %s354_s28  ;;  %p360_p7 = scmp.lt.s32.totalorder %s354_s28, %s354_s28 }
  0x2f   :  { %p361_p8 = por %p360_p7, %p359_p6 }
  0x31   :  { %p362_p9 = pnand %p361_p8, %p355_p5 }
  0x33   :  { %365 = shalt.err (!%p362_p9)
}
  0x34   :  { %25 = dma.hbm_to_vmem [thread:$0]  %s564_s0, 128, %s20_s9, [#allocation4], %s443_s17, %s443_s17, %s444_s18  }
  0x35   :  { %s445_s30 = smov [#allocation8]   ;;  %s446_s7 = smov [#allocation11]  }
  0x36   :  { %s42_s6 = sshll.u32 %s445_s30, 4  ;;  %s64_s8 = sshll.u32 %s446_s7, 4  ;;  %s43_s6 = int_to_ptr.vmem [resolvable:$true] %s42_s6  ;;  %s65_s8 = int_to_ptr.vmem [resolvable:$true] %s64_s8 }
  0x37   :  { %s366_s12 = scalar_lea.hbm %s566_s2, 16 }
  0x38   :  { %p367_p10 = scmp.ne.s32.totalorder %s566_s2, %s366_s12  ;;  %p370_p11 = scmp.lt.u32.totalorder %s366_s12, %s566_s2 }
  0x3a   :  { %p372_p12 = pnand %p370_p11, %p367_p10 }
  0x3c   :  { %375 = shalt.err (!%p372_p12)
}
  0x3d   :  { %s376_s0 = scalar_lea.vmem %s43_s6, 16  ;;  %s380_s9 = scalar_lea.vmem %s43_s6, 32 }
  0x3e   :  { %p377_p13 = scmp.ne.s32.totalorder %s43_s6, %s376_s0  ;;  %p381_p0 = scmp.lt.s32.totalorder %s43_s6, %s43_s6 }
  0x3f   :  { %p382_p1 = scmp.lt.s32.totalorder %s380_s9, %s376_s0 }
  0x41   :  { %p383_p2 = por %p382_p1, %p381_p0 }
  0x43   :  { %p384_p3 = pnand %p383_p2, %p377_p13 }
  0x45   :  { %387 = shalt.err (!%p384_p3)
}
  0x46   :  { %45 = dma.hbm_to_vmem [thread:$0]  %s566_s2, 16, %s43_s6, [#allocation7]  }
  0x47   :  { %s388_s22 = scalar_lea.hbm %s568_s4, 16 }
  0x48   :  { %p389_p4 = scmp.ne.s32.totalorder %s568_s4, %s388_s22  ;;  %p392_p5 = scmp.lt.u32.totalorder %s388_s22, %s568_s4 }
  0x4a   :  { %p394_p6 = pnand %p392_p5, %p389_p4 }
  0x4c   :  { %397 = shalt.err (!%p394_p6)
}
  0x4d   :  { %s398_s27 = scalar_lea.vmem %s65_s8, 16  ;;  %s402_s28 = scalar_lea.vmem %s65_s8, 32 }
  0x4e   :  { %p399_p7 = scmp.ne.s32.totalorder %s65_s8, %s398_s27  ;;  %p403_p8 = scmp.lt.s32.totalorder %s65_s8, %s65_s8 }
  0x4f   :  { %p404_p9 = scmp.lt.s32.totalorder %s402_s28, %s398_s27 }
  0x51   :  { %p405_p10 = por %p404_p9, %p403_p8 }
  0x53   :  { %p406_p11 = pnand %p405_p10, %p399_p7 }
  0x55   :  { %409 = shalt.err (!%p406_p11)
}
  0x56   :  { %67 = dma.hbm_to_vmem [thread:$0]  %s568_s4, 16, %s65_s8, [#allocation10]  }
  0x57   :  { %432 = dma.done.wait [#allocation4], 128  }
  0x58   :  { %433 = vsyncadd [#allocation4], 4294967168 }
  0x59   :  { %434 = dma.done.wait [#allocation7], 32  }
  0x5a   :  { %435 = vsyncadd [#allocation7], 4294967264 }
  0x5b   :  { %436 = dma.done.wait [#allocation10], 272  }
  0x5c   :  { %437 = vsyncadd [#allocation10], 4294967024  ;;  %vm92_vm0 = vcmask 261120   ;;  %v88_v0 = vld [vmem:[#allocation3] sm:$0xf]  ;;  %vm96_vm1 = vcmask 254976  }
  0x5d   :  { %v89_v1 = vld [vmem:[#allocation3 + $0x4] sm:$0x1]  ;;  %v90_v2 = vunpack.c.l.bf16 %v88_v0  ;;  %v293_v16 = vld [vmem:[#allocation9] sm:$0xff]   ;;  %v447_v17 = vmov 0.0   ;;  %vm448_vm2 = vmmov 0   ;;  %v294_v18 = vld [vmem:[#allocation9 + $0x8] sm:$0xff]  }
  0x5e   :  { %v91_v3 = vunpack.c.l.bf16 %v89_v1  ;;  %275 = vmatprep.subr.bf16.mxu0 %v447_v17  ;;  %279 = vmatprep.mubr.msk.bf16.mxu0 %vm448_vm2, %v447_v17  ;;  %v257_v26 = vld [vmem:[#allocation6] ss:$0 sm:$0xff]  ;;  %v258_v28 = vld [vmem:[#allocation8] ss:$0 sm:$0xff]  ;;  %vm147_vm3 = vcmask 257024   ;;  %vm149_vm4 = vcmask 253952  }
  0x5f   :  { %v93_v4 = vsel %vm92_vm0, %v90_v2, 0.0  ;;  %276 = vmatpush3.bf16.msra.mxu0 %v293_v16  ;;  %v261_v38 = vld [vmem:[#allocation11] ss:$0 sm:$0xff]  ;;  %vm234_vm5 = vcmask 781312   ;;  %s449_s4 = smov [#allocation12]   ;;  %vm236_vm6 = vcmask 778240  }
  0x60   :  { %94 = vadd.xlane.f32.xlu0 %v93_v4  ;;  %v97_v5 = vsel %vm96_vm1, %v91_v3, 0.0  ;;  %277 = vmatprep.subr.bf16.mxu0 %v447_v17  ;;  %s243_s29 = sshll.u32 %s449_s4, 4  ;;  %s244_s29 = int_to_ptr.vmem [resolvable:$true] %s243_s29 }
  0x61   :  { %s410_s30 = scalar_lea.vmem %s244_s29, 128  ;;  %p415_p13 = scmp.lt.s32.totalorder %s244_s29, %s244_s29 }
  0x62   :  { %p411_p12 = scmp.ne.s32.totalorder %s244_s29, %s410_s30  ;;  %p416_p0 = scmp.lt.s32.totalorder %s410_s30, %s410_s30 }
  0x63   :  { %278 = vmatpush3.bf16.msra.mxu0 %v294_v18 }
  0x64   :  { %98 = vadd.xlane.f32.xlu0 %v97_v5  ;;  %p417_p1 = por %p416_p0, %p415_p13 }
  0x66   :  { %p418_p2 = pnand %p417_p1, %p411_p12 }
  0xed   :  { %v95_v6 = vpop.xlane.xlu0 %94 }
  0xee   :  { %v101_v7 = vmul.f32 0.03125, %v95_v6 }
  0xf0   :  { %v103_v8 = vsub.f32 %v90_v2, %v101_v7 }
  0xf1   :  { %v99_v9 = vpop.xlane.xlu0 %98 }
  0xf2   :  { %v102_v10 = vmul.f32 0.03125, %v99_v9  ;;  %v105_v11 = vmul.f32 %v103_v8, %v103_v8 }
  0xf4   :  { %v104_v12 = vsub.f32 %v91_v3, %v102_v10  ;;  %v107_v13 = vsel %vm92_vm0, %v105_v11, 0.0 }
  0xf5   :  { %108 = vadd.xlane.f32.xlu1 %v107_v13 }
  0xf6   :  { %v106_v14 = vmul.f32 %v104_v12, %v104_v12 }
  0xf8   :  { %v110_v15 = vsel %vm96_vm1, %v106_v14, 0.0 }
  0xf9   :  { %111 = vadd.xlane.f32.xlu1 %v110_v15 }
 0x182   :  { %v109_v19 = vpop.xlane.xlu1 %108 }
 0x183   :  { %v113_v20 = vmul.f32 0.03125, %v109_v19 }
 0x185   :  { %v115_v21 = vadd.f32 1e-05, %v113_v20 }
 0x186   :  { %v112_v22 = vpop.xlane.xlu1 %111 }
 0x187   :  { %296 = vrsqrt.f32 %v115_v21  ;;  %v114_v23 = vmul.f32 0.03125, %v112_v22 }
 0x189   :  { %v116_v24 = vadd.f32 1e-05, %v114_v23 }
 0x18b   :  { %298 = vrsqrt.f32 %v116_v24 }
 0x191   :  { %v297_v25 = vpop.eup %296 }
 0x192   :  { %v119_v27 = vmul.f32 %v297_v25, %v103_v8 }
 0x194   :  { %v128_v29 = vmul.f32 %v257_v26, %v119_v27 }
 0x195   :  { %v299_v30 = vpop.eup %298 }
 0x196   :  { %v137_v31 = vadd.f32 %v258_v28, %v128_v29  ;;  %v120_v32 = vmul.f32 %v299_v30, %v104_v12 }
 0x198   :  { %v268_v33 = vpack.c.bf16 %v137_v31, %v137_v31  ;;  %v129_v34 = vmul.f32 %v257_v26, %v120_v32 }
 0x19a   :  { %148 = vst.msk [vmem:[#allocation2] sm:$0xf] %vm147_vm3, %v268_v33  ;;  %v138_v35 = vadd.f32 %v258_v28, %v129_v34 }
 0x19c   :  { %v269_v36 = vpack.c.bf16 %v138_v35, %v138_v35 }
 0x19e   :  { %150 = vst.msk [vmem:[#allocation2 + $0x4] sm:$0x1] %vm149_vm4, %v269_v36 }
 0x1a5   :  { %v295_v37 = vld [vmem:[#allocation2] sm:$0x1f]  }
 0x1a6   :  { %280 = vmatmul.mubr.msk.bf16.vlgmr.msra.gmra.mrb[0].mxu0 %vm92_vm0, %v295_v37 }
 0x279   :  { %v219_v39 = vpop.f32.mrb[0].mxu0 }
 0x27a   :  { %v220_v40 = vadd.f32 %v261_v38, %v219_v39  ;;  %v281_v41 = vpop.f32.mrb[1].mxu0 }
 0x27b   :  { %v222_v42 = vpop.f32.mrb[2].mxu0 }
 0x27c   :  { %v270_v43 = vpack.c.bf16 %v220_v40, %v220_v40  ;;  %v223_v44 = vadd.f32 %v261_v38, %v222_v42  ;;  %v282_v45 = vpop.f32.mrb[3].mxu0 }
 0x27e   :  { %v271_v46 = vpack.c.bf16 %v223_v44, %v223_v44  ;;  %235 = vst.msk [vmem:[#allocation12] sm:$0xf] %vm234_vm5, %v270_v43 }
 0x280   :  { %237 = vst.msk [vmem:[#allocation12 + $0x4] sm:$0x1] %vm236_vm6, %v271_v46 }
 0x281   :  { %421 = shalt.err (!%p418_p2)
}
 0x282   :  { %s422_s8 = scalar_lea.hbm %s569_s5, 128 }
 0x283   :  { %p423_p3 = scmp.ne.s32.totalorder %s569_s5, %s422_s8  ;;  %p426_p4 = scmp.lt.u32.totalorder %s422_s8, %s569_s5 }
 0x285   :  { %p428_p5 = pnand %p426_p4, %p423_p3 }
 0x287   :  { %431 = shalt.err (!%p428_p5)
}
 0x288   :  { %249 = dma.vmem_to_hbm [thread:$0]  %s244_s29, 128, %s569_s5, [#allocation5], %s443_s17, %s443_s17, %s444_s18  }
 0x289   :  { %438 = dma.done.wait [#allocation5], 128  }
 0x28a   :  { %439 = vsyncadd [#allocation5], 4294967168 }
 0x28b   :  { %253 = vsyncpa [#allocation4], 1 }
 0x28c   :  { %254 = vsyncpa [#allocation7], 1 }
 0x28d   :  { %255 = vsyncpa [#allocation10], 1 }
 0x28e   :  { %256 = vsyncpa [#allocation5], 1 }

// kernel: clip_vision_proj_forward.16
= control target key start
LH: loop header
LB: loop body
LE: loop exit
PB: predicated region body
PF: predicated region fallthrough
CT: control target
= control target key end

     0   :  { %s1201_s0 = inlined_call_operand.hbm [shape: bf16[2,2,5,16], index: 0, kind: input, shape index: {}]   ;;  %s1202_s1 = inlined_call_operand.hbm [shape: bf16[2,2,5,16], index: 1, kind: input, shape index: {}]   ;;  %s1203_s2 = inlined_call_operand.hbm [shape: bf16[2,2,5,16], index: 2, kind: input, shape index: {}]   ;;  %s1204_s3 = inlined_call_operand.hbm [shape: bf16[2,2,5,16], index: 3, kind: output, shape index: {}]  }
   0x1   :  { %1214 = sst [smem:[#allocation18_spill]] %s1202_s1 }
   0x2   :  { %8 = vsyncpa [#allocation3], 0 }
   0x3   :  { %10 = vsyncpa [#allocation3 + $0x1], 0 }
   0x4   :  { %11 = vsyncpa [#allocation6], 0 }
   0x5   :  { %13 = vsyncpa [#allocation6 + $0x1], 0 }
   0x6   :  { %14 = vsyncpa [#allocation4], 0 }
   0x7   :  { %16 = vsyncpa [#allocation4 + $0x1], 0  ;;  %s913_s12 = smov 0   ;;  %s915_s13 = smov 0  }
   0x8   :  { %s917_s14 = smov 0   ;;  %s919_s15 = smov 0  }
   0x9   :  { %s921_s16 = smov 0   ;;  %s923_s17 = smov 0  }
   0xa   :  { %s925_s18 = smov 0   ;;  %s927_s19 = smov 0  }
   0xb LB: > { %1215 = sst [smem:[#allocation12_spill]] %s876_s17  ;;  %s954_s20 = sadd.s32 4294967295, %s884_s19   ;;  %s884_s19 = sphi %s927_s19, %s22_s19   ;;  %s880_s18 = sphi %s925_s18, %s1242_s18   ;;  %s876_s17 = sphi %s923_s17, %s1241_s17   ;;  %s872_s16 = sphi %s921_s16, %s1240_s16   ;;  %s868_s15 = sphi %s919_s15, %s1239_s15   ;;  %s864_s14 = sphi %s917_s14, %s1245_s14   ;;  %s860_s13 = sphi %s915_s13, %s1244_s13   ;;  %s856_s12 = sphi %s913_s12, %s1243_s12  }
   0xc   : > { %1216 = sst [smem:[#allocation13_spill]] %s880_s18  ;;  %s557_s21 = sadd.s32 4294967294, %s884_s19  }
   0xd   : > { %s31_s22 = sadd.s32 1, %s876_s17  ;;  %s34_s23 = sadd.s32 1, %s880_s18 }
   0xe   : > { %p32_p0 = scmp.ge.s32.totalorder %s31_s22, 2  ;;  %s43_s24 = sadd.s32 1, %s864_s14 }
   0xf   : > { %p50_p1 = scmp.ne.s32.totalorder %s864_s14, %s860_s13  ;;  %p51_p2 = scmp.eq.s32.totalorder %s884_s19, 0 }
  0x10   : > { %s1247_s22 = smov (%p32_p0, %s31_s22), 0  ;;  %s1249_s23 = smov (!%p32_p0, %s34_s23), %s880_s18 }
  0x11   : > { %1217 = sst [smem:[#allocation14_spill]] %s1247_s22  ;;  %s39_s25 = ssub.s32 %s876_s17, %s1247_s22 }
  0x12   : > { %p968_p3 = por %p51_p2, %p50_p1  ;;  %p36_p4 = scmp.ge.s32.totalorder %s1249_s23, 2 }
  0x13   : > { %p56_p5 = scmp.ne.s32.totalorder %s860_s13, %s856_s12  ;;  %p57_p6 = scmp.eq.s32.totalorder %s954_s20, 0 }
  0x14   : > { %p138_p7 = scmp.eq.s32.totalorder %s954_s20, 3  ;;  %s1251_s23 = smov (%p36_p4, %s1249_s23), 0 }
  0x15   : > { %1219 = sst [smem:[#allocation15_spill]] %s1251_s23  ;;  %p978_p8 = por %p57_p6, %p56_p5 }
  0x16   : > { %p982_p9 = por %p138_p7, %p50_p1  ;;  %s38_s29 = ssub.s32 %s880_s18, %s1251_s23 }
  0x17   : > { %s1220_s27 = scalar_select %p978_p8, 1, 0 }
  0x18   : > { %s1221_s28 = scalar_select %p982_p9, 1, 0 }
  0x19   : > { %p144_p10 = scmp.eq.s32.totalorder %s557_s21, 3  ;;  %s40_s30 = sor.u32 %s39_s25, %s38_s29 }
  0x1a   : > { %p41_p11 = scmp.eq.s32.totalorder %s40_s30, 0  ;;  %p619_p13 = scmp.lt.s32.totalorder %s884_s19, 4 }
  0x1b   : > { %p988_p12 = por %p144_p10, %p56_p5  ;;  %s1205_s5 = sand.u32 1, %s864_s14  }
  0x1c   : > { %s995_s6 = scalar_select %p41_p11, %s864_s14, %s43_s24  }
  0x1d   : > { %s1222_s4 = scalar_select %p988_p12, 1, 0 }
  0x1e   : > { %1224 = sst [smem:[#allocation17_spill]] %s995_s6  ;;  %s999_s7 = sshll.u32 %s1205_s5, 2 }
  0x1f   : > { %1223 = sst [smem:[#allocation16_spill]] %s1222_s4  ;;  %s561_s8 = sshll.u32 %s880_s18, 1 }
  0x20   : > { %s173_s9 = sadd.s32 %s876_s17, %s561_s8  ;;  %p1005_p0 = pnand %p619_p13, %p968_p3 }
  0x21   : > { %s1009_s11 = sshll.u32 %s173_s9, 6  ;;  %s184_s21 = sand.u32 1, %s884_s19  }
  0x22   : > { %s1225_s10 = scalar_select %p1005_p0, 1, 0 }
  0x23   : > { %s1226_s1 = sld [smem:[#allocation18_spill]]  ;;  %s188_s30 = scalar_lea.vmem [#allocation5], %s999_s7 }
  0x24   : > { %s197_s26 = sshll.u32 %s188_s30, 4  ;;  %s1023_s8 = scalar_lea.sflag [#allocation6], %s184_s21  ;;  %s1020_s26 = int_to_ptr.vmem [resolvable:$true] %s197_s26 }
  0x25   : > { %p1029_p4 = pneg %p1005_p0 }
  0x29   : > { %s1016_s24 = scalar_lea.hbm %s1226_s1, %s1009_s11  ;;  %s697_s30 = scalar_lea.hbm %s1226_s1, 256 }
  0x2a   : > { %s692_s9 = scalar_lea.hbm %s1016_s24, 64  ;;  %p698_p7 = scmp.lt.u32.totalorder %s1016_s24, %s1226_s1 }
  0x2b   : > { %p693_p3 = scmp.ne.s32.totalorder %s1016_s24, %s692_s9  ;;  %p699_p10 = scmp.lt.u32.totalorder %s697_s30, %s692_s9 }
  0x2c   : > { %p701_p13 = scmp.lt.u32.totalorder %s692_s9, %s1016_s24 }
  0x2d   : > { %p695_p5 = pnand %p1029_p4, %p693_p3  ;;  %p700_p11 = por %p699_p10, %p698_p7 }
  0x2f   : > { %p696_p6 = pneg %p695_p5  ;;  %p702_p1 = por %p701_p13, %p700_p11 }
  0x31   : > { %p703_p2 = pnand %p702_p1, %p696_p6 }
  0x33   : > { %706 = shalt.err (!%p703_p2)
}
  0x34   : > { %s707_s21 = scalar_lea.vmem %s1020_s26, 64  ;;  %s886_s25 = smov [#allocation5]  }
  0x35   : > { %p708_p3 = scmp.ne.s32.totalorder %s1020_s26, %s707_s21  ;;  %s712_s29 = sshll.u32 %s886_s25, 4  ;;  %s713_s29 = int_to_ptr.vmem [resolvable:$false] %s712_s29 }
  0x36   : > { %s714_s22 = scalar_lea.vmem %s713_s29, 128  ;;  %p715_p9 = scmp.lt.s32.totalorder %s1020_s26, %s713_s29 }
  0x37   : > { %p710_p5 = pnand %p708_p3, %p1029_p4  ;;  %p716_p8 = scmp.lt.s32.totalorder %s714_s22, %s707_s21 }
  0x39   : > { %p711_p12 = pneg %p710_p5  ;;  %p717_p7 = por %p716_p8, %p715_p9 }
  0x3b   : > { %p718_p10 = pnand %p717_p7, %p711_p12 }
  0x3d   : > { %721 = shalt.err (!%p718_p10)
}
  0x3e   : > { %611 = dma.hbm_to_vmem [thread:$0]  (!%p1005_p0), %s1016_s24, 64, %s1020_s26, %s1023_s8  }
  0x3f   : > { %p1228_p1 = scmp.lt.s32.totalorder %s884_s19, 5  ;;  %p1229_p2 = scmp.ge.s32.totalorder %s884_s19, 1 }
  0x40   : > { %s1065_s21 = scalar_lea.hbm %s1201_s0, %s1009_s11  ;;  %s168_s25 = scalar_lea.vmem [#allocation2], %s999_s7 }
  0x41   : > { %p1057_p6 = pnand %p1229_p2, %p1228_p1  ;;  %s177_s29 = sshll.u32 %s168_s25, 4  ;;  %s1068_s29 = int_to_ptr.vmem [resolvable:$true] %s177_s29 }
  0x42   : > { %s1074_s22 = scalar_lea.hbm %s1203_s2, %s1009_s11  ;;  %s1231_s1 = sand.u32 1, %s864_s14  }
  0x43   : > { %s1230_s23 = scalar_select %p1057_p6, 1, 0 }
  0x44   : > { %s165_s18 = scalar_lea.sflag [#allocation3], %s1231_s1  ;;  %s722_s17 = scalar_lea.hbm %s1065_s21, 64 }
  0x45   : > { %p723_p8 = scmp.ne.s32.totalorder %s1065_s21, %s722_s17  ;;  %s727_s6 = scalar_lea.hbm %s1201_s0, 256 }
  0x46   : > { %p728_p11 = scmp.lt.u32.totalorder %s1065_s21, %s1201_s0  ;;  %p729_p13 = scmp.lt.u32.totalorder %s727_s6, %s722_s17 }
  0x47   : > { %p725_p9 = pnand %p723_p8, %p1029_p4  ;;  %p731_p5 = scmp.lt.u32.totalorder %s722_s17, %s1065_s21 }
  0x48   : > { %p730_p3 = por %p729_p13, %p728_p11 }
  0x49   : > { %p726_p12 = pneg %p725_p9 }
  0x4a   : > { %p732_p7 = por %p731_p5, %p730_p3 }
  0x4c   : > { %p733_p10 = pnand %p732_p7, %p726_p12 }
  0x4e   : > { %736 = shalt.err (!%p733_p10)
}
  0x4f   : > { %s737_s1 = scalar_lea.vmem %s1068_s29, 64  ;;  %s887_s11 = smov [#allocation2]  }
  0x50   : > { %p738_p1 = scmp.ne.s32.totalorder %s1068_s29, %s737_s1  ;;  %s742_s24 = sshll.u32 %s887_s11, 4  ;;  %s743_s24 = int_to_ptr.vmem [resolvable:$false] %s742_s24 }
  0x51   : > { %s744_s4 = scalar_lea.vmem %s743_s24, 128  ;;  %p745_p9 = scmp.lt.s32.totalorder %s1068_s29, %s743_s24 }
  0x52   : > { %p740_p2 = pnand %p738_p1, %p1029_p4  ;;  %p746_p6 = scmp.lt.s32.totalorder %s744_s4, %s737_s1 }
  0x54   : > { %p741_p8 = pneg %p740_p2  ;;  %p747_p11 = por %p746_p6, %p745_p9 }
  0x56   : > { %p748_p13 = pnand %p747_p11, %p741_p8 }
  0x58   : > { %751 = shalt.err (!%p748_p13)
}
  0x59   : > { %608 = dma.hbm_to_vmem [thread:$0]  (!%p1005_p0), %s1065_s21, 64, %s1068_s29, %s165_s18  }
  0x5a   : > { %s208_s17 = scalar_lea.vmem [#allocation7], %s999_s7  ;;  %s752_s26 = scalar_lea.hbm %s1074_s22, 64 }
  0x5b   : > { %s217_s6 = sshll.u32 %s208_s17, 4  ;;  %p753_p12 = scmp.ne.s32.totalorder %s1074_s22, %s752_s26  ;;  %s218_s6 = int_to_ptr.vmem [resolvable:$true] %s217_s6 }
  0x5c   : > { %s757_s25 = scalar_lea.hbm %s1203_s2, 256  ;;  %p758_p5 = scmp.lt.u32.totalorder %s1074_s22, %s1203_s2 }
  0x5d   : > { %p755_p6 = pnand %p753_p12, %p1029_p4  ;;  %p759_p7 = scmp.lt.u32.totalorder %s757_s25, %s752_s26 }
  0x5e   : > { %p761_p1 = scmp.lt.u32.totalorder %s752_s26, %s1074_s22 }
  0x5f   : > { %p756_p3 = pneg %p755_p6  ;;  %p760_p10 = por %p759_p7, %p758_p5 }
  0x61   : > { %p762_p2 = por %p761_p1, %p760_p10 }
  0x63   : > { %p763_p8 = pnand %p762_p2, %p756_p3 }
  0x65   : > { %766 = shalt.err (!%p763_p8)
}
  0x66   : > { %s767_s18 = scalar_lea.vmem %s218_s6, 64  ;;  %s888_s7 = smov [#allocation7]  }
  0x67   : > { %p768_p9 = scmp.ne.s32.totalorder %s218_s6, %s767_s18  ;;  %s772_s21 = sshll.u32 %s888_s7, 4  ;;  %s773_s21 = int_to_ptr.vmem [resolvable:$false] %s772_s21 }
  0x68   : > { %s774_s29 = scalar_lea.vmem %s773_s21, 128  ;;  %p775_p12 = scmp.lt.s32.totalorder %s218_s6, %s773_s21 }
  0x69   : > { %p770_p11 = pnand %p768_p9, %p1029_p4  ;;  %p776_p6 = scmp.lt.s32.totalorder %s774_s29, %s767_s18 }
  0x6b   : > { %p771_p13 = pneg %p770_p11  ;;  %p777_p0 = por %p776_p6, %p775_p12 }
  0x6d   : > { %p778_p5 = pnand %p777_p0, %p771_p13 }
  0x6f   : > { %781 = shalt.err (!%p778_p5)
}
  0x70   : > { %p1232_p7 = scmp.ne.s32.totalorder %s1225_s10, 0  ;;  %p1233_p3 = scmp.ne.s32.totalorder %s1230_s23, 0 }
  0x71   : > { %s1121_s5 = sand.u32 (!%p1233_p3), 1, %s860_s13   ;;  %p1234_p0 = scmp.ne.s32.totalorder (!%p1233_p3), %s1220_s27, 0 }
  0x72   : > { %614 = dma.hbm_to_vmem [thread:$0]  (!%p1232_p7), %s1074_s22, 64, %s218_s6, %s1023_s8  }
  0x73   : > { %226 = sbr.rel (%p1233_p3) target bundleno = 739 (0x2e3), region = 32  ;;  %s1124_s24 = sshll.u32 (!%p1233_p3), %s1121_s5, 2 }
  0x74   : > { %s229_s4 = scalar_lea.sflag (!%p1233_p3), [#allocation3], %s1121_s5  ;;  %s232_s17 = scalar_lea.vmem (!%p1233_p3), [#allocation2], %s1124_s24 }
  0x7a   : > { %843 = dma.done.wait (%p1234_p0), %s229_s4, 64  }
  0x7b   : > { %845 = vsyncadd (%p1234_p0), %s229_s4, 4294967232  ;;  %s237_s10 = sand.u32 1, %s954_s20   ;;  %s241_s23 = scalar_lea.vmem [#allocation5], %s1124_s24 }
  0x7c   : > { %s238_s8 = scalar_lea.sflag [#allocation6], %s237_s10 }
  0x7d   : > { %847 = dma.done.wait (%p1234_p0), %s238_s8, 128  }
  0x7e   : > { %849 = vsyncadd (%p1234_p0), %s238_s8, 4294967168  ;;  %v889_v0 = vmov 0.0   ;;  %vm890_vm0 = vmmov 0   ;;  %vm290_vm1 = vcmask 130048   ;;  %v288_v1 = vld [vmem:[%s241_s23] sm:$0x7] }
  0x7f   : > { %585 = vmatprep.subr.bf16.mxu0 %v889_v0  ;;  %587 = vmatprep.mubr.msk.bf16.mxu0 %vm890_vm0, %v889_v0  ;;  %v284_v2 = vld [vmem:[%s232_s17] sm:$0x7]  ;;  %v295_v3 = vsel %vm290_vm1, %v288_v1, 0  ;;  %vm337_vm2 = vcmask 36864   ;;  %vm352_vm3 = vcmask 1041408   ;;  %vm353_vm4 = vcmask 1042432  }
  0x80   : > { %591 = vmatprep.subr.bf16.mxu1 %v889_v0  ;;  %593 = vmatprep.mubr.msk.bf16.mxu1 %vm890_vm0, %v889_v0  ;;  %v285_v4 = vunpack.c.l.bf16 %v284_v2  ;;  %s250_s20 = scalar_lea.vmem [#allocation7], %s1124_s24  ;;  %v891_v13 = vmov 65535   ;;  %vm348_vm5 = vcmask 39936   ;;  %s577_s27 = sshll.u32 %s872_s16, 1  ;;  %vm402_vm6 = vcmask 124928  }
  0x81   : > { %586 = vmatpush3.bf16.xpose.msra.mxu0 %v295_v3  ;;  %v289_v12 = vld [vmem:[%s250_s20] sm:$0x7]  ;;  %v354_v14 = vsel %vm352_vm3, 4294967295, %v891_v13  ;;  %s420_s22 = sadd.s32 %s868_s15, %s577_s27  ;;  %vm403_vm7 = vsmask.f32 2304  ;;  %s282_s26 = scalar_lea.vmem [#allocation8], %s1124_s24 }
  0x82   : > { %v286_v5 = vmul.f32 0.25, %v285_v4  ;;  %v355_v15 = vsel %vm353_vm4, %v354_v14, 0  ;;  %s578_s6 = sshll.u32 %s420_s22, 6  ;;  %s424_s9 = sshll.u32 %s282_s26, 4  ;;  %vm404_vm8 = vmand %vm402_vm6, %vm403_vm7  ;;  %v405_v28 = vld [vmem:[%s282_s26] sm:$0x7]  ;;  %s1149_s9 = int_to_ptr.vmem [resolvable:$true] %s424_s9 }
  0x83   : > { %v357_v16 = vand.u32 %v355_v15, %v289_v12  ;;  %s1147_s15 = scalar_lea.hbm %s1204_s3, %s578_s6  ;;  %s409_s16 = scalar_lea.sflag [#allocation4], %s1121_s5 }
  0x84   : > { %v287_v6 = vpack.c.bf16 %v286_v5, %v286_v5  ;;  %s782_s1 = scalar_lea.vmem %s1149_s9, 64  ;;  %p1235_p10 = scmp.ne.s32.totalorder %s1221_s28, 0 }
  0x85   : > { %592 = vmatpush3.bf16.msra.mxu1 %v357_v16  ;;  %p783_p4 = scmp.ne.s32.totalorder %s1149_s9, %s782_s1  ;;  %s892_s11 = smov [#allocation8]  }
  0x86   : > { %s786_s18 = sshll.u32 %s892_s11, 4  ;;  %s787_s18 = int_to_ptr.vmem [resolvable:$false] %s786_s18 }
  0x87   : > { %p784_p1 = pnand %p783_p4, %p1235_p10  ;;  %s788_s7 = scalar_lea.vmem %s787_s18, 128 }
  0x88   : > { %588 = vmatmul.mubr.msk.bf16.vlgmr.msra.gmra.mrb[0].mxu0 %vm290_vm1, %v287_v6  ;;  %p789_p8 = scmp.lt.s32.totalorder %s1149_s9, %s787_s18  ;;  %p790_p9 = scmp.lt.s32.totalorder %s788_s7, %s782_s1 }
  0x89   : > { %p785_p2 = pneg %p784_p1 }
  0x8a   : > { %p791_p11 = por %p790_p9, %p789_p8 }
  0x8c   : > { %p792_p13 = pnand %p791_p11, %p785_p2 }
 0x15b   : > { %v331_v7 = vpop.f32.mrb[0].mxu0 }
 0x15c   : > { %v589_v8 = vpop.f32.mrb[1].mxu0  ;;  %v338_v9 = vsel %vm337_vm2, %v331_v7, -inf }
 0x15d   : > { %339 = vmax.xlane.f32.xlu0 %v338_v9  ;;  %v334_v10 = vpop.f32.mrb[2].mxu0 }
 0x15e   : > { %v590_v11 = vpop.f32.mrb[3].mxu0 }
 0x1ea   : > { %v340_v17 = vpop.xlane.xlu0 %339 }
 0x1eb   : > { %v341_v18 = vsub.f32 %v331_v7, %v340_v17 }
 0x1ed   : > { %v342_v19 = vmul.f32 1.442695, %v341_v18 }
 0x1ef   : > { %688 = vpow2.f32 %v342_v19 }
 0x1f9   : > { %v689_v20 = vpop.eup %688 }
 0x1fa   : > { %v344_v21 = vsel %vm337_vm2, %v689_v20, 0.0  ;;  %v347_v22 = vpack.c.bf16 %v689_v20, %v689_v20 }
 0x1fb   : > { %345 = vadd.xlane.f32.xlu0 %v344_v21 }
 0x1fc   : > { %594 = vmatmul.mubr.msk.bf16.vlgmr.msra.gmra.mrb[0].mxu1 %vm348_vm5, %v347_v22 }
 0x288   : > { %v346_v23 = vpop.xlane.xlu0 %345 }
 0x289   : > { %690 = vrcp.f32 %v346_v23 }
 0x293   : > { %v691_v24 = vpop.eup %690 }
 0x2cf   : > { %v393_v25 = vpop.f32.mrb[0].mxu1 }
 0x2d0   : > { %v400_v26 = vmul.f32 %v691_v24, %v393_v25  ;;  %v595_v27 = vpop.f32.mrb[1].mxu1 }
 0x2d1   : > { %v396_v29 = vpop.f32.mrb[2].mxu1 }
 0x2d2   : > { %v401_v30 = vpack.c.bf16 %v400_v26, %v400_v26  ;;  %v596_v31 = vpop.f32.mrb[3].mxu1 }
 0x2d4   : > { %v406_v32 = vsel %vm404_vm8, %v401_v30, %v405_v28 }
 0x2d5   : > { %407 = vst [vmem:[%s282_s26] sm:$0x7] %v406_v32 }
 0x2d6   : > { %795 = shalt.err (!%p792_p13)
}
 0x2d7   : > { %s796_s21 = scalar_lea.hbm %s1147_s15, 64  ;;  %s800_s24 = scalar_lea.hbm %s1204_s3, 256 }
 0x2d8   : > { %p797_p12 = scmp.ne.s32.totalorder %s1147_s15, %s796_s21  ;;  %p801_p7 = scmp.lt.u32.totalorder %s1147_s15, %s1204_s3 }
 0x2d9   : > { %p802_p3 = scmp.lt.u32.totalorder %s800_s24, %s796_s21  ;;  %p804_p4 = scmp.lt.u32.totalorder %s796_s21, %s1147_s15 }
 0x2da   : > { %p798_p6 = pnand %p797_p12, %p1235_p10 }
 0x2db   : > { %p803_p0 = por %p802_p3, %p801_p7 }
 0x2dc   : > { %p799_p5 = pneg %p798_p6 }
 0x2dd   : > { %p805_p1 = por %p804_p4, %p803_p0 }
 0x2df   : > { %p806_p2 = pnand %p805_p1, %p799_p5 }
 0x2e1   : > { %809 = shalt.err (!%p806_p2)
}
 0x2e2   : > { %603 = dma.vmem_to_hbm [thread:$0]  (%p1235_p10), %s1149_s9, 64, %s1147_s15, %s409_s16  }
 0x2e3 PF: > { %s1236_s10 = sld [smem:[#allocation16_spill]]  ;;  %p620_p8 = scmp.ge.s32.totalorder %s884_s19, 2 }
 0x2e4   : > { %s436_s8 = sand.u32 1, %s856_s12  }
 0x2e5   : > { %s437_s23 = scalar_lea.sflag [#allocation4], %s436_s8 }
 0x2e9   : > { %p1237_p9 = scmp.ne.s32.totalorder %s1236_s10, 0 }
 0x2eb   : > { %p616_p11 = pnand %p620_p8, %p1237_p9 }
 0x2ed   : > { %851 = dma.done.wait (!%p616_p11), %s437_s23, 64  }
 0x2ee   : > { %853 = vsyncadd (!%p616_p11), %s437_s23, 4294967232  ;;  %s22_s19 = sadd.s32 1, %s884_s19   ;;  %s1238_s28 = sld [smem:[#allocation17_spill]] }
 0x2ef   : > { %p19_p13 = scmp.ge.s32.totalorder %s22_s19, 6   ;;  %s1239_s15 = sld [smem:[#allocation12_spill]] }
 0x2f0   : > { %s1240_s16 = sld [smem:[#allocation13_spill]]  ;;  %s1241_s17 = sld [smem:[#allocation14_spill]] }
 0x2f1   : > { %s1242_s18 = sld [smem:[#allocation15_spill]]  ;;  %s1243_s12 = smov %s860_s13 }
 0x2f2   : > { %s1244_s13 = smov %s864_s14  ;;  %21 = sbr.rel (!%p19_p13) target bundleno = 11 (0xb), region = 101 }
 0x2f4   : > { %s1245_s14 = smov %s1238_s28 }
 0x2f9   :  { %442 = vsyncpa [#allocation3], 1 }
 0x2fa   :  { %444 = vsyncpa [#allocation3 + $0x1], 1 }
 0x2fb   :  { %445 = vsyncpa [#allocation6], 1 }
 0x2fc   :  { %447 = vsyncpa [#allocation6 + $0x1], 1 }
 0x2fd   :  { %448 = vsyncpa [#allocation4], 1 }
 0x2fe   :  { %450 = vsyncpa [#allocation4 + $0x1], 1 }

// kernel: clip_vision_proj_forward.17
= control target key start
LH: loop header
LB: loop body
LE: loop exit
PB: predicated region body
PF: predicated region fallthrough
CT: control target
= control target key end

     0   :  { %9 = vsyncpa [#allocation4], 0  ;;  %s474_s0 = inlined_call_operand.hbm [shape: bf16[10,32], index: 0, kind: input, shape index: {}, may-alias: {0,4}]   ;;  %s475_s1 = inlined_call_operand.hbm [shape: bf16[10,32], index: 1, kind: input, shape index: {}]   ;;  %s476_s2 = inlined_call_operand.hbm [shape: bf16[32,32], index: 2, kind: input, shape index: {}]   ;;  %s477_s3 = inlined_call_operand.hbm [shape: f32[1,32], index: 3, kind: input, shape index: {}]   ;;  %s478_s4 = inlined_call_operand.hbm [shape: bf16[10,32], index: 4, kind: output, shape index: {}, may-alias: {0,4}]  }
   0x1   :  { %10 = vsyncpa [#allocation7], 0 }
   0x2   :  { %11 = vsyncpa [#allocation10], 0 }
   0x3   :  { %12 = vsyncpa [#allocation5], 0  ;;  %s356_s15 = smov [#allocation6]   ;;  %s357_s17 = smov [#allocation3]  }
   0x4   :  { %s30_s16 = sshll.u32 %s356_s15, 4  ;;  %s18_s18 = sshll.u32 %s357_s17, 4  ;;  %s31_s16 = int_to_ptr.vmem [resolvable:$true] %s30_s16  ;;  %s390_s18 = int_to_ptr.vmem [resolvable:$true] %s18_s18 }
   0x5   :  { %s238_s21 = scalar_lea.hbm %s475_s1, 128 }
   0x6   :  { %p239_p0 = scmp.ne.s32.totalorder %s475_s1, %s238_s21  ;;  %p242_p1 = scmp.lt.u32.totalorder %s238_s21, %s475_s1 }
   0x8   :  { %p244_p2 = pnand %p242_p1, %p239_p0 }
   0xa   :  { %247 = shalt.err (!%p244_p2)
}
   0xb   :  { %s248_s26 = scalar_lea.vmem %s31_s16, 128  ;;  %p253_p4 = scmp.lt.s32.totalorder %s31_s16, %s31_s16 }
   0xc   :  { %p249_p3 = scmp.ne.s32.totalorder %s31_s16, %s248_s26  ;;  %p254_p5 = scmp.lt.s32.totalorder %s248_s26, %s248_s26 }
   0xe   :  { %p255_p6 = por %p254_p5, %p253_p4 }
  0x10   :  { %p256_p7 = pnand %p255_p6, %p249_p3 }
  0x12   :  { %259 = shalt.err (!%p256_p7)
}
  0x13   :  { %s358_s27 = smov 64   ;;  %s359_s28 = smov 4  }
  0x14   :  { %36 = dma.hbm_to_vmem [thread:$0]  %s475_s1, 128, %s31_s16, [#allocation7], %s358_s27, %s358_s27, %s359_s28  }
  0x15   :  { %s260_s7 = scalar_lea.hbm %s474_s0, 128 }
  0x16   :  { %p261_p8 = scmp.ne.s32.totalorder %s474_s0, %s260_s7  ;;  %p264_p9 = scmp.lt.u32.totalorder %s260_s7, %s474_s0 }
  0x18   :  { %p266_p10 = pnand %p264_p9, %p261_p8 }
  0x1a   :  { %269 = shalt.err (!%p266_p10)
}
  0x1b   :  { %s270_s12 = scalar_lea.vmem %s390_s18, 128  ;;  %p275_p12 = scmp.lt.s32.totalorder %s390_s18, %s390_s18 }
  0x1c   :  { %p271_p11 = scmp.ne.s32.totalorder %s390_s18, %s270_s12  ;;  %p276_p13 = scmp.lt.s32.totalorder %s270_s12, %s270_s12 }
  0x1e   :  { %p277_p0 = por %p276_p13, %p275_p12 }
  0x20   :  { %p278_p1 = pnand %p277_p0, %p271_p11 }
  0x22   :  { %281 = shalt.err (!%p278_p1)
}
  0x23   :  { %24 = dma.hbm_to_vmem [thread:$0]  %s474_s0, 128, %s390_s18, [#allocation4], %s358_s27, %s358_s27, %s359_s28  }
  0x24   :  { %s360_s14 = smov [#allocation8]   ;;  %s361_s16 = smov [#allocation9]  }
  0x25   :  { %s42_s15 = sshll.u32 %s360_s14, 4  ;;  %s55_s17 = sshll.u32 %s361_s16, 4  ;;  %s43_s15 = int_to_ptr.vmem [resolvable:$true] %s42_s15  ;;  %s56_s17 = int_to_ptr.vmem [resolvable:$true] %s55_s17 }
  0x26   :  { %s282_s21 = scalar_lea.hbm %s476_s2, 256 }
  0x27   :  { %p283_p2 = scmp.ne.s32.totalorder %s476_s2, %s282_s21  ;;  %p286_p3 = scmp.lt.u32.totalorder %s282_s21, %s476_s2 }
  0x29   :  { %p288_p4 = pnand %p286_p3, %p283_p2 }
  0x2b   :  { %291 = shalt.err (!%p288_p4)
}
  0x2c   :  { %s292_s0 = scalar_lea.vmem %s43_s15, 256  ;;  %p297_p6 = scmp.lt.s32.totalorder %s43_s15, %s43_s15 }
  0x2d   :  { %p293_p5 = scmp.ne.s32.totalorder %s43_s15, %s292_s0  ;;  %p298_p7 = scmp.lt.s32.totalorder %s292_s0, %s292_s0 }
  0x2f   :  { %p299_p8 = por %p298_p7, %p297_p6 }
  0x31   :  { %p300_p9 = pnand %p299_p8, %p293_p5 }
  0x33   :  { %303 = shalt.err (!%p300_p9)
}
  0x34   :  { %48 = dma.hbm_to_vmem [thread:$0]  %s476_s2, 256, %s43_s15, [#allocation7], %s358_s27, %s358_s27, %s359_s28  }
  0x35   :  { %s304_s5 = scalar_lea.hbm %s477_s3, 16 }
  0x36   :  { %p305_p10 = scmp.ne.s32.totalorder %s477_s3, %s304_s5  ;;  %p308_p11 = scmp.lt.u32.totalorder %s304_s5, %s477_s3 }
  0x38   :  { %p310_p12 = pnand %p308_p11, %p305_p10 }
  0x3a   :  { %313 = shalt.err (!%p310_p12)
}
  0x3b   :  { %s314_s10 = scalar_lea.vmem %s56_s17, 16  ;;  %s318_s11 = scalar_lea.vmem %s56_s17, 32 }
  0x3c   :  { %p315_p13 = scmp.ne.s32.totalorder %s56_s17, %s314_s10  ;;  %p319_p0 = scmp.lt.s32.totalorder %s56_s17, %s56_s17 }
  0x3d   :  { %p320_p1 = scmp.lt.s32.totalorder %s318_s11, %s314_s10 }
  0x3f   :  { %p321_p2 = por %p320_p1, %p319_p0 }
  0x41   :  { %p322_p3 = pnand %p321_p2, %p315_p13 }
  0x43   :  { %325 = shalt.err (!%p322_p3)
}
  0x44   :  { %58 = dma.hbm_to_vmem [thread:$0]  %s477_s3, 16, %s56_s17, [#allocation10]  }
  0x45   :  { %348 = dma.done.wait [#allocation4], 128  }
  0x46   :  { %349 = vsyncadd [#allocation4], 4294967168 }
  0x47   :  { %350 = dma.done.wait [#allocation7], 384  }
  0x48   :  { %351 = vsyncadd [#allocation7], 4294966912 }
  0x49   :  { %352 = dma.done.wait [#allocation10], 16  }
  0x4a   :  { %353 = vsyncadd [#allocation10], 4294967280  ;;  %vm78_vm0 = vcmask 254976   ;;  %vm76_vm1 = vcmask 261120   ;;  %v362_v0 = vmov 0.0   ;;  %vm363_vm2 = vmmov 0  }
  0x4b   :  { %79 = vst.msk [vmem:[#allocation2 + $0x8] sm:$0x3] %vm78_vm0, %v362_v0  ;;  %218 = vmatprep.subr.bf16.mxu0 %v362_v0  ;;  %222 = vmatprep.mubr.msk.bf16.mxu0 %vm363_vm2, %v362_v0  ;;  %v235_v1 = vld [vmem:[#allocation8] sm:$0xff]   ;;  %v236_v2 = vld [vmem:[#allocation8 + $0x8] sm:$0xff]   ;;  %v237_v3 = vld [vmem:[#allocation6] sm:$0x1f]  }
  0x4c   :  { %77 = vst.msk [vmem:[#allocation2] sm:$0xff] %vm76_vm1, %v362_v0  ;;  %219 = vmatpush3.bf16.msra.mxu0 %v235_v1  ;;  %v169_v12 = vld [vmem:[#allocation3] sm:$0xf]  ;;  %v170_v14 = vld [vmem:[#allocation3 + $0x4] sm:$0x1]  ;;  %vm183_vm3 = vcmask 257024  }
  0x4d   :  { %220 = vmatprep.subr.bf16.mxu0 %v362_v0  ;;  %v210_v13 = vld [vmem:[#allocation9] ss:$0 sm:$0xff]  ;;  %v171_v15 = vunpack.c.l.bf16 %v169_v12  ;;  %v172_v18 = vunpack.c.l.bf16 %v170_v14  ;;  %s364_s3 = smov [#allocation11]   ;;  %vm185_vm4 = vcmask 253952  }
  0x4e   :  { %s192_s1 = sshll.u32 %s364_s3, 4  ;;  %s193_s1 = int_to_ptr.vmem [resolvable:$true] %s192_s1 }
  0x4f   :  { %s326_s13 = scalar_lea.vmem %s193_s1, 128  ;;  %p331_p5 = scmp.lt.s32.totalorder %s193_s1, %s193_s1 }
  0x50   :  { %221 = vmatpush3.bf16.msra.mxu0 %v236_v2  ;;  %p327_p4 = scmp.ne.s32.totalorder %s193_s1, %s326_s13  ;;  %p332_p6 = scmp.lt.s32.totalorder %s326_s13, %s326_s13 }
  0x52   :  { %v81_v6 = vld [vmem:[#allocation2 + $0x8] sm:$0x3]  ;;  %p333_p7 = por %p332_p6, %p331_p5 }
  0x53   :  { %223 = vmatmul.mubr.msk.bf16.vlgmr.msra.gmra.mrb[0].mxu0 %vm76_vm1, %v237_v3  ;;  %v80_v4 = vld [vmem:[#allocation2] sm:$0xff] }
  0x54   :  { %p334_p8 = pnand %p333_p7, %p327_p4 }
 0x126   :  { %v143_v5 = vpop.f32.mrb[0].mxu0 }
 0x127   :  { %v150_v7 = vadd.f32 %v143_v5, %v80_v4  ;;  %v224_v8 = vpop.f32.mrb[1].mxu0 }
 0x128   :  { %v146_v9 = vpop.f32.mrb[2].mxu0 }
 0x129   :  { %152 = vst.msk [vmem:[#allocation2] sm:$0xff] %vm76_vm1, %v150_v7  ;;  %v151_v10 = vadd.f32 %v146_v9, %v81_v6  ;;  %v225_v11 = vpop.f32.mrb[3].mxu0 }
 0x12b   :  { %154 = vst.msk [vmem:[#allocation2 + $0x8] sm:$0x3] %vm78_vm0, %v151_v10 }
 0x130   :  { %v158_v16 = vld [vmem:[#allocation2] sm:$0xff] }
 0x131   :  { %v167_v17 = vadd.f32 %v210_v13, %v158_v16 }
 0x132   :  { %v159_v19 = vld [vmem:[#allocation2 + $0x8] sm:$0x3] }
 0x133   :  { %v168_v20 = vadd.f32 %v210_v13, %v159_v19  ;;  %v173_v21 = vadd.f32 %v171_v15, %v167_v17 }
 0x135   :  { %v174_v22 = vadd.f32 %v172_v18, %v168_v20  ;;  %v213_v23 = vpack.c.bf16 %v173_v21, %v173_v21 }
 0x137   :  { %v214_v24 = vpack.c.bf16 %v174_v22, %v174_v22  ;;  %184 = vst.msk [vmem:[#allocation11] sm:$0xf] %vm183_vm3, %v213_v23 }
 0x139   :  { %186 = vst.msk [vmem:[#allocation11 + $0x4] sm:$0x1] %vm185_vm4, %v214_v24 }
 0x13a   :  { %337 = shalt.err (!%p334_p8)
}
 0x13b   :  { %s338_s16 = scalar_lea.hbm %s478_s4, 128 }
 0x13c   :  { %p339_p9 = scmp.ne.s32.totalorder %s478_s4, %s338_s16  ;;  %p342_p10 = scmp.lt.u32.totalorder %s338_s16, %s478_s4 }
 0x13e   :  { %p344_p11 = pnand %p342_p10, %p339_p9 }
 0x140   :  { %347 = shalt.err (!%p344_p11)
}
 0x141   :  { %198 = dma.vmem_to_hbm [thread:$0]  %s193_s1, 128, %s478_s4, [#allocation5], %s358_s27, %s358_s27, %s359_s28  }
 0x142   :  { %354 = dma.done.wait [#allocation5], 128  }
 0x143   :  { %355 = vsyncadd [#allocation5], 4294967168 }
 0x144   :  { %202 = vsyncpa [#allocation4], 1 }
 0x145   :  { %203 = vsyncpa [#allocation7], 1 }
 0x146   :  { %204 = vsyncpa [#allocation10], 1 }
 0x147   :  { %205 = vsyncpa [#allocation5], 1 }

// kernel: clip_vision_proj_forward.18
= control target key start
LH: loop header
LB: loop body
LE: loop exit
PB: predicated region body
PF: predicated region fallthrough
CT: control target
= control target key end

     0   :  { %10 = vsyncpa [#allocation4], 0  ;;  %s590_s0 = inlined_call_operand.hbm [shape: bf16[10,32], index: 0, kind: input, shape index: {}]   ;;  %s591_s1 = inlined_call_operand.hbm [shape: f32[1,32], index: 1, kind: input, shape index: {}]   ;;  %s592_s2 = inlined_call_operand.hbm [shape: f32[1,32], index: 2, kind: input, shape index: {}]   ;;  %s593_s3 = inlined_call_operand.hbm [shape: bf16[32,64], index: 3, kind: input, shape index: {}]   ;;  %s594_s4 = inlined_call_operand.hbm [shape: f32[1,64], index: 4, kind: input, shape index: {}]   ;;  %s595_s5 = inlined_call_operand.hbm [shape: bf16[10,64], index: 5, kind: output, shape index: {}]  }
   0x1   :  { %11 = vsyncpa [#allocation7], 0 }
   0x2   :  { %12 = vsyncpa [#allocation10], 0 }
   0x3   :  { %13 = vsyncpa [#allocation5], 0  ;;  %s466_s18 = smov [#allocation6]   ;;  %s326_s22 = scalar_lea.hbm %s591_s1, 16 }
   0x4   :  { %s32_s19 = sshll.u32 %s466_s18, 4  ;;  %p327_p0 = scmp.ne.s32.totalorder %s591_s1, %s326_s22  ;;  %s33_s19 = int_to_ptr.vmem [resolvable:$true] %s32_s19 }
   0x5   :  { %p330_p1 = scmp.lt.u32.totalorder %s326_s22, %s591_s1 }
   0x7   :  { %p332_p2 = pnand %p330_p1, %p327_p0 }
   0x9   :  { %335 = shalt.err (!%p332_p2)
}
   0xa   :  { %s336_s27 = scalar_lea.vmem %s33_s19, 16  ;;  %s340_s28 = scalar_lea.vmem %s33_s19, 32 }
   0xb   :  { %p337_p3 = scmp.ne.s32.totalorder %s33_s19, %s336_s27  ;;  %p341_p4 = scmp.lt.s32.totalorder %s33_s19, %s33_s19 }
   0xc   :  { %p342_p5 = scmp.lt.s32.totalorder %s340_s28, %s336_s27 }
   0xe   :  { %p343_p6 = por %p342_p5, %p341_p4 }
  0x10   :  { %p344_p7 = pnand %p343_p6, %p337_p3 }
  0x12   :  { %347 = shalt.err (!%p344_p7)
}
  0x13   :  { %35 = dma.hbm_to_vmem [thread:$0]  %s591_s1, 16, %s33_s19, [#allocation7]  }
  0x14   :  { %s467_s6 = smov [#allocation9]   ;;  %s468_s8 = smov [#allocation3]  }
  0x15   :  { %s51_s7 = sshll.u32 %s467_s6, 4  ;;  %s19_s9 = sshll.u32 %s468_s8, 4  ;;  %s52_s7 = int_to_ptr.vmem [resolvable:$true] %s51_s7  ;;  %s20_s9 = int_to_ptr.vmem [resolvable:$true] %s19_s9 }
  0x16   :  { %s348_s12 = scalar_lea.hbm %s593_s3, 256 }
  0x17   :  { %p349_p8 = scmp.ne.s32.totalorder %s593_s3, %s348_s12  ;;  %p352_p9 = scmp.lt.u32.totalorder %s348_s12, %s593_s3 }
  0x19   :  { %p354_p10 = pnand %p352_p9, %p349_p8 }
  0x1b   :  { %357 = shalt.err (!%p354_p10)
}
  0x1c   :  { %s358_s1 = scalar_lea.vmem %s52_s7, 256  ;;  %p363_p12 = scmp.lt.s32.totalorder %s52_s7, %s52_s7 }
  0x1d   :  { %p359_p11 = scmp.ne.s32.totalorder %s52_s7, %s358_s1  ;;  %p364_p13 = scmp.lt.s32.totalorder %s358_s1, %s358_s1 }
  0x1f   :  { %p365_p0 = por %p364_p13, %p363_p12 }
  0x21   :  { %p366_p1 = pnand %p365_p0, %p359_p11 }
  0x23   :  { %369 = shalt.err (!%p366_p1)
}
  0x24   :  { %s469_s17 = smov 64   ;;  %s470_s18 = smov 4  }
  0x25   :  { %57 = dma.hbm_to_vmem [thread:$0]  %s593_s3, 256, %s52_s7, [#allocation10], %s469_s17, %s469_s17, %s470_s18  }
  0x26   :  { %s370_s23 = scalar_lea.hbm %s590_s0, 128 }
  0x27   :  { %p371_p2 = scmp.ne.s32.totalorder %s590_s0, %s370_s23  ;;  %p374_p3 = scmp.lt.u32.totalorder %s370_s23, %s590_s0 }
  0x29   :  { %p376_p4 = pnand %p374_p3, %p371_p2 }
  0x2b   :  { %379 = shalt.err (!%p376_p4)
}
  0x2c   :  { %s380_s28 = scalar_lea.vmem %s20_s9, 128  ;;  %p385_p6 = scmp.lt.s32.totalorder %s20_s9, %s20_s9 }
  0x2d   :  { %p381_p5 = scmp.ne.s32.totalorder %s20_s9, %s380_s28  ;;  %p386_p7 = scmp.lt.s32.totalorder %s380_s28, %s380_s28 }
  0x2f   :  { %p387_p8 = por %p386_p7, %p385_p6 }
  0x31   :  { %p388_p9 = pnand %p387_p8, %p381_p5 }
  0x33   :  { %391 = shalt.err (!%p388_p9)
}
  0x34   :  { %25 = dma.hbm_to_vmem [thread:$0]  %s590_s0, 128, %s20_s9, [#allocation4], %s469_s17, %s469_s17, %s470_s18  }
  0x35   :  { %s471_s30 = smov [#allocation8]   ;;  %s472_s7 = smov [#allocation11]  }
  0x36   :  { %s42_s6 = sshll.u32 %s471_s30, 4  ;;  %s64_s8 = sshll.u32 %s472_s7, 4  ;;  %s43_s6 = int_to_ptr.vmem [resolvable:$true] %s42_s6  ;;  %s65_s8 = int_to_ptr.vmem [resolvable:$true] %s64_s8 }
  0x37   :  { %s392_s12 = scalar_lea.hbm %s592_s2, 16 }
  0x38   :  { %p393_p10 = scmp.ne.s32.totalorder %s592_s2, %s392_s12  ;;  %p396_p11 = scmp.lt.u32.totalorder %s392_s12, %s592_s2 }
  0x3a   :  { %p398_p12 = pnand %p396_p11, %p393_p10 }
  0x3c   :  { %401 = shalt.err (!%p398_p12)
}
  0x3d   :  { %s402_s0 = scalar_lea.vmem %s43_s6, 16  ;;  %s406_s9 = scalar_lea.vmem %s43_s6, 32 }
  0x3e   :  { %p403_p13 = scmp.ne.s32.totalorder %s43_s6, %s402_s0  ;;  %p407_p0 = scmp.lt.s32.totalorder %s43_s6, %s43_s6 }
  0x3f   :  { %p408_p1 = scmp.lt.s32.totalorder %s406_s9, %s402_s0 }
  0x41   :  { %p409_p2 = por %p408_p1, %p407_p0 }
  0x43   :  { %p410_p3 = pnand %p409_p2, %p403_p13 }
  0x45   :  { %413 = shalt.err (!%p410_p3)
}
  0x46   :  { %45 = dma.hbm_to_vmem [thread:$0]  %s592_s2, 16, %s43_s6, [#allocation7]  }
  0x47   :  { %s414_s22 = scalar_lea.hbm %s594_s4, 16 }
  0x48   :  { %p415_p4 = scmp.ne.s32.totalorder %s594_s4, %s414_s22  ;;  %p418_p5 = scmp.lt.u32.totalorder %s414_s22, %s594_s4 }
  0x4a   :  { %p420_p6 = pnand %p418_p5, %p415_p4 }
  0x4c   :  { %423 = shalt.err (!%p420_p6)
}
  0x4d   :  { %s424_s27 = scalar_lea.vmem %s65_s8, 16  ;;  %s428_s28 = scalar_lea.vmem %s65_s8, 32 }
  0x4e   :  { %p425_p7 = scmp.ne.s32.totalorder %s65_s8, %s424_s27  ;;  %p429_p8 = scmp.lt.s32.totalorder %s65_s8, %s65_s8 }
  0x4f   :  { %p430_p9 = scmp.lt.s32.totalorder %s428_s28, %s424_s27 }
  0x51   :  { %p431_p10 = por %p430_p9, %p429_p8 }
  0x53   :  { %p432_p11 = pnand %p431_p10, %p425_p7 }
  0x55   :  { %435 = shalt.err (!%p432_p11)
}
  0x56   :  { %67 = dma.hbm_to_vmem [thread:$0]  %s594_s4, 16, %s65_s8, [#allocation10]  }
  0x57   :  { %458 = dma.done.wait [#allocation4], 128  }
  0x58   :  { %459 = vsyncadd [#allocation4], 4294967168 }
  0x59   :  { %460 = dma.done.wait [#allocation7], 32  }
  0x5a   :  { %461 = vsyncadd [#allocation7], 4294967264 }
  0x5b   :  { %462 = dma.done.wait [#allocation10], 272  }
  0x5c   :  { %463 = vsyncadd [#allocation10], 4294967024  ;;  %vm92_vm0 = vcmask 261120   ;;  %v88_v0 = vld [vmem:[#allocation3] sm:$0xf]  ;;  %vm96_vm1 = vcmask 254976  }
  0x5d   :  { %v89_v1 = vld [vmem:[#allocation3 + $0x4] sm:$0x1]  ;;  %v90_v2 = vunpack.c.l.bf16 %v88_v0  ;;  %v311_v16 = vld [vmem:[#allocation9] sm:$0xff]   ;;  %v473_v17 = vmov 0.0   ;;  %vm474_vm2 = vmmov 0   ;;  %v312_v18 = vld [vmem:[#allocation9 + $0x8] sm:$0xff]  }
  0x5e   :  { %v91_v3 = vunpack.c.l.bf16 %v89_v1  ;;  %293 = vmatprep.subr.bf16.mxu0 %v473_v17  ;;  %297 = vmatprep.mubr.msk.bf16.mxu0 %vm474_vm2, %v473_v17  ;;  %v273_v26 = vld [vmem:[#allocation6] ss:$0 sm:$0xff]  ;;  %v274_v28 = vld [vmem:[#allocation8] ss:$0 sm:$0xff]  ;;  %vm147_vm3 = vcmask 257024   ;;  %vm149_vm4 = vcmask 253952  }
  0x5f   :  { %v93_v4 = vsel %vm92_vm0, %v90_v2, 0.0  ;;  %294 = vmatpush3.bf16.msra.mxu0 %v311_v16  ;;  %v277_v38 = vld [vmem:[#allocation11] ss:$0 sm:$0xff]  ;;  %vm250_vm5 = vcmask 519168   ;;  %s475_s4 = smov [#allocation12]   ;;  %vm252_vm6 = vcmask 516096  }
  0x60   :  { %94 = vadd.xlane.f32.xlu0 %v93_v4  ;;  %v97_v5 = vsel %vm96_vm1, %v91_v3, 0.0  ;;  %295 = vmatprep.subr.bf16.mxu0 %v473_v17  ;;  %s259_s29 = sshll.u32 %s475_s4, 4  ;;  %s260_s29 = int_to_ptr.vmem [resolvable:$true] %s259_s29 }
  0x61   :  { %s436_s30 = scalar_lea.vmem %s260_s29, 128  ;;  %p441_p13 = scmp.lt.s32.totalorder %s260_s29, %s260_s29 }
  0x62   :  { %p437_p12 = scmp.ne.s32.totalorder %s260_s29, %s436_s30  ;;  %p442_p0 = scmp.lt.s32.totalorder %s436_s30, %s436_s30 }
  0x63   :  { %296 = vmatpush3.bf16.msra.mxu0 %v312_v18 }
  0x64   :  { %98 = vadd.xlane.f32.xlu0 %v97_v5  ;;  %p443_p1 = por %p442_p0, %p441_p13 }
  0x66   :  { %p444_p2 = pnand %p443_p1, %p437_p12 }
  0xed   :  { %v95_v6 = vpop.xlane.xlu0 %94 }
  0xee   :  { %v101_v7 = vmul.f32 0.03125, %v95_v6 }
  0xf0   :  { %v103_v8 = vsub.f32 %v90_v2, %v101_v7 }
  0xf1   :  { %v99_v9 = vpop.xlane.xlu0 %98 }
  0xf2   :  { %v102_v10 = vmul.f32 0.03125, %v99_v9  ;;  %v105_v11 = vmul.f32 %v103_v8, %v103_v8 }
  0xf4   :  { %v104_v12 = vsub.f32 %v91_v3, %v102_v10  ;;  %v107_v13 = vsel %vm92_vm0, %v105_v11, 0.0 }
  0xf5   :  { %108 = vadd.xlane.f32.xlu1 %v107_v13 }
  0xf6   :  { %v106_v14 = vmul.f32 %v104_v12, %v104_v12 }
  0xf8   :  { %v110_v15 = vsel %vm96_vm1, %v106_v14, 0.0 }
  0xf9   :  { %111 = vadd.xlane.f32.xlu1 %v110_v15 }
 0x182   :  { %v109_v19 = vpop.xlane.xlu1 %108 }
 0x183   :  { %v113_v20 = vmul.f32 0.03125, %v109_v19 }
 0x185   :  { %v115_v21 = vadd.f32 1e-05, %v113_v20 }
 0x186   :  { %v112_v22 = vpop.xlane.xlu1 %111 }
 0x187   :  { %314 = vrsqrt.f32 %v115_v21  ;;  %v114_v23 = vmul.f32 0.03125, %v112_v22 }
 0x189   :  { %v116_v24 = vadd.f32 1e-05, %v114_v23 }
 0x18b   :  { %316 = vrsqrt.f32 %v116_v24 }
 0x191   :  { %v315_v25 = vpop.eup %314 }
 0x192   :  { %v119_v27 = vmul.f32 %v315_v25, %v103_v8 }
 0x194   :  { %v128_v29 = vmul.f32 %v273_v26, %v119_v27 }
 0x195   :  { %v317_v30 = vpop.eup %316 }
 0x196   :  { %v137_v31 = vadd.f32 %v274_v28, %v128_v29  ;;  %v120_v32 = vmul.f32 %v317_v30, %v104_v12 }
 0x198   :  { %v286_v33 = vpack.c.bf16 %v137_v31, %v137_v31  ;;  %v129_v34 = vmul.f32 %v273_v26, %v120_v32 }
 0x19a   :  { %148 = vst.msk [vmem:[#allocation2] sm:$0xf] %vm147_vm3, %v286_v33  ;;  %v138_v35 = vadd.f32 %v274_v28, %v129_v34 }
 0x19c   :  { %v287_v36 = vpack.c.bf16 %v138_v35, %v138_v35 }
 0x19e   :  { %150 = vst.msk [vmem:[#allocation2 + $0x4] sm:$0x1] %vm149_vm4, %v287_v36 }
 0x1a5   :  { %v313_v37 = vld [vmem:[#allocation2] sm:$0x1f]  }
 0x1a6   :  { %298 = vmatmul.mubr.msk.bf16.vlgmr.msra.gmra.mrb[0].mxu0 %vm92_vm0, %v313_v37 }
 0x279   :  { %v219_v39 = vpop.f32.mrb[0].mxu0 }
 0x27a   :  { %v220_v40 = vadd.f32 %v277_v38, %v219_v39  ;;  %v299_v41 = vpop.f32.mrb[1].mxu0 }
 0x27b   :  { %v222_v42 = vpop.f32.mrb[2].mxu0 }
 0x27c   :  { %v282_v43 = vmul.f32 -1.702, %v220_v40  ;;  %v223_v44 = vadd.f32 %v277_v38, %v222_v42  ;;  %v300_v45 = vpop.f32.mrb[3].mxu0 }
 0x27e   :  { %v230_v46 = vmul.f32 1.442695, %v282_v43  ;;  %v283_v47 = vmul.f32 -1.702, %v223_v44 }
 0x280   :  { %318 = vpow2.f32 %v230_v46  ;;  %v232_v48 = vmul.f32 1.442695, %v283_v47 }
 0x282   :  { %320 = vpow2.f32 %v232_v48 }
 0x28a   :  { %v319_v49 = vpop.eup %318 }
 0x28b   :  { %v234_v50 = vadd.f32 1.0, %v319_v49 }
 0x28c   :  { %v321_v51 = vpop.eup %320 }
 0x28d   :  { %322 = vrcp.f32 %v234_v50  ;;  %v235_v52 = vadd.f32 1.0, %v321_v51 }
 0x28f   :  { %324 = vrcp.f32 %v235_v52 }
 0x297   :  { %v323_v53 = vpop.eup %322 }
 0x298   :  { %v240_v54 = vmul.f32 %v323_v53, %v220_v40 }
 0x299   :  { %v325_v55 = vpop.eup %324 }
 0x29a   :  { %v288_v56 = vpack.c.bf16 %v240_v54, %v240_v54  ;;  %v241_v57 = vmul.f32 %v325_v55, %v223_v44 }
 0x29c   :  { %v289_v58 = vpack.c.bf16 %v241_v57, %v241_v57  ;;  %251 = vst.msk [vmem:[#allocation12] sm:$0xf] %vm250_vm5, %v288_v56 }
 0x29e   :  { %253 = vst.msk [vmem:[#allocation12 + $0x4] sm:$0x1] %vm252_vm6, %v289_v58 }
 0x29f   :  { %447 = shalt.err (!%p444_p2)
}
 0x2a0   :  { %s448_s8 = scalar_lea.hbm %s595_s5, 128 }
 0x2a1   :  { %p449_p3 = scmp.ne.s32.totalorder %s595_s5, %s448_s8  ;;  %p452_p4 = scmp.lt.u32.totalorder %s448_s8, %s595_s5 }
 0x2a3   :  { %p454_p5 = pnand %p452_p4, %p449_p3 }
 0x2a5   :  { %457 = shalt.err (!%p454_p5)
}
 0x2a6   :  { %265 = dma.vmem_to_hbm [thread:$0]  %s260_s29, 128, %s595_s5, [#allocation5], %s469_s17, %s469_s17, %s470_s18  }
 0x2a7   :  { %464 = dma.done.wait [#allocation5], 128  }
 0x2a8   :  { %465 = vsyncadd [#allocation5], 4294967168 }
 0x2a9   :  { %269 = vsyncpa [#allocation4], 1 }
 0x2aa   :  { %270 = vsyncpa [#allocation7], 1 }
 0x2ab   :  { %271 = vsyncpa [#allocation10], 1 }
 0x2ac   :  { %272 = vsyncpa [#allocation5], 1 }

// kernel: clip_vision_proj_forward.19
= control target key start
LH: loop header
LB: loop body
LE: loop exit
PB: predicated region body
PF: predicated region fallthrough
CT: control target
= control target key end

     0   :  { %9 = vsyncpa [#allocation4], 0  ;;  %s498_s0 = inlined_call_operand.hbm [shape: bf16[10,32], index: 0, kind: input, shape index: {}, may-alias: {0,4}]   ;;  %s499_s1 = inlined_call_operand.hbm [shape: bf16[10,64], index: 1, kind: input, shape index: {}]   ;;  %s500_s2 = inlined_call_operand.hbm [shape: bf16[64,32], index: 2, kind: input, shape index: {}]   ;;  %s501_s3 = inlined_call_operand.hbm [shape: f32[1,32], index: 3, kind: input, shape index: {}]   ;;  %s502_s4 = inlined_call_operand.hbm [shape: bf16[10,32], index: 4, kind: output, shape index: {}, may-alias: {0,4}]  }
   0x1   :  { %10 = vsyncpa [#allocation7], 0 }
   0x2   :  { %11 = vsyncpa [#allocation10], 0 }
   0x3   :  { %12 = vsyncpa [#allocation5], 0  ;;  %s383_s15 = smov [#allocation6]   ;;  %s384_s17 = smov [#allocation3]  }
   0x4   :  { %s30_s16 = sshll.u32 %s383_s15, 4  ;;  %s18_s18 = sshll.u32 %s384_s17, 4  ;;  %s31_s16 = int_to_ptr.vmem [resolvable:$true] %s30_s16  ;;  %s417_s18 = int_to_ptr.vmem [resolvable:$true] %s18_s18 }
   0x5   :  { %s265_s21 = scalar_lea.hbm %s499_s1, 128 }
   0x6   :  { %p266_p0 = scmp.ne.s32.totalorder %s499_s1, %s265_s21  ;;  %p269_p1 = scmp.lt.u32.totalorder %s265_s21, %s499_s1 }
   0x8   :  { %p271_p2 = pnand %p269_p1, %p266_p0 }
   0xa   :  { %274 = shalt.err (!%p271_p2)
}
   0xb   :  { %s275_s26 = scalar_lea.vmem %s31_s16, 128  ;;  %p280_p4 = scmp.lt.s32.totalorder %s31_s16, %s31_s16 }
   0xc   :  { %p276_p3 = scmp.ne.s32.totalorder %s31_s16, %s275_s26  ;;  %p281_p5 = scmp.lt.s32.totalorder %s275_s26, %s275_s26 }
   0xe   :  { %p282_p6 = por %p281_p5, %p280_p4 }
  0x10   :  { %p283_p7 = pnand %p282_p6, %p276_p3 }
  0x12   :  { %286 = shalt.err (!%p283_p7)
}
  0x13   :  { %s385_s27 = smov 64   ;;  %s386_s28 = smov 4  }
  0x14   :  { %36 = dma.hbm_to_vmem [thread:$0]  %s499_s1, 128, %s31_s16, [#allocation7], %s385_s27, %s385_s27, %s386_s28  }
  0x15   :  { %s287_s7 = scalar_lea.hbm %s498_s0, 128 }
  0x16   :  { %p288_p8 = scmp.ne.s32.totalorder %s498_s0, %s287_s7  ;;  %p291_p9 = scmp.lt.u32.totalorder %s287_s7, %s498_s0 }
  0x18   :  { %p293_p10 = pnand %p291_p9, %p288_p8 }
  0x1a   :  { %296 = shalt.err (!%p293_p10)
}
  0x1b   :  { %s297_s12 = scalar_lea.vmem %s417_s18, 128  ;;  %p302_p12 = scmp.lt.s32.totalorder %s417_s18, %s417_s18 }
  0x1c   :  { %p298_p11 = scmp.ne.s32.totalorder %s417_s18, %s297_s12  ;;  %p303_p13 = scmp.lt.s32.totalorder %s297_s12, %s297_s12 }
  0x1e   :  { %p304_p0 = por %p303_p13, %p302_p12 }
  0x20   :  { %p305_p1 = pnand %p304_p0, %p298_p11 }
  0x22   :  { %308 = shalt.err (!%p305_p1)
}
  0x23   :  { %24 = dma.hbm_to_vmem [thread:$0]  %s498_s0, 128, %s417_s18, [#allocation4], %s385_s27, %s385_s27, %s386_s28  }
  0x24   :  { %s387_s14 = smov [#allocation8]   ;;  %s388_s16 = smov [#allocation9]  }
  0x25   :  { %s42_s15 = sshll.u32 %s387_s14, 4  ;;  %s55_s17 = sshll.u32 %s388_s16, 4  ;;  %s43_s15 = int_to_ptr.vmem [resolvable:$true] %s42_s15  ;;  %s56_s17 = int_to_ptr.vmem [resolvable:$true] %s55_s17 }
  0x26   :  { %s309_s21 = scalar_lea.hbm %s500_s2, 512 }
  0x27   :  { %p310_p2 = scmp.ne.s32.totalorder %s500_s2, %s309_s21  ;;  %p313_p3 = scmp.lt.u32.totalorder %s309_s21, %s500_s2 }
  0x29   :  { %p315_p4 = pnand %p313_p3, %p310_p2 }
  0x2b   :  { %318 = shalt.err (!%p315_p4)
}
  0x2c   :  { %s319_s0 = scalar_lea.vmem %s43_s15, 512  ;;  %p324_p6 = scmp.lt.s32.totalorder %s43_s15, %s43_s15 }
  0x2d   :  { %p320_p5 = scmp.ne.s32.totalorder %s43_s15, %s319_s0  ;;  %p325_p7 = scmp.lt.s32.totalorder %s319_s0, %s319_s0 }
  0x2f   :  { %p326_p8 = por %p325_p7, %p324_p6 }
  0x31   :  { %p327_p9 = pnand %p326_p8, %p320_p5 }
  0x33   :  { %330 = shalt.err (!%p327_p9)
}
  0x34   :  { %48 = dma.hbm_to_vmem [thread:$0]  %s500_s2, 512, %s43_s15, [#allocation7], %s385_s27, %s385_s27, %s386_s28  }
  0x35   :  { %s331_s5 = scalar_lea.hbm %s501_s3, 16 }
  0x36   :  { %p332_p10 = scmp.ne.s32.totalorder %s501_s3, %s331_s5  ;;  %p335_p11 = scmp.lt.u32.totalorder %s331_s5, %s501_s3 }
  0x38   :  { %p337_p12 = pnand %p335_p11, %p332_p10 }
  0x3a   :  { %340 = shalt.err (!%p337_p12)
}
  0x3b   :  { %s341_s10 = scalar_lea.vmem %s56_s17, 16  ;;  %s345_s11 = scalar_lea.vmem %s56_s17, 32 }
  0x3c   :  { %p342_p13 = scmp.ne.s32.totalorder %s56_s17, %s341_s10  ;;  %p346_p0 = scmp.lt.s32.totalorder %s56_s17, %s56_s17 }
  0x3d   :  { %p347_p1 = scmp.lt.s32.totalorder %s345_s11, %s341_s10 }
  0x3f   :  { %p348_p2 = por %p347_p1, %p346_p0 }
  0x41   :  { %p349_p3 = pnand %p348_p2, %p342_p13 }
  0x43   :  { %352 = shalt.err (!%p349_p3)
}
  0x44   :  { %58 = dma.hbm_to_vmem [thread:$0]  %s501_s3, 16, %s56_s17, [#allocation10]  }
  0x45   :  { %375 = dma.done.wait [#allocation4], 128  }
  0x46   :  { %376 = vsyncadd [#allocation4], 4294967168 }
  0x47   :  { %377 = dma.done.wait [#allocation7], 640  }
  0x48   :  { %378 = vsyncadd [#allocation7], 4294966656 }
  0x49   :  { %379 = dma.done.wait [#allocation10], 16  }
  0x4a   :  { %380 = vsyncadd [#allocation10], 4294967280  ;;  %vm76_vm0 = vcmask 261120   ;;  %v389_v0 = vmov 0.0   ;;  %vm390_vm1 = vmmov 0   ;;  %v260_v1 = vld [vmem:[#allocation8] sm:$0xff]  }
  0x4b   :  { %239 = vmatprep.subr.bf16.mxu0 %v389_v0  ;;  %247 = vmatprep.mubr.msk.bf16.mxu0 %vm390_vm1, %v389_v0  ;;  %77 = vst.msk [vmem:[#allocation2] sm:$0xff] %vm76_vm0, %v389_v0  ;;  %v261_v2 = vld [vmem:[#allocation8 + $0x8] sm:$0xff]   ;;  %v262_v3 = vld [vmem:[#allocation8 + $0x10] sm:$0xff]   ;;  %v263_v4 = vld [vmem:[#allocation8 + $0x18] sm:$0xff]   ;;  %vm121_vm2 = vcmask 523264   ;;  %vm78_vm3 = vcmask 254976  }
  0x4c   :  { %240 = vmatpush3.bf16.msra.mxu0 %v260_v1  ;;  %v264_v5 = vld [vmem:[#allocation6] sm:$0x1f]   ;;  %79 = vst.msk [vmem:[#allocation2 + $0x8] sm:$0x3] %vm78_vm3, %v389_v0  ;;  %v186_v14 = vld [vmem:[#allocation3] sm:$0xf] }
  0x4d   :  { %241 = vmatprep.subr.bf16.mxu0 %v389_v0  ;;  %v229_v15 = vld [vmem:[#allocation9] ss:$0 sm:$0xff]  ;;  %v187_v16 = vld [vmem:[#allocation3 + $0x4] sm:$0x1]  ;;  %v188_v17 = vunpack.c.l.bf16 %v186_v14  ;;  %vm200_vm4 = vcmask 257024   ;;  %s391_s3 = smov [#allocation11]  }
  0x4e   :  { %v189_v20 = vunpack.c.l.bf16 %v187_v16  ;;  %s209_s1 = sshll.u32 %s391_s3, 4  ;;  %vm202_vm5 = vcmask 253952   ;;  %s210_s1 = int_to_ptr.vmem [resolvable:$true] %s209_s1 }
  0x4f   :  { %s353_s13 = scalar_lea.vmem %s210_s1, 128  ;;  %p358_p5 = scmp.lt.s32.totalorder %s210_s1, %s210_s1 }
  0x50   :  { %242 = vmatpush3.bf16.msra.mxu0 %v261_v2  ;;  %p354_p4 = scmp.ne.s32.totalorder %s210_s1, %s353_s13  ;;  %p359_p6 = scmp.lt.s32.totalorder %s353_s13, %s353_s13 }
  0x51   :  { %243 = vmatprep.subr.bf16.mxu0 %v389_v0 }
  0x52   :  { %v80_v6 = vld [vmem:[#allocation2] sm:$0xff]  ;;  %p360_p7 = por %p359_p6, %p358_p5 }
  0x53   :  { %v81_v8 = vld [vmem:[#allocation2 + $0x8] sm:$0x3] }
  0x54   :  { %244 = vmatpush3.bf16.msra.mxu0 %v262_v3  ;;  %p361_p8 = pnand %p360_p7, %p354_p4 }
  0x55   :  { %245 = vmatprep.subr.bf16.mxu0 %v389_v0 }
  0x58   :  { %246 = vmatpush3.bf16.msra.mxu0 %v263_v4 }
  0x5b   :  { %248 = vmatmul.mubr.msk.bf16.vlgmr.msra.gmra.mrb[0].mxu0 %vm121_vm2, %v264_v5 }
 0x12e   :  { %v159_v7 = vpop.f32.mrb[0].mxu0 }
 0x12f   :  { %v166_v9 = vadd.f32 %v159_v7, %v80_v6  ;;  %v249_v10 = vpop.f32.mrb[1].mxu0 }
 0x130   :  { %v162_v11 = vpop.f32.mrb[2].mxu0 }
 0x131   :  { %169 = vst.msk [vmem:[#allocation2] sm:$0xff] %vm76_vm0, %v166_v9  ;;  %v167_v12 = vadd.f32 %v162_v11, %v81_v8  ;;  %v250_v13 = vpop.f32.mrb[3].mxu0 }
 0x133   :  { %171 = vst.msk [vmem:[#allocation2 + $0x8] sm:$0x3] %vm78_vm3, %v167_v12 }
 0x138   :  { %v175_v18 = vld [vmem:[#allocation2] sm:$0xff] }
 0x139   :  { %v184_v19 = vadd.f32 %v229_v15, %v175_v18 }
 0x13a   :  { %v176_v21 = vld [vmem:[#allocation2 + $0x8] sm:$0x3] }
 0x13b   :  { %v185_v22 = vadd.f32 %v229_v15, %v176_v21  ;;  %v190_v23 = vadd.f32 %v188_v17, %v184_v19 }
 0x13d   :  { %v191_v24 = vadd.f32 %v189_v20, %v185_v22  ;;  %v232_v25 = vpack.c.bf16 %v190_v23, %v190_v23 }
 0x13f   :  { %v233_v26 = vpack.c.bf16 %v191_v24, %v191_v24  ;;  %201 = vst.msk [vmem:[#allocation11] sm:$0xf] %vm200_vm4, %v232_v25 }
 0x141   :  { %203 = vst.msk [vmem:[#allocation11 + $0x4] sm:$0x1] %vm202_vm5, %v233_v26 }
 0x142   :  { %364 = shalt.err (!%p361_p8)
}
 0x143   :  { %s365_s16 = scalar_lea.hbm %s502_s4, 128 }
 0x144   :  { %p366_p9 = scmp.ne.s32.totalorder %s502_s4, %s365_s16  ;;  %p369_p10 = scmp.lt.u32.totalorder %s365_s16, %s502_s4 }
 0x146   :  { %p371_p11 = pnand %p369_p10, %p366_p9 }
 0x148   :  { %374 = shalt.err (!%p371_p11)
}
 0x149   :  { %215 = dma.vmem_to_hbm [thread:$0]  %s210_s1, 128, %s502_s4, [#allocation5], %s385_s27, %s385_s27, %s386_s28  }
 0x14a   :  { %381 = dma.done.wait [#allocation5], 128  }
 0x14b   :  { %382 = vsyncadd [#allocation5], 4294967168 }
 0x14c   :  { %219 = vsyncpa [#allocation4], 1 }
 0x14d   :  { %220 = vsyncpa [#allocation7], 1 }
 0x14e   :  { %221 = vsyncpa [#allocation10], 1 }
 0x14f   :  { %222 = vsyncpa [#allocation5], 1 }

// kernel: clip_vision_proj_forward.25
= control target key start
LH: loop header
LB: loop body
LE: loop exit
PB: predicated region body
PF: predicated region fallthrough
CT: control target
= control target key end

     0   :  { %10 = vsyncpa [#allocation4], 0  ;;  %s499_s0 = inlined_call_operand.hbm [shape: bf16[2,32], index: 0, kind: input, shape index: {}]   ;;  %s500_s1 = inlined_call_operand.hbm [shape: f32[1,32], index: 1, kind: input, shape index: {}]   ;;  %s501_s2 = inlined_call_operand.hbm [shape: f32[1,32], index: 2, kind: input, shape index: {}]   ;;  %s502_s3 = inlined_call_operand.hbm [shape: bf16[32,24], index: 3, kind: input, shape index: {}]   ;;  %s503_s4 = inlined_call_operand.hbm [shape: f32[1,24], index: 4, kind: input, shape index: {}]   ;;  %s504_s5 = inlined_call_operand.hbm [shape: f32[2,24], index: 5, kind: output, shape index: {}]  }
   0x1   :  { %11 = vsyncpa [#allocation7], 0 }
   0x2   :  { %12 = vsyncpa [#allocation10], 0 }
   0x3   :  { %13 = vsyncpa [#allocation5], 0  ;;  %s380_s18 = smov [#allocation6]   ;;  %s381_s20 = smov [#allocation9]  }
   0x4   :  { %s30_s19 = sshll.u32 %s380_s18, 4  ;;  %s49_s21 = sshll.u32 %s381_s20, 4  ;;  %s31_s19 = int_to_ptr.vmem [resolvable:$true] %s30_s19  ;;  %s420_s21 = int_to_ptr.vmem [resolvable:$true] %s49_s21 }
   0x5   :  { %s240_s24 = scalar_lea.hbm %s500_s1, 16 }
   0x6   :  { %p241_p0 = scmp.ne.s32.totalorder %s500_s1, %s240_s24  ;;  %p244_p1 = scmp.lt.u32.totalorder %s240_s24, %s500_s1 }
   0x8   :  { %p246_p2 = pnand %p244_p1, %p241_p0 }
   0xa   :  { %249 = shalt.err (!%p246_p2)
}
   0xb   :  { %s250_s29 = scalar_lea.vmem %s31_s19, 16  ;;  %s254_s30 = scalar_lea.vmem %s31_s19, 32 }
   0xc   :  { %p251_p3 = scmp.ne.s32.totalorder %s31_s19, %s250_s29  ;;  %p255_p4 = scmp.lt.s32.totalorder %s31_s19, %s31_s19 }
   0xd   :  { %p256_p5 = scmp.lt.s32.totalorder %s254_s30, %s250_s29 }
   0xf   :  { %p257_p6 = por %p256_p5, %p255_p4 }
  0x11   :  { %p258_p7 = pnand %p257_p6, %p251_p3 }
  0x13   :  { %261 = shalt.err (!%p258_p7)
}
  0x14   :  { %33 = dma.hbm_to_vmem [thread:$0]  %s500_s1, 16, %s31_s19, [#allocation7]  }
  0x15   :  { %s262_s10 = scalar_lea.hbm %s502_s3, 256 }
  0x16   :  { %p263_p8 = scmp.ne.s32.totalorder %s502_s3, %s262_s10  ;;  %p266_p9 = scmp.lt.u32.totalorder %s262_s10, %s502_s3 }
  0x18   :  { %p268_p10 = pnand %p266_p9, %p263_p8 }
  0x1a   :  { %271 = shalt.err (!%p268_p10)
}
  0x1b   :  { %s272_s15 = scalar_lea.vmem %s420_s21, 256  ;;  %p277_p12 = scmp.lt.s32.totalorder %s420_s21, %s420_s21 }
  0x1c   :  { %p273_p11 = scmp.ne.s32.totalorder %s420_s21, %s272_s15  ;;  %p278_p13 = scmp.lt.s32.totalorder %s272_s15, %s272_s15 }
  0x1e   :  { %p279_p0 = por %p278_p13, %p277_p12 }
  0x20   :  { %p280_p1 = pnand %p279_p0, %p273_p11 }
  0x22   :  { %283 = shalt.err (!%p280_p1)
}
  0x23   :  { %s382_s1 = smov 64   ;;  %s383_s16 = smov 4  }
  0x24   :  { %55 = dma.hbm_to_vmem [thread:$0]  %s502_s3, 256, %s420_s21, [#allocation10], %s382_s1, %s382_s1, %s383_s16  }
  0x25   :  { %s384_s19 = smov [#allocation3]   ;;  %s385_s22 = smov [#allocation8]  }
  0x26   :  { %s20_s20 = sshll.u32 %s384_s19, 4  ;;  %s40_s23 = sshll.u32 %s385_s22, 4  ;;  %s21_s20 = int_to_ptr.vmem [resolvable:$true] %s20_s20  ;;  %s41_s23 = int_to_ptr.vmem [resolvable:$true] %s40_s23 }
  0x27   :  { %s284_s26 = scalar_lea.hbm %s499_s0, 16 }
  0x28   :  { %p285_p2 = scmp.ne.s32.totalorder %s499_s0, %s284_s26  ;;  %p288_p3 = scmp.lt.u32.totalorder %s284_s26, %s499_s0 }
  0x2a   :  { %p290_p4 = pnand %p288_p3, %p285_p2 }
  0x2c   :  { %293 = shalt.err (!%p290_p4)
}
  0x2d   :  { %s294_s3 = scalar_lea.vmem %s21_s20, 16  ;;  %s298_s21 = scalar_lea.vmem %s21_s20, 32 }
  0x2e   :  { %p295_p5 = scmp.ne.s32.totalorder %s21_s20, %s294_s3  ;;  %p299_p6 = scmp.lt.s32.totalorder %s21_s20, %s21_s20 }
  0x2f   :  { %p300_p7 = scmp.lt.s32.totalorder %s298_s21, %s294_s3 }
  0x31   :  { %p301_p8 = por %p300_p7, %p299_p6 }
  0x33   :  { %p302_p9 = pnand %p301_p8, %p295_p5 }
  0x35   :  { %305 = shalt.err (!%p302_p9)
}
  0x36   :  { %23 = dma.hbm_to_vmem [thread:$0]  %s499_s0, 16, %s21_s20, [#allocation4]  }
  0x37   :  { %s306_s10 = scalar_lea.hbm %s501_s2, 16 }
  0x38   :  { %p307_p10 = scmp.ne.s32.totalorder %s501_s2, %s306_s10  ;;  %p310_p11 = scmp.lt.u32.totalorder %s306_s10, %s501_s2 }
  0x3a   :  { %p312_p12 = pnand %p310_p11, %p307_p10 }
  0x3c   :  { %315 = shalt.err (!%p312_p12)
}
  0x3d   :  { %s316_s15 = scalar_lea.vmem %s41_s23, 16  ;;  %s320_s1 = scalar_lea.vmem %s41_s23, 32 }
  0x3e   :  { %p317_p13 = scmp.ne.s32.totalorder %s41_s23, %s316_s15  ;;  %p321_p0 = scmp.lt.s32.totalorder %s41_s23, %s41_s23 }
  0x3f   :  { %p322_p1 = scmp.lt.s32.totalorder %s320_s1, %s316_s15 }
  0x41   :  { %p323_p2 = por %p322_p1, %p321_p0 }
  0x43   :  { %p324_p3 = pnand %p323_p2, %p317_p13 }
  0x45   :  { %327 = shalt.err (!%p324_p3)
}
  0x46   :  { %43 = dma.hbm_to_vmem [thread:$0]  %s501_s2, 16, %s41_s23, [#allocation7]  }
  0x47   :  { %s386_s17 = smov [#allocation11]   ;;  %s328_s22 = scalar_lea.hbm %s503_s4, 16 }
  0x48   :  { %s62_s18 = sshll.u32 %s386_s17, 4  ;;  %p329_p4 = scmp.ne.s32.totalorder %s503_s4, %s328_s22  ;;  %s63_s18 = int_to_ptr.vmem [resolvable:$true] %s62_s18 }
  0x49   :  { %p332_p5 = scmp.lt.u32.totalorder %s328_s22, %s503_s4 }
  0x4b   :  { %p334_p6 = pnand %p332_p5, %p329_p4 }
  0x4d   :  { %337 = shalt.err (!%p334_p6)
}
  0x4e   :  { %s338_s28 = scalar_lea.vmem %s63_s18, 16  ;;  %s342_s2 = scalar_lea.vmem %s63_s18, 32 }
  0x4f   :  { %p339_p7 = scmp.ne.s32.totalorder %s63_s18, %s338_s28  ;;  %p343_p8 = scmp.lt.s32.totalorder %s63_s18, %s63_s18 }
  0x50   :  { %p344_p9 = scmp.lt.s32.totalorder %s342_s2, %s338_s28 }
  0x52   :  { %p345_p10 = por %p344_p9, %p343_p8 }
  0x54   :  { %p346_p11 = pnand %p345_p10, %p339_p7 }
  0x56   :  { %349 = shalt.err (!%p346_p11)
}
  0x57   :  { %65 = dma.hbm_to_vmem [thread:$0]  %s503_s4, 16, %s63_s18, [#allocation10]  }
  0x58   :  { %372 = dma.done.wait [#allocation4], 16  }
  0x59   :  { %373 = vsyncadd [#allocation4], 4294967280 }
  0x5a   :  { %374 = dma.done.wait [#allocation7], 32  }
  0x5b   :  { %375 = vsyncadd [#allocation7], 4294967264 }
  0x5c   :  { %376 = dma.done.wait [#allocation10], 272  }
  0x5d   :  { %377 = vsyncadd [#allocation10], 4294967024  ;;  %vm88_vm0 = vcmask 254976   ;;  %v86_v0 = vld [vmem:[#allocation3] sm:$0x1]  ;;  %v236_v8 = vld [vmem:[#allocation9] sm:$0xff]  }
  0x5e   :  { %v87_v1 = vunpack.c.l.bf16 %v86_v0  ;;  %v387_v9 = vmov 0.0   ;;  %v237_v10 = vld [vmem:[#allocation9 + $0x8] sm:$0xff]   ;;  %vm388_vm1 = vmmov 0   ;;  %v209_v15 = vld [vmem:[#allocation6] ss:$0 sm:$0xff]  ;;  %vm120_vm2 = vcmask 253952  }
  0x5f   :  { %218 = vmatprep.subr.bf16.mxu0 %v387_v9  ;;  %222 = vmatprep.mubr.msk.bf16.mxu0 %vm388_vm1, %v387_v9  ;;  %v210_v17 = vld [vmem:[#allocation8] ss:$0 sm:$0xff]  ;;  %vm146_vm3 = vcmask 261120   ;;  %v211_v22 = vld [vmem:[#allocation11] ss:$0 sm:$0xff]  ;;  %s389_s4 = smov [#allocation12]  }
  0x60   :  { %v89_v2 = vsel %vm88_vm0, %v87_v1, 0.0  ;;  %219 = vmatpush3.bf16.msra.mxu0 %v236_v8  ;;  %s198_s30 = sshll.u32 %s389_s4, 4  ;;  %vm190_vm4 = vcmask 189440   ;;  %s199_s30 = int_to_ptr.vmem [resolvable:$true] %s198_s30 }
  0x61   :  { %90 = vadd.xlane.f32.xlu0 %v89_v2  ;;  %220 = vmatprep.subr.bf16.mxu0 %v387_v9  ;;  %s350_s3 = scalar_lea.vmem %s199_s30, 32  ;;  %p355_p13 = scmp.lt.s32.totalorder %s199_s30, %s199_s30 }
  0x62   :  { %p351_p12 = scmp.ne.s32.totalorder %s199_s30, %s350_s3  ;;  %p356_p0 = scmp.lt.s32.totalorder %s350_s3, %s350_s3 }
  0x64   :  { %221 = vmatpush3.bf16.msra.mxu0 %v237_v10  ;;  %p357_p1 = por %p356_p0, %p355_p13 }
  0x66   :  { %p358_p2 = pnand %p357_p1, %p351_p12 }
  0xee   :  { %v91_v3 = vpop.xlane.xlu0 %90 }
  0xef   :  { %v93_v4 = vmul.f32 0.03125, %v91_v3 }
  0xf1   :  { %v94_v5 = vsub.f32 %v87_v1, %v93_v4 }
  0xf3   :  { %v95_v6 = vmul.f32 %v94_v5, %v94_v5 }
  0xf5   :  { %v96_v7 = vsel %vm88_vm0, %v95_v6, 0.0 }
  0xf6   :  { %97 = vadd.xlane.f32.xlu0 %v96_v7 }
 0x183   :  { %v98_v11 = vpop.xlane.xlu0 %97 }
 0x184   :  { %v99_v12 = vmul.f32 0.03125, %v98_v11 }
 0x186   :  { %v100_v13 = vadd.f32 1e-05, %v99_v12 }
 0x188   :  { %238 = vrsqrt.f32 %v100_v13 }
 0x192   :  { %v239_v14 = vpop.eup %238 }
 0x193   :  { %v102_v16 = vmul.f32 %v239_v14, %v94_v5 }
 0x195   :  { %v110_v18 = vmul.f32 %v209_v15, %v102_v16 }
 0x197   :  { %v118_v19 = vadd.f32 %v210_v17, %v110_v18 }
 0x199   :  { %v119_v20 = vpack.c.bf16 %v118_v19, %v118_v19 }
 0x19b   :  { %121 = vst.msk [vmem:[#allocation2] sm:$0x1] %vm120_vm2, %v119_v20 }
 0x1a2   :  { %v122_v21 = vld [vmem:[#allocation2] sm:$0x1] }
 0x1a3   :  { %223 = vmatmul.mubr.msk.bf16.vlgmr.msra.gmra.mrb[0].mxu0 %vm146_vm3, %v122_v21 }
 0x276   :  { %v184_v23 = vpop.f32.mrb[0].mxu0 }
 0x277   :  { %v185_v24 = vadd.f32 %v211_v22, %v184_v23  ;;  %v224_v25 = vpop.f32.mrb[1].mxu0 }
 0x278   :  { %v187_v26 = vpop.f32.mrb[2].mxu0 }
 0x279   :  { %v225_v27 = vpop.f32.mrb[3].mxu0  ;;  %191 = vst.msk [vmem:[#allocation12] sm:$0x3] %vm190_vm4, %v185_v24 }
 0x27a   :  { %361 = shalt.err (!%p358_p2)
}
 0x27b   :  { %s362_s7 = scalar_lea.hbm %s504_s5, 32 }
 0x27c   :  { %p363_p3 = scmp.ne.s32.totalorder %s504_s5, %s362_s7  ;;  %p366_p4 = scmp.lt.u32.totalorder %s362_s7, %s504_s5 }
 0x27e   :  { %p368_p5 = pnand %p366_p4, %p363_p3 }
 0x280   :  { %371 = shalt.err (!%p368_p5)
}
 0x281   :  { %201 = dma.vmem_to_hbm [thread:$0]  %s199_s30, 32, %s504_s5, [#allocation5]  }
 0x282   :  { %378 = dma.done.wait [#allocation5], 32  }
 0x283   :  { %379 = vsyncadd [#allocation5], 4294967264 }
 0x284   :  { %205 = vsyncpa [#allocation4], 1 }
 0x285   :  { %206 = vsyncpa [#allocation7], 1 }
 0x286   :  { %207 = vsyncpa [#allocation10], 1 }
 0x287   :  { %208 = vsyncpa [#allocation5], 1 }

</bundles_post_ra>
